<compile_context>
chip_gen: v5e
topology: v5e:2x2
jax: 0.10.0
libtpu: 0.0.40
codegen_flags: <defaults>
</compile_context>

<pallas_src>
import jax
import jax.numpy as jnp
from jax.experimental import pallas as pl
from jax.experimental.pallas import tpu as pltpu


_VMEM = pl.BlockSpec(memory_space=pltpu.MemorySpace.VMEM)

_LANE = 128        # lane width: pad N to multiples of this (lane-dense outputs)
_MAX_TILE_M = 512  # upper bound on the per-step M tile of the conv kernels


def _round_up(x, m):
    return pl.cdiv(x, m) * m


# ----------------------------------------------------------------------------
# Pallas kernels
# ----------------------------------------------------------------------------
def _conv_pool_kernel(p0_ref, p1_ref, p2_ref, p3_ref, w_ref, b_ref, o_ref):
    """Fused conv(as matmul) + bias + ReLU + 2x2 max-pool.

    p{0..3}: [tm, Kp] im2col patches of the four pool-window corners.
    w: [Kp, Np], b: [1, Np], o: [tm, Np].
    relu(max_i(Pi @ W) + b) == maxpool(relu(conv + b)) since bias is shared
    across the pool window and ReLU is monotone.
    """
    w = w_ref[...]
    m01 = jnp.maximum(
        jnp.dot(p0_ref[...], w, preferred_element_type=jnp.float32),
        jnp.dot(p1_ref[...], w, preferred_element_type=jnp.float32),
    )
    m23 = jnp.maximum(
        jnp.dot(p2_ref[...], w, preferred_element_type=jnp.float32),
        jnp.dot(p3_ref[...], w, preferred_element_type=jnp.float32),
    )
    o_ref[...] = jnp.maximum(jnp.maximum(m01, m23) + b_ref[...], 0.0)


def _fc_stack_kernel(x_ref, w1_ref, b1_ref, w2_ref, b2_ref, w3_ref, b3_ref,
                     o_ref):
    """Fused fc1 -> ReLU -> fc2 -> ReLU -> fc3 (all operands VMEM-resident)."""
    h = jnp.dot(x_ref[...], w1_ref[...], preferred_element_type=jnp.float32)
    h = jnp.maximum(h + b1_ref[...], 0.0)
    h = jnp.dot(h, w2_ref[...], preferred_element_type=jnp.float32)
    h = jnp.maximum(h + b2_ref[...], 0.0)
    h = jnp.dot(h, w3_ref[...], preferred_element_type=jnp.float32)
    o_ref[...] = h + b3_ref[...]


# ----------------------------------------------------------------------------
# Glue: im2col of the four 2x2-pool corners (pure reshuffling, no arithmetic)
# ----------------------------------------------------------------------------
def _im2col_pool_corners(x_nhwc, kh, kw, k_pad, m_pad):
    """x: NHWC [B,H,W,C] -> 4 arrays [m_pad, k_pad] (valid conv, then 2x2 pool).

    Row ordering of each corner matrix is (b, ph, pw); column (K) ordering is
    (kh, kw, c_in) -- the conv weights are pre-flattened in the same order.
    """
    b, h, w, c = x_nhwc.shape
    oh, ow = h - kh + 1, w - kw + 1
    ph, pw = oh // 2, ow // 2
    k = kh * kw * c
    m = b * ph * pw

    cols = []
    for i in range(kh):
        for j in range(kw):
            cols.append(x_nhwc[:, i:i + oh, j:j + ow, :])   # [B, OH, OW, C]
    patches = jnp.stack(cols, axis=3)                       # [B, OH, OW, kh*kw, C]
    patches = patches.reshape(b, oh, ow, k)                 # K order (kh, kw, c)

    corners = []
    for dh in range(2):
        for dw in range(2):
            p = patches[:, dh::2, dw::2, :].reshape(m, k)
            p = jnp.pad(p, ((0, m_pad - m), (0, k_pad - k)))
            corners.append(p)
    return corners


# ----------------------------------------------------------------------------
# Fused conv + ReLU + 2x2-pool layer
# ----------------------------------------------------------------------------
def conv_relu_pool(x_nhwc, w_pad, b_pad, cout, kh=5, kw=5):
    b, h, w, _ = x_nhwc.shape
    oh, ow = h - kh + 1, w - kw + 1
    ph, pw = oh // 2, ow // 2
    m = b * ph * pw
    k_pad, n_pad = w_pad.shape

    # Adaptive M tile: one grid step for small batches, 512-row tiles for big.
    tm = min(_MAX_TILE_M, _round_up(m, 128))
    m_pad = _round_up(m, tm)

    corners = _im2col_pool_corners(x_nhwc, kh, kw, k_pad, m_pad)

    out = pl.pallas_call(
        _conv_pool_kernel,
        out_shape=jax.ShapeDtypeStruct((m_pad, n_pad), jnp.float32),
        grid_spec=pltpu.PrefetchScalarGridSpec(
            num_scalar_prefetch=0,
            grid=(m_pad // tm,),
            in_specs=[pl.BlockSpec((tm, k_pad), lambda i: (i, 0))] * 4
                     + [pl.BlockSpec((k_pad, n_pad), lambda i: (0, 0)),
                        pl.BlockSpec((1, n_pad), lambda i: (0, 0))],
            out_specs=pl.BlockSpec((tm, n_pad), lambda i: (i, 0)),
        ),
        compiler_params=pltpu.CompilerParams(
            dimension_semantics=("parallel",),
            vmem_limit_bytes=32 * 1024 * 1024,
        ),
    )(*corners, w_pad, b_pad)

    return out[:m, :cout].reshape(b, ph, pw, cout)          # NHWC


# ----------------------------------------------------------------------------
# Fused fully-connected stack (fc1 + ReLU + fc2 + ReLU + fc3)
# ----------------------------------------------------------------------------
def fc_stack(x, pp):
    b, k = x.shape
    bp = _round_up(max(b, 8), 8)
    kp = pp["fc1_w"].shape[0]
    n_pad = pp["fc3_w"].shape[1]
    xp = jnp.pad(x, ((0, bp - b), (0, kp - k)))

    out = pl.pallas_call(
        _fc_stack_kernel,
        out_shape=jax.ShapeDtypeStruct((bp, n_pad), jnp.float32),
        in_specs=[_VMEM] * 7,
        out_specs=_VMEM,
        compiler_params=pltpu.CompilerParams(
            vmem_limit_bytes=32 * 1024 * 1024,
        ),
    )(xp, pp["fc1_w"], pp["fc1_b"], pp["fc2_w"], pp["fc2_b"],
      pp["fc3_w"], pp["fc3_b"])

    return out[:b, :10]


# ----------------------------------------------------------------------------
# One-time parameter preparation (hoisted out of the forward pass)
# ----------------------------------------------------------------------------
def prepare_params(params):
    def pad2(a, rows, cols):
        return jnp.pad(a, ((0, rows - a.shape[0]), (0, cols - a.shape[1])))

    def pad_bias(v, n):
        return jnp.pad(v, (0, n - v.shape[0])).reshape(1, n)

    # Conv weights: torch (out, in, kh, kw) -> (kh, kw, in, out) -> [K, N],
    # matching the (kh, kw, c_in) im2col column order; K padded to a multiple
    # of 8 (keeps patch matrices / HBM traffic small), N padded to 128.
    w1 = params["conv1_w"].transpose(2, 3, 1, 0).reshape(25, 6)
    w2 = params["conv2_w"].transpose(2, 3, 1, 0).reshape(150, 16)
    k1 = _round_up(25, 8)      # 32
    k2 = _round_up(150, 8)     # 152

    # fc1 columns are permuted from torch's NCHW flatten order (c, h, w) to the
    # NHWC flatten order (h, w, c) produced by the Pallas conv path.
    fc1 = params["fc1_w"].reshape(120, 16, 5, 5).transpose(0, 2, 3, 1)
    fc1 = fc1.reshape(120, 400)

    return {
        "conv1_w": pad2(w1, k1, _LANE),             # [32, 128]
        "conv1_b": pad_bias(params["conv1_b"], _LANE),
        "conv2_w": pad2(w2, k2, _LANE),             # [152, 128]
        "conv2_b": pad_bias(params["conv2_b"], _LANE),
        "fc1_w": pad2(fc1.T, 400, _LANE),           # [400, 128]
        "fc1_b": pad_bias(params["fc1_b"], _LANE),
        "fc2_w": pad2(params["fc2_w"].T, _LANE, _LANE),
        "fc2_b": pad_bias(params["fc2_b"], _LANE),
        "fc3_w": pad2(params["fc3_w"].T, _LANE, _LANE),
        "fc3_b": pad_bias(params["fc3_b"], _LANE),
    }


# ----------------------------------------------------------------------------
# Full forward pass (mirrors torch Net.forward)
# ----------------------------------------------------------------------------
def net_forward(x, pp):
    bsz = x.shape[0]
    x = jnp.transpose(x, (0, 2, 3, 1))                       # NCHW -> NHWC [B,32,32,1]
    y = conv_relu_pool(x, pp["conv1_w"], pp["conv1_b"], cout=6)    # [B,14,14,6]
    y = conv_relu_pool(y, pp["conv2_w"], pp["conv2_b"], cout=16)   # [B,5,5,16]
    y = y.reshape(bsz, 16 * 5 * 5)   # (h, w, c) order; fc1_w columns pre-permuted
    return fc_stack(y, pp)                                   # [B, 10]


# ----------------------------------------------------------------------------
# Pure-JAX reference (torch semantics) for the correctness check
# ----------------------------------------------------------------------------
def net_forward_ref(x, params):
    bsz = x.shape[0]
    dn = ("NCHW", "OIHW", "NCHW")

    y = jax.lax.conv_general_dilated(x, params["conv1_w"], (1, 1), "VALID",
                                     dimension_numbers=dn)
    y = jnp.maximum(y + params["conv1_b"][None, :, None, None], 0.0)
    y = jnp.max(y.reshape(bsz, 6, 14, 2, 14, 2), axis=(3, 5))

    y = jax.lax.conv_general_dilated(y, params["conv2_w"], (1, 1), "VALID",
                                     dimension_numbers=dn)
    y = jnp.maximum(y + params["conv2_b"][None, :, None, None], 0.0)
    y = jnp.max(y.reshape(bsz, 16, 5, 2, 5, 2), axis=(3, 5))

    y = y.reshape(bsz, 16 * 5 * 5)
    y = jnp.maximum(y @ params["fc1_w"].T + params["fc1_b"], 0.0)
    y = jnp.maximum(y @ params["fc2_w"].T + params["fc2_b"], 0.0)
    return y @ params["fc3_w"].T + params["fc3_b"]


# ----------------------------------------------------------------------------
# Deterministic parameter construction (shapes from Net.__init__)
# ----------------------------------------------------------------------------
def make_params(key):
    ks = jax.random.split(key, 10)
    scale = 0.1
    return {
        "conv1_w": scale * jax.random.normal(ks[0], (6, 1, 5, 5), jnp.float32),
        "conv1_b": scale * jax.random.normal(ks[1], (6,), jnp.float32),
        "conv2_w": scale * jax.random.normal(ks[2], (16, 6, 5, 5), jnp.float32),
        "conv2_b": scale * jax.random.normal(ks[3], (16,), jnp.float32),
        "fc1_w": scale * jax.random.normal(ks[4], (120, 400), jnp.float32),
        "fc1_b": scale * jax.random.normal(ks[5], (120,), jnp.float32),
        "fc2_w": scale * jax.random.normal(ks[6], (84, 120), jnp.float32),
        "fc2_b": scale * jax.random.normal(ks[7], (84,), jnp.float32),
        "fc3_w": scale * jax.random.normal(ks[8], (10, 84), jnp.float32),
        "fc3_b": scale * jax.random.normal(ks[9], (10,), jnp.float32),
    }


if __name__ == "__main__":
    key = jax.random.PRNGKey(0)
    k_x, k_p = jax.random.split(key)

    # Input must be [B, 1, 32, 32] so that 16*5*5 features reach fc1.
    x = jax.random.normal(k_x, (2, 1, 32, 32), jnp.float32)
    params = make_params(k_p)
    pp = prepare_params(params)     # one-time: pad/transpose/permute weights

    fwd = jax.jit(net_forward)
    out = jax.block_until_ready(fwd(x, pp))
    assert out.shape == (2, 10), out.shape

    ref = net_forward_ref(x, params)
    assert jnp.allclose(out, ref, rtol=1e-3, atol=1e-3), (
        "Pallas output does not match reference"
    )

    print("KERNEL_OK")
</pallas_src>

<mosaic_0001>
module attributes {stable_mosaic.version = 11 : i64} {
  func.func @_conv_pool_kernel(%arg0: i32, %arg1: memref<512x32xf32, #tpu.memory_space<vmem>>, %arg2: memref<512x32xf32, #tpu.memory_space<vmem>>, %arg3: memref<512x32xf32, #tpu.memory_space<vmem>>, %arg4: memref<512x32xf32, #tpu.memory_space<vmem>>, %arg5: memref<32x128xf32, #tpu.memory_space<vmem>>, %arg6: memref<1x128xf32, #tpu.memory_space<vmem>>, %arg7: memref<512x128xf32, #tpu.memory_space<vmem>>) attributes {dimension_semantics = [#tpu.dimension_semantics<parallel>], iteration_bounds = array<i64: 1>, scalar_prefetch = 0 : i64, scratch_operands = 0 : i64, tpu.core_type = #tpu.core_type<tc>, window_params = [{transform_indices = @transform_0, window_bounds = array<i64: 512, 32>}, {transform_indices = @transform_1, window_bounds = array<i64: 512, 32>}, {transform_indices = @transform_2, window_bounds = array<i64: 512, 32>}, {transform_indices = @transform_3, window_bounds = array<i64: 512, 32>}, {pipeline_mode = #tpu.pipeline_mode<synchronous>, transform_indices = @transform_4, window_bounds = array<i64: 32, 128>}, {pipeline_mode = #tpu.pipeline_mode<synchronous>, transform_indices = @transform_5, window_bounds = array<i64: 1, 128>}, {transform_indices = @transform_6, window_bounds = array<i64: 512, 128>}]} {
    %c0 = arith.constant 0 : index
    %c0_0 = arith.constant 0 : index
    %0 = vector.load %arg5[%c0, %c0_0] : memref<32x128xf32, #tpu.memory_space<vmem>>, vector<32x128xf32>
    %c0_1 = arith.constant 0 : index
    %c0_2 = arith.constant 0 : index
    %1 = vector.load %arg1[%c0_1, %c0_2] : memref<512x32xf32, #tpu.memory_space<vmem>>, vector<512x32xf32>
    %cst = arith.constant dense<0.000000e+00> : vector<512x128xf32>
    %2 = tpu.matmul %1, %0, %cst {dimension_numbers = #tpu.dot_dimension_numbers<[1], [0], [0], [1], [0, 0, 1, 1], [], []>} : vector<512x32xf32>, vector<32x128xf32>, vector<512x128xf32> -> vector<512x128xf32>
    %c0_3 = arith.constant 0 : index
    %c0_4 = arith.constant 0 : index
    %3 = vector.load %arg2[%c0_3, %c0_4] : memref<512x32xf32, #tpu.memory_space<vmem>>, vector<512x32xf32>
    %cst_5 = arith.constant dense<0.000000e+00> : vector<512x128xf32>
    %4 = tpu.matmul %3, %0, %cst_5 {dimension_numbers = #tpu.dot_dimension_numbers<[1], [0], [0], [1], [0, 0, 1, 1], [], []>} : vector<512x32xf32>, vector<32x128xf32>, vector<512x128xf32> -> vector<512x128xf32>
    %5 = arith.maximumf %2, %4 : vector<512x128xf32>
    %c0_6 = arith.constant 0 : index
    %c0_7 = arith.constant 0 : index
    %6 = vector.load %arg3[%c0_6, %c0_7] : memref<512x32xf32, #tpu.memory_space<vmem>>, vector<512x32xf32>
    %cst_8 = arith.constant dense<0.000000e+00> : vector<512x128xf32>
    %7 = tpu.matmul %6, %0, %cst_8 {dimension_numbers = #tpu.dot_dimension_numbers<[1], [0], [0], [1], [0, 0, 1, 1], [], []>} : vector<512x32xf32>, vector<32x128xf32>, vector<512x128xf32> -> vector<512x128xf32>
    %c0_9 = arith.constant 0 : index
    %c0_10 = arith.constant 0 : index
    %8 = vector.load %arg4[%c0_9, %c0_10] : memref<512x32xf32, #tpu.memory_space<vmem>>, vector<512x32xf32>
    %cst_11 = arith.constant dense<0.000000e+00> : vector<512x128xf32>
    %9 = tpu.matmul %8, %0, %cst_11 {dimension_numbers = #tpu.dot_dimension_numbers<[1], [0], [0], [1], [0, 0, 1, 1], [], []>} : vector<512x32xf32>, vector<32x128xf32>, vector<512x128xf32> -> vector<512x128xf32>
    %10 = arith.maximumf %7, %9 : vector<512x128xf32>
    %11 = arith.maximumf %5, %10 : vector<512x128xf32>
    %c0_12 = arith.constant 0 : index
    %c0_13 = arith.constant 0 : index
    %12 = vector.load %arg6[%c0_12, %c0_13] : memref<1x128xf32, #tpu.memory_space<vmem>>, vector<1x128xf32>
    %13 = vector.broadcast %12 : vector<1x128xf32> to vector<512x128xf32>
    %14 = arith.addf %11, %13 : vector<512x128xf32>
    %cst_14 = arith.constant 0.000000e+00 : f32
    %15 = vector.broadcast %cst_14 : f32 to vector<512x128xf32>
    %16 = arith.maximumf %14, %15 : vector<512x128xf32>
    %c0_15 = arith.constant 0 : index
    %c0_16 = arith.constant 0 : index
    %17 = vector.load %arg7[%c0_15, %c0_16] : memref<512x128xf32, #tpu.memory_space<vmem>>, vector<512x128xf32>
    tpu.vector_store %arg7[%c0_15, %c0_16], %16 {strides = array<i32>} : memref<512x128xf32, #tpu.memory_space<vmem>>, vector<512x128xf32>,
    return
  }
  func.func @transform_0(%arg0: i32) -> (i32, i32) {
    %c0_i32 = arith.constant 0 : i32
    %c0_i32_0 = arith.constant 0 : i32
    return %arg0, %c0_i32 : i32, i32
  }
  func.func @transform_1(%arg0: i32) -> (i32, i32) {
    %c0_i32 = arith.constant 0 : i32
    %c0_i32_0 = arith.constant 0 : i32
    return %arg0, %c0_i32 : i32, i32
  }
  func.func @transform_2(%arg0: i32) -> (i32, i32) {
    %c0_i32 = arith.constant 0 : i32
    %c0_i32_0 = arith.constant 0 : i32
    return %arg0, %c0_i32 : i32, i32
  }
  func.func @transform_3(%arg0: i32) -> (i32, i32) {
    %c0_i32 = arith.constant 0 : i32
    %c0_i32_0 = arith.constant 0 : i32
    return %arg0, %c0_i32 : i32, i32
  }
  func.func @transform_4(%arg0: i32) -> (i32, i32) {
    %c0_i32 = arith.constant 0 : i32
    %c0_i32_0 = arith.constant 0 : i32
    %c0_i32_1 = arith.constant 0 : i32
    return %c0_i32, %c0_i32_0 : i32, i32
  }
  func.func @transform_5(%arg0: i32) -> (i32, i32) {
    %c0_i32 = arith.constant 0 : i32
    %c0_i32_0 = arith.constant 0 : i32
    %c0_i32_1 = arith.constant 0 : i32
    return %c0_i32, %c0_i32_0 : i32, i32
  }
  func.func @transform_6(%arg0: i32) -> (i32, i32) {
    %c0_i32 = arith.constant 0 : i32
    %c0_i32_0 = arith.constant 0 : i32
    return %arg0, %c0_i32 : i32, i32
  }
}

module attributes {stable_mosaic.version = 11 : i64} {
  func.func @_conv_pool_kernel(%arg0: i32, %arg1: memref<128x152xf32, #tpu.memory_space<vmem>>, %arg2: memref<128x152xf32, #tpu.memory_space<vmem>>, %arg3: memref<128x152xf32, #tpu.memory_space<vmem>>, %arg4: memref<128x152xf32, #tpu.memory_space<vmem>>, %arg5: memref<152x128xf32, #tpu.memory_space<vmem>>, %arg6: memref<1x128xf32, #tpu.memory_space<vmem>>, %arg7: memref<128x128xf32, #tpu.memory_space<vmem>>) attributes {dimension_semantics = [#tpu.dimension_semantics<parallel>], iteration_bounds = array<i64: 1>, scalar_prefetch = 0 : i64, scratch_operands = 0 : i64, tpu.core_type = #tpu.core_type<tc>, window_params = [{transform_indices = @transform_0, window_bounds = array<i64: 128, 152>}, {transform_indices = @transform_1, window_bounds = array<i64: 128, 152>}, {transform_indices = @transform_2, window_bounds = array<i64: 128, 152>}, {transform_indices = @transform_3, window_bounds = array<i64: 128, 152>}, {pipeline_mode = #tpu.pipeline_mode<synchronous>, transform_indices = @transform_4, window_bounds = array<i64: 152, 128>}, {pipeline_mode = #tpu.pipeline_mode<synchronous>, transform_indices = @transform_5, window_bounds = array<i64: 1, 128>}, {transform_indices = @transform_6, window_bounds = array<i64: 128, 128>}]} {
    %c0 = arith.constant 0 : index
    %c0_0 = arith.constant 0 : index
    %0 = vector.load %arg5[%c0, %c0_0] : memref<152x128xf32, #tpu.memory_space<vmem>>, vector<152x128xf32>
    %c0_1 = arith.constant 0 : index
    %c0_2 = arith.constant 0 : index
    %1 = vector.load %arg1[%c0_1, %c0_2] : memref<128x152xf32, #tpu.memory_space<vmem>>, vector<128x152xf32>
    %cst = arith.constant dense<0.000000e+00> : vector<128x128xf32>
    %2 = tpu.matmul %1, %0, %cst {dimension_numbers = #tpu.dot_dimension_numbers<[1], [0], [0], [1], [0, 0, 1, 1], [], []>} : vector<128x152xf32>, vector<152x128xf32>, vector<128x128xf32> -> vector<128x128xf32>
    %c0_3 = arith.constant 0 : index
    %c0_4 = arith.constant 0 : index
    %3 = vector.load %arg2[%c0_3, %c0_4] : memref<128x152xf32, #tpu.memory_space<vmem>>, vector<128x152xf32>
    %cst_5 = arith.constant dense<0.000000e+00> : vector<128x128xf32>
    %4 = tpu.matmul %3, %0, %cst_5 {dimension_numbers = #tpu.dot_dimension_numbers<[1], [0], [0], [1], [0, 0, 1, 1], [], []>} : vector<128x152xf32>, vector<152x128xf32>, vector<128x128xf32> -> vector<128x128xf32>
    %5 = arith.maximumf %2, %4 : vector<128x128xf32>
    %c0_6 = arith.constant 0 : index
    %c0_7 = arith.constant 0 : index
    %6 = vector.load %arg3[%c0_6, %c0_7] : memref<128x152xf32, #tpu.memory_space<vmem>>, vector<128x152xf32>
    %cst_8 = arith.constant dense<0.000000e+00> : vector<128x128xf32>
    %7 = tpu.matmul %6, %0, %cst_8 {dimension_numbers = #tpu.dot_dimension_numbers<[1], [0], [0], [1], [0, 0, 1, 1], [], []>} : vector<128x152xf32>, vector<152x128xf32>, vector<128x128xf32> -> vector<128x128xf32>
    %c0_9 = arith.constant 0 : index
    %c0_10 = arith.constant 0 : index
    %8 = vector.load %arg4[%c0_9, %c0_10] : memref<128x152xf32, #tpu.memory_space<vmem>>, vector<128x152xf32>
    %cst_11 = arith.constant dense<0.000000e+00> : vector<128x128xf32>
    %9 = tpu.matmul %8, %0, %cst_11 {dimension_numbers = #tpu.dot_dimension_numbers<[1], [0], [0], [1], [0, 0, 1, 1], [], []>} : vector<128x152xf32>, vector<152x128xf32>, vector<128x128xf32> -> vector<128x128xf32>
    %10 = arith.maximumf %7, %9 : vector<128x128xf32>
    %11 = arith.maximumf %5, %10 : vector<128x128xf32>
    %c0_12 = arith.constant 0 : index
    %c0_13 = arith.constant 0 : index
    %12 = vector.load %arg6[%c0_12, %c0_13] : memref<1x128xf32, #tpu.memory_space<vmem>>, vector<1x128xf32>
    %13 = vector.broadcast %12 : vector<1x128xf32> to vector<128x128xf32>
    %14 = arith.addf %11, %13 : vector<128x128xf32>
    %cst_14 = arith.constant 0.000000e+00 : f32
    %15 = vector.broadcast %cst_14 : f32 to vector<128x128xf32>
    %16 = arith.maximumf %14, %15 : vector<128x128xf32>
    %c0_15 = arith.constant 0 : index
    %c0_16 = arith.constant 0 : index
    %17 = vector.load %arg7[%c0_15, %c0_16] : memref<128x128xf32, #tpu.memory_space<vmem>>, vector<128x128xf32>
    tpu.vector_store %arg7[%c0_15, %c0_16], %16 {strides = array<i32>} : memref<128x128xf32, #tpu.memory_space<vmem>>, vector<128x128xf32>,
    return
  }
  func.func @transform_0(%arg0: i32) -> (i32, i32) {
    %c0_i32 = arith.constant 0 : i32
    %c0_i32_0 = arith.constant 0 : i32
    return %arg0, %c0_i32 : i32, i32
  }
  func.func @transform_1(%arg0: i32) -> (i32, i32) {
    %c0_i32 = arith.constant 0 : i32
    %c0_i32_0 = arith.constant 0 : i32
    return %arg0, %c0_i32 : i32, i32
  }
  func.func @transform_2(%arg0: i32) -> (i32, i32) {
    %c0_i32 = arith.constant 0 : i32
    %c0_i32_0 = arith.constant 0 : i32
    return %arg0, %c0_i32 : i32, i32
  }
  func.func @transform_3(%arg0: i32) -> (i32, i32) {
    %c0_i32 = arith.constant 0 : i32
    %c0_i32_0 = arith.constant 0 : i32
    return %arg0, %c0_i32 : i32, i32
  }
  func.func @transform_4(%arg0: i32) -> (i32, i32) {
    %c0_i32 = arith.constant 0 : i32
    %c0_i32_0 = arith.constant 0 : i32
    %c0_i32_1 = arith.constant 0 : i32
    return %c0_i32, %c0_i32_0 : i32, i32
  }
  func.func @transform_5(%arg0: i32) -> (i32, i32) {
    %c0_i32 = arith.constant 0 : i32
    %c0_i32_0 = arith.constant 0 : i32
    %c0_i32_1 = arith.constant 0 : i32
    return %c0_i32, %c0_i32_0 : i32, i32
  }
  func.func @transform_6(%arg0: i32) -> (i32, i32) {
    %c0_i32 = arith.constant 0 : i32
    %c0_i32_0 = arith.constant 0 : i32
    return %arg0, %c0_i32 : i32, i32
  }
}

module attributes {stable_mosaic.version = 11 : i64} {
  func.func @_fc_stack_kernel(%arg0: memref<8x400xf32, #tpu.memory_space<vmem>>, %arg1: memref<400x128xf32, #tpu.memory_space<vmem>>, %arg2: memref<1x128xf32, #tpu.memory_space<vmem>>, %arg3: memref<128x128xf32, #tpu.memory_space<vmem>>, %arg4: memref<1x128xf32, #tpu.memory_space<vmem>>, %arg5: memref<128x128xf32, #tpu.memory_space<vmem>>, %arg6: memref<1x128xf32, #tpu.memory_space<vmem>>, %arg7: memref<8x128xf32, #tpu.memory_space<vmem>>) attributes {dimension_semantics = [], scalar_prefetch = 0 : i64, scratch_operands = 0 : i64, tpu.core_type = #tpu.core_type<tc>} {
    %c0 = arith.constant 0 : index
    %c0_0 = arith.constant 0 : index
    %0 = vector.load %arg0[%c0, %c0_0] : memref<8x400xf32, #tpu.memory_space<vmem>>, vector<8x400xf32>
    %c0_1 = arith.constant 0 : index
    %c0_2 = arith.constant 0 : index
    %1 = vector.load %arg1[%c0_1, %c0_2] : memref<400x128xf32, #tpu.memory_space<vmem>>, vector<400x128xf32>
    %cst = arith.constant dense<0.000000e+00> : vector<8x128xf32>
    %2 = tpu.matmul %0, %1, %cst {dimension_numbers = #tpu.dot_dimension_numbers<[1], [0], [0], [1], [0, 0, 1, 1], [], []>} : vector<8x400xf32>, vector<400x128xf32>, vector<8x128xf32> -> vector<8x128xf32>
    %c0_3 = arith.constant 0 : index
    %c0_4 = arith.constant 0 : index
    %3 = vector.load %arg2[%c0_3, %c0_4] : memref<1x128xf32, #tpu.memory_space<vmem>>, vector<1x128xf32>
    %4 = vector.broadcast %3 : vector<1x128xf32> to vector<8x128xf32>
    %5 = arith.addf %2, %4 : vector<8x128xf32>
    %cst_5 = arith.constant 0.000000e+00 : f32
    %6 = vector.broadcast %cst_5 : f32 to vector<8x128xf32>
    %7 = arith.maximumf %5, %6 : vector<8x128xf32>
    %c0_6 = arith.constant 0 : index
    %c0_7 = arith.constant 0 : index
    %8 = vector.load %arg3[%c0_6, %c0_7] : memref<128x128xf32, #tpu.memory_space<vmem>>, vector<128x128xf32>
    %cst_8 = arith.constant dense<0.000000e+00> : vector<8x128xf32>
    %9 = tpu.matmul %7, %8, %cst_8 {dimension_numbers = #tpu.dot_dimension_numbers<[1], [0], [0], [1], [0, 0, 1, 1], [], []>} : vector<8x128xf32>, vector<128x128xf32>, vector<8x128xf32> -> vector<8x128xf32>
    %c0_9 = arith.constant 0 : index
    %c0_10 = arith.constant 0 : index
    %10 = vector.load %arg4[%c0_9, %c0_10] : memref<1x128xf32, #tpu.memory_space<vmem>>, vector<1x128xf32>
    %11 = vector.broadcast %10 : vector<1x128xf32> to vector<8x128xf32>
    %12 = arith.addf %9, %11 : vector<8x128xf32>
    %cst_11 = arith.constant 0.000000e+00 : f32
    %13 = vector.broadcast %cst_11 : f32 to vector<8x128xf32>
    %14 = arith.maximumf %12, %13 : vector<8x128xf32>
    %c0_12 = arith.constant 0 : index
    %c0_13 = arith.constant 0 : index
    %15 = vector.load %arg5[%c0_12, %c0_13] : memref<128x128xf32, #tpu.memory_space<vmem>>, vector<128x128xf32>
    %cst_14 = arith.constant dense<0.000000e+00> : vector<8x128xf32>
    %16 = tpu.matmul %14, %15, %cst_14 {dimension_numbers = #tpu.dot_dimension_numbers<[1], [0], [0], [1], [0, 0, 1, 1], [], []>} : vector<8x128xf32>, vector<128x128xf32>, vector<8x128xf32> -> vector<8x128xf32>
    %c0_15 = arith.constant 0 : index
    %c0_16 = arith.constant 0 : index
    %17 = vector.load %arg6[%c0_15, %c0_16] : memref<1x128xf32, #tpu.memory_space<vmem>>, vector<1x128xf32>
    %18 = vector.broadcast %17 : vector<1x128xf32> to vector<8x128xf32>
    %19 = arith.addf %16, %18 : vector<8x128xf32>
    %c0_17 = arith.constant 0 : index
    %c0_18 = arith.constant 0 : index
    %20 = vector.load %arg7[%c0_17, %c0_18] : memref<8x128xf32, #tpu.memory_space<vmem>>, vector<8x128xf32>
    tpu.vector_store %arg7[%c0_17, %c0_18], %19 {strides = array<i32>} : memref<8x128xf32, #tpu.memory_space<vmem>>, vector<8x128xf32>,
    return
  }
}

</mosaic_0001>

<bundles_post_ra>
// kernel: net_forward.3
= control target key start
LH: loop header
LB: loop body
LE: loop exit
PB: predicated region body
PF: predicated region fallthrough
CT: control target
= control target key end

     0   :  { %vm91_vm0 = vcmask 261120   ;;  %s3875_s4 = inlined_call_operand.vmem [shape: f32[32,128], index: 4, kind: input, shape index: {}]   ;;  %s3876_s2 = inlined_call_operand.vmem [shape: f32[512,32], index: 2, kind: input, shape index: {}]   ;;  %s3877_s3 = inlined_call_operand.vmem [shape: f32[512,32], index: 3, kind: input, shape index: {}]   ;;  %s3878_s0 = inlined_call_operand.vmem [shape: f32[512,32], index: 0, kind: input, shape index: {}]   ;;  %s3879_s1 = inlined_call_operand.vmem [shape: f32[512,32], index: 1, kind: input, shape index: {}]   ;;  %s3880_s5 = inlined_call_operand.vmem [shape: f32[1,128], index: 5, kind: input, shape index: {}]   ;;  %s3881_s6 = inlined_call_operand.vmem [shape: f32[512,128], index: 6, kind: output, shape index: {}]  }
   0x1   :  { %v26_v0 = vld [vmem:[%s3875_s4 + $0x18] sm:$0xff]  ;;  %v25_v1 = vld [vmem:[%s3875_s4 + $0x10] sm:$0xff]  ;;  %v24_v2 = vld [vmem:[%s3875_s4 + $0x8] sm:$0xff] }
   0x2   :  { %1290 = vmatpush.msra.mxu2 %v26_v0  ;;  %1755 = vmatpush.msra.mxu3 %v26_v0  ;;  %v23_v3 = vld [vmem:[%s3875_s4] sm:$0xff]  ;;  %v1023_v8 = vld [vmem:[%s3876_s2 + $0x8] sm:$0xff]  ;;  %v1024_v12 = vld [vmem:[%s3876_s2 + $0x10] sm:$0xff] }
   0x3   :  { %296 = vmatpush.msra.mxu0 %v26_v0  ;;  %761 = vmatpush.msra.mxu1 %v26_v0  ;;  %v1022_v4 = vld [vmem:[%s3876_s2] sm:$0xff]  ;;  %v1488_v9 = vld [vmem:[%s3877_s3 + $0x8] sm:$0xff]  ;;  %v1489_v13 = vld [vmem:[%s3877_s3 + $0x10] sm:$0xff] }
   0x4   :  { %1291 = vmatpush.msra.mxu2 %v25_v1  ;;  %1756 = vmatpush.msra.mxu3 %v25_v1  ;;  %v1487_v5 = vld [vmem:[%s3877_s3] sm:$0xff]  ;;  %v28_v10 = vld [vmem:[%s3878_s0 + $0x8] sm:$0xff]  ;;  %v29_v14 = vld [vmem:[%s3878_s0 + $0x10] sm:$0xff] }
   0x5   :  { %297 = vmatpush.msra.mxu0 %v25_v1  ;;  %762 = vmatpush.msra.mxu1 %v25_v1  ;;  %v27_v6 = vld [vmem:[%s3878_s0] sm:$0xff]  ;;  %v494_v11 = vld [vmem:[%s3879_s1 + $0x8] sm:$0xff]  ;;  %v495_v15 = vld [vmem:[%s3879_s1 + $0x10] sm:$0xff] }
   0x6   :  { %1292 = vmatpush.msra.mxu2 %v24_v2  ;;  %1757 = vmatpush.msra.mxu3 %v24_v2  ;;  %v493_v7 = vld [vmem:[%s3879_s1] sm:$0xff]  ;;  %v1025_v16 = vld [vmem:[%s3876_s2 + $0x18] sm:$0xff]  ;;  %v1027_v24 = vld [vmem:[%s3876_s2 + $0x28] sm:$0xff] }
   0x7   :  { %298 = vmatpush.msra.mxu0 %v24_v2  ;;  %763 = vmatpush.msra.mxu1 %v24_v2  ;;  %v1490_v17 = vld [vmem:[%s3877_s3 + $0x18] sm:$0xff]  ;;  %v1026_v20 = vld [vmem:[%s3876_s2 + $0x20] sm:$0xff]  ;;  %v1492_v25 = vld [vmem:[%s3877_s3 + $0x28] sm:$0xff] }
   0x8   :  { %1293 = vmatpush.msra.mxu2 %v23_v3  ;;  %1758 = vmatpush.msra.mxu3 %v23_v3  ;;  %v30_v18 = vld [vmem:[%s3878_s0 + $0x18] sm:$0xff]  ;;  %v1491_v21 = vld [vmem:[%s3877_s3 + $0x20] sm:$0xff]  ;;  %v32_v26 = vld [vmem:[%s3878_s0 + $0x28] sm:$0xff] }
   0x9   :  { %2408 = vmatmul.msk.f32.vlgmr.msra.gmra.mxu2 %vm91_vm0, %v1022_v4  ;;  %2472 = vmatmul.msk.f32.vlgmr.msra.gmra.mxu3 %vm91_vm0, %v1487_v5  ;;  %v496_v19 = vld [vmem:[%s3879_s1 + $0x18] sm:$0xff]  ;;  %v31_v22 = vld [vmem:[%s3878_s0 + $0x20] sm:$0xff]  ;;  %v498_v27 = vld [vmem:[%s3879_s1 + $0x28] sm:$0xff] }
   0xa   :  { %299 = vmatpush.msra.mxu0 %v23_v3  ;;  %764 = vmatpush.msra.mxu1 %v23_v3  ;;  %v497_v23 = vld [vmem:[%s3879_s1 + $0x20] sm:$0xff]  ;;  %v1028_v28 = vld [vmem:[%s3876_s2 + $0x30] sm:$0xff]  ;;  %v1029_v32 = vld [vmem:[%s3876_s2 + $0x38] sm:$0xff] }
   0xb   :  { %2280 = vmatmul.msk.f32.vlgmr.msra.gmra.mxu0 %vm91_vm0, %v27_v6  ;;  %2344 = vmatmul.msk.f32.vlgmr.msra.gmra.mxu1 %vm91_vm0, %v493_v7  ;;  %v1493_v29 = vld [vmem:[%s3877_s3 + $0x30] sm:$0xff]  ;;  %v1494_v33 = vld [vmem:[%s3877_s3 + $0x38] sm:$0xff]  ;;  %v1030_v36 = vld [vmem:[%s3876_s2 + $0x40] sm:$0xff] }
   0xc   :  { %v33_v30 = vld [vmem:[%s3878_s0 + $0x30] sm:$0xff]  ;;  %v34_v34 = vld [vmem:[%s3878_s0 + $0x38] sm:$0xff]  ;;  %v1495_v37 = vld [vmem:[%s3877_s3 + $0x40] sm:$0xff] }
   0xd   :  { %v499_v31 = vld [vmem:[%s3879_s1 + $0x30] sm:$0xff]  ;;  %v500_v35 = vld [vmem:[%s3879_s1 + $0x38] sm:$0xff]  ;;  %v35_v38 = vld [vmem:[%s3878_s0 + $0x40] sm:$0xff] }
   0xe   :  { %v501_v39 = vld [vmem:[%s3879_s1 + $0x40] sm:$0xff]  ;;  %v1031_v40 = vld [vmem:[%s3876_s2 + $0x48] sm:$0xff]  ;;  %v1032_v44 = vld [vmem:[%s3876_s2 + $0x50] sm:$0xff] }
   0xf   :  { %v1496_v41 = vld [vmem:[%s3877_s3 + $0x48] sm:$0xff]  ;;  %v1497_v45 = vld [vmem:[%s3877_s3 + $0x50] sm:$0xff]  ;;  %v1033_v48 = vld [vmem:[%s3876_s2 + $0x58] sm:$0xff] }
  0x10   :  { %v36_v42 = vld [vmem:[%s3878_s0 + $0x48] sm:$0xff]  ;;  %v37_v46 = vld [vmem:[%s3878_s0 + $0x50] sm:$0xff]  ;;  %v1498_v49 = vld [vmem:[%s3877_s3 + $0x58] sm:$0xff] }
  0x11   :  { %2409 = vmatmul.msk.f32.gmra.mxu2 %vm91_vm0, %v1023_v8  ;;  %2473 = vmatmul.msk.f32.gmra.mxu3 %vm91_vm0, %v1488_v9  ;;  %v502_v43 = vld [vmem:[%s3879_s1 + $0x48] sm:$0xff]  ;;  %v503_v47 = vld [vmem:[%s3879_s1 + $0x50] sm:$0xff]  ;;  %v38_v50 = vld [vmem:[%s3878_s0 + $0x58] sm:$0xff] }
  0x12   :  { %v504_v51 = vld [vmem:[%s3879_s1 + $0x58] sm:$0xff]  ;;  %v1034_v52 = vld [vmem:[%s3876_s2 + $0x60] sm:$0xff]  ;;  %v1035_v56 = vld [vmem:[%s3876_s2 + $0x68] sm:$0xff] }
  0x13   :  { %2281 = vmatmul.msk.f32.gmra.mxu0 %vm91_vm0, %v28_v10  ;;  %2345 = vmatmul.msk.f32.gmra.mxu1 %vm91_vm0, %v494_v11  ;;  %v1499_v53 = vld [vmem:[%s3877_s3 + $0x60] sm:$0xff]  ;;  %v1500_v57 = vld [vmem:[%s3877_s3 + $0x68] sm:$0xff]  ;;  %v1036_v60 = vld [vmem:[%s3876_s2 + $0x70] sm:$0xff] }
  0x14   :  { %v39_v54 = vld [vmem:[%s3878_s0 + $0x60] sm:$0xff]  ;;  %v40_v58 = vld [vmem:[%s3878_s0 + $0x68] sm:$0xff]  ;;  %v1501_v61 = vld [vmem:[%s3877_s3 + $0x70] sm:$0xff] }
  0x15   :  { %v505_v55 = vld [vmem:[%s3879_s1 + $0x60] sm:$0xff]  ;;  %v506_v59 = vld [vmem:[%s3879_s1 + $0x68] sm:$0xff]  ;;  %v41_v62 = vld [vmem:[%s3878_s0 + $0x70] sm:$0xff] }
  0x16   :  { %v507_v63 = vld [vmem:[%s3879_s1 + $0x70] sm:$0xff]  ;;  %v1037_v0 = vld [vmem:[%s3876_s2 + $0x78] sm:$0xff]  ;;  %v1038_v4 = vld [vmem:[%s3876_s2 + $0x80] sm:$0xff] }
  0x17   :  { %v1502_v1 = vld [vmem:[%s3877_s3 + $0x78] sm:$0xff]  ;;  %v1503_v5 = vld [vmem:[%s3877_s3 + $0x80] sm:$0xff] }
  0x18   :  { %v42_v2 = vld [vmem:[%s3878_s0 + $0x78] sm:$0xff]  ;;  %v43_v8 = vld [vmem:[%s3878_s0 + $0x80] sm:$0xff] }
  0x19   :  { %2410 = vmatmul.msk.f32.gmra.mxu2 %vm91_vm0, %v1024_v12  ;;  %2474 = vmatmul.msk.f32.gmra.mxu3 %vm91_vm0, %v1489_v13  ;;  %v508_v3 = vld [vmem:[%s3879_s1 + $0x78] sm:$0xff]  ;;  %v509_v9 = vld [vmem:[%s3879_s1 + $0x80] sm:$0xff] }
  0x1b   :  { %2282 = vmatmul.msk.f32.gmra.mxu0 %vm91_vm0, %v29_v14  ;;  %2346 = vmatmul.msk.f32.gmra.mxu1 %vm91_vm0, %v495_v15  ;;  %v2860_v14 = vld [vmem:[%s3880_s5] ss:$0 sm:$0xff]  ;;  %v1039_v15 = vld [vmem:[%s3876_s2 + $0x88] sm:$0xff] }
  0x21   :  { %2411 = vmatmul.msk.f32.gmra.mxu2 %vm91_vm0, %v1025_v16  ;;  %2475 = vmatmul.msk.f32.gmra.mxu3 %vm91_vm0, %v1490_v17  ;;  %v1504_v16 = vld [vmem:[%s3877_s3 + $0x88] sm:$0xff] }
  0x23   :  { %2283 = vmatmul.msk.f32.gmra.mxu0 %vm91_vm0, %v30_v18  ;;  %2347 = vmatmul.msk.f32.gmra.mxu1 %vm91_vm0, %v496_v19 }
  0x29   :  { %2412 = vmatmul.msk.f32.gmra.mxu2 %vm91_vm0, %v1026_v20  ;;  %2476 = vmatmul.msk.f32.gmra.mxu3 %vm91_vm0, %v1491_v21  ;;  %v44_v20 = vld [vmem:[%s3878_s0 + $0x88] sm:$0xff] }
  0x2a   :  { %v510_v21 = vld [vmem:[%s3879_s1 + $0x88] sm:$0xff] }
  0x2b   :  { %2284 = vmatmul.msk.f32.gmra.mxu0 %vm91_vm0, %v31_v22  ;;  %2348 = vmatmul.msk.f32.gmra.mxu1 %vm91_vm0, %v497_v23 }
  0x31   :  { %2413 = vmatmul.msk.f32.gmra.mxu2 %vm91_vm0, %v1027_v24  ;;  %2477 = vmatmul.msk.f32.gmra.mxu3 %vm91_vm0, %v1492_v25 }
  0x33   :  { %2285 = vmatmul.msk.f32.gmra.mxu0 %vm91_vm0, %v32_v26  ;;  %2349 = vmatmul.msk.f32.gmra.mxu1 %vm91_vm0, %v498_v27 }
  0x39   :  { %2414 = vmatmul.msk.f32.gmra.mxu2 %vm91_vm0, %v1028_v28  ;;  %2478 = vmatmul.msk.f32.gmra.mxu3 %vm91_vm0, %v1493_v29  ;;  %v1040_v28 = vld [vmem:[%s3876_s2 + $0x90] sm:$0xff] }
  0x3a   :  { %v1505_v29 = vld [vmem:[%s3877_s3 + $0x90] sm:$0xff] }
  0x3b   :  { %2286 = vmatmul.msk.f32.gmra.mxu0 %vm91_vm0, %v33_v30  ;;  %2350 = vmatmul.msk.f32.gmra.mxu1 %vm91_vm0, %v499_v31 }
  0x41   :  { %2415 = vmatmul.msk.f32.gmra.mxu2 %vm91_vm0, %v1029_v32  ;;  %2479 = vmatmul.msk.f32.gmra.mxu3 %vm91_vm0, %v1494_v33  ;;  %v45_v33 = vld [vmem:[%s3878_s0 + $0x90] sm:$0xff] }
  0x43   :  { %2287 = vmatmul.msk.f32.gmra.mxu0 %vm91_vm0, %v34_v34  ;;  %2351 = vmatmul.msk.f32.gmra.mxu1 %vm91_vm0, %v500_v35  ;;  %v511_v34 = vld [vmem:[%s3879_s1 + $0x90] sm:$0xff] }
  0x49   :  { %2416 = vmatmul.msk.f32.gmra.mxu2 %vm91_vm0, %v1030_v36  ;;  %2480 = vmatmul.msk.f32.gmra.mxu3 %vm91_vm0, %v1495_v37 }
  0x4b   :  { %2288 = vmatmul.msk.f32.gmra.mxu0 %vm91_vm0, %v35_v38  ;;  %2352 = vmatmul.msk.f32.gmra.mxu1 %vm91_vm0, %v501_v39 }
  0x51   :  { %2417 = vmatmul.msk.f32.gmra.mxu2 %vm91_vm0, %v1031_v40  ;;  %2481 = vmatmul.msk.f32.gmra.mxu3 %vm91_vm0, %v1496_v41  ;;  %v1041_v41 = vld [vmem:[%s3876_s2 + $0x98] sm:$0xff] }
  0x53   :  { %2289 = vmatmul.msk.f32.gmra.mxu0 %vm91_vm0, %v36_v42  ;;  %2353 = vmatmul.msk.f32.gmra.mxu1 %vm91_vm0, %v502_v43  ;;  %v1506_v42 = vld [vmem:[%s3877_s3 + $0x98] sm:$0xff] }
  0x59   :  { %2418 = vmatmul.msk.f32.gmra.mxu2 %vm91_vm0, %v1032_v44  ;;  %2482 = vmatmul.msk.f32.gmra.mxu3 %vm91_vm0, %v1497_v45 }
  0x5b   :  { %2290 = vmatmul.msk.f32.gmra.mxu0 %vm91_vm0, %v37_v46  ;;  %2354 = vmatmul.msk.f32.gmra.mxu1 %vm91_vm0, %v503_v47  ;;  %v46_v46 = vld [vmem:[%s3878_s0 + $0x98] sm:$0xff] }
  0x5c   :  { %v512_v47 = vld [vmem:[%s3879_s1 + $0x98] sm:$0xff] }
  0x61   :  { %2419 = vmatmul.msk.f32.gmra.mxu2 %vm91_vm0, %v1033_v48  ;;  %2483 = vmatmul.msk.f32.gmra.mxu3 %vm91_vm0, %v1498_v49 }
  0x63   :  { %2291 = vmatmul.msk.f32.gmra.mxu0 %vm91_vm0, %v38_v50  ;;  %2355 = vmatmul.msk.f32.gmra.mxu1 %vm91_vm0, %v504_v51 }
  0x69   :  { %2420 = vmatmul.msk.f32.gmra.mxu2 %vm91_vm0, %v1034_v52  ;;  %2484 = vmatmul.msk.f32.gmra.mxu3 %vm91_vm0, %v1499_v53 }
  0x6b   :  { %2292 = vmatmul.msk.f32.gmra.mxu0 %vm91_vm0, %v39_v54  ;;  %2356 = vmatmul.msk.f32.gmra.mxu1 %vm91_vm0, %v505_v55  ;;  %v1042_v54 = vld [vmem:[%s3876_s2 + $0xa0] sm:$0xff] }
  0x6c   :  { %v1507_v55 = vld [vmem:[%s3877_s3 + $0xa0] sm:$0xff] }
  0x71   :  { %2421 = vmatmul.msk.f32.gmra.mxu2 %vm91_vm0, %v1035_v56  ;;  %2485 = vmatmul.msk.f32.gmra.mxu3 %vm91_vm0, %v1500_v57 }
  0x73   :  { %2293 = vmatmul.msk.f32.gmra.mxu0 %vm91_vm0, %v40_v58  ;;  %2357 = vmatmul.msk.f32.gmra.mxu1 %vm91_vm0, %v506_v59  ;;  %v47_v59 = vld [vmem:[%s3878_s0 + $0xa0] sm:$0xff] }
  0x79   :  { %2422 = vmatmul.msk.f32.gmra.mxu2 %vm91_vm0, %v1036_v60  ;;  %2486 = vmatmul.msk.f32.gmra.mxu3 %vm91_vm0, %v1501_v61  ;;  %v513_v60 = vld [vmem:[%s3879_s1 + $0xa0] sm:$0xff] }
  0x7b   :  { %2294 = vmatmul.msk.f32.gmra.mxu0 %vm91_vm0, %v41_v62  ;;  %2358 = vmatmul.msk.f32.gmra.mxu1 %vm91_vm0, %v507_v63 }
  0x81   :  { %2423 = vmatmul.msk.f32.gmra.mxu2 %vm91_vm0, %v1037_v0  ;;  %2487 = vmatmul.msk.f32.gmra.mxu3 %vm91_vm0, %v1502_v1 }
  0x83   :  { %2295 = vmatmul.msk.f32.gmra.mxu0 %vm91_vm0, %v42_v2  ;;  %2359 = vmatmul.msk.f32.gmra.mxu1 %vm91_vm0, %v508_v3  ;;  %v1043_v3 = vld [vmem:[%s3876_s2 + $0xa8] sm:$0xff] }
  0x88   :  { %v301_v6 = vpop.f32.mrf.mxu0  ;;  %v766_v7 = vpop.f32.mrf.mxu1 }
  0x89   :  { %2424 = vmatmul.msk.f32.gmra.mxu2 %vm91_vm0, %v1038_v4  ;;  %2488 = vmatmul.msk.f32.gmra.mxu3 %vm91_vm0, %v1503_v5  ;;  %v958_v10 = vmax.f32 %v301_v6, %v766_v7  ;;  %v1508_v4 = vld [vmem:[%s3877_s3 + $0xa8] sm:$0xff] }
  0x8b   :  { %2296 = vmatmul.msk.f32.gmra.mxu0 %vm91_vm0, %v43_v8  ;;  %2360 = vmatmul.msk.f32.gmra.mxu1 %vm91_vm0, %v509_v9  ;;  %v48_v8 = vld [vmem:[%s3878_s0 + $0xa8] sm:$0xff] }
  0x8c   :  { %v1295_v11 = vpop.f32.mrf.mxu2  ;;  %v1760_v12 = vpop.f32.mrf.mxu3  ;;  %v514_v9 = vld [vmem:[%s3879_s1 + $0xa8] sm:$0xff] }
  0x8d   :  { %v1952_v13 = vmax.f32 %v1295_v11, %v1760_v12 }
  0x8f   :  { %v2016_v17 = vmax.f32 %v958_v10, %v1952_v13 }
  0x90   :  { %v304_v18 = vpop.f32.mrf.mxu0  ;;  %v769_v19 = vpop.f32.mrf.mxu1 }
  0x91   :  { %v2084_v22 = vadd.f32 %v2860_v14, %v2016_v17  ;;  %2425 = vmatmul.msk.f32.gmra.mxu2 %vm91_vm0, %v1039_v15  ;;  %2489 = vmatmul.msk.f32.gmra.mxu3 %vm91_vm0, %v1504_v16  ;;  %v959_v24 = vmax.f32 %v304_v18, %v769_v19  ;;  %v1044_v17 = vld [vmem:[%s3876_s2 + $0xb0] sm:$0xff] }
  0x92   :  { %v1509_v18 = vld [vmem:[%s3877_s3 + $0xb0] sm:$0xff] }
  0x93   :  { %v2148_v23 = vmax.f32 %v2084_v22, 0.0  ;;  %2297 = vmatmul.msk.f32.gmra.mxu0 %vm91_vm0, %v44_v20  ;;  %2361 = vmatmul.msk.f32.gmra.mxu1 %vm91_vm0, %v510_v21  ;;  %v49_v22 = vld [vmem:[%s3878_s0 + $0xb0] sm:$0xff] }
  0x94   :  { %v1298_v25 = vpop.f32.mrf.mxu2  ;;  %v1763_v26 = vpop.f32.mrf.mxu3 }
  0x95   :  { %2212 = vst [vmem:[%s3881_s6] sm:$0xff] %v2148_v23  ;;  %v1953_v27 = vmax.f32 %v1298_v25, %v1763_v26  ;;  %v515_v23 = vld [vmem:[%s3879_s1 + $0xb0] sm:$0xff] }
  0x97   :  { %v2017_v30 = vmax.f32 %v959_v24, %v1953_v27 }
  0x98   :  { %v307_v31 = vpop.f32.mrf.mxu0  ;;  %v772_v32 = vpop.f32.mrf.mxu1 }
  0x99   :  { %v2085_v35 = vadd.f32 %v2860_v14, %v2017_v30  ;;  %2426 = vmatmul.msk.f32.gmra.mxu2 %vm91_vm0, %v1040_v28  ;;  %2490 = vmatmul.msk.f32.gmra.mxu3 %vm91_vm0, %v1505_v29  ;;  %v960_v37 = vmax.f32 %v307_v31, %v772_v32  ;;  %v1045_v30 = vld [vmem:[%s3876_s2 + $0xb8] sm:$0xff] }
  0x9a   :  { %v1510_v31 = vld [vmem:[%s3877_s3 + $0xb8] sm:$0xff] }
  0x9b   :  { %v2149_v36 = vmax.f32 %v2085_v35, 0.0  ;;  %2298 = vmatmul.msk.f32.gmra.mxu0 %vm91_vm0, %v45_v33  ;;  %2362 = vmatmul.msk.f32.gmra.mxu1 %vm91_vm0, %v511_v34  ;;  %v50_v35 = vld [vmem:[%s3878_s0 + $0xb8] sm:$0xff] }
  0x9c   :  { %v1301_v38 = vpop.f32.mrf.mxu2  ;;  %v1766_v39 = vpop.f32.mrf.mxu3 }
  0x9d   :  { %2213 = vst [vmem:[%s3881_s6 + $0x8] sm:$0xff] %v2149_v36  ;;  %v1954_v40 = vmax.f32 %v1301_v38, %v1766_v39  ;;  %v516_v36 = vld [vmem:[%s3879_s1 + $0xb8] sm:$0xff] }
  0x9f   :  { %v2018_v43 = vmax.f32 %v960_v37, %v1954_v40 }
  0xa0   :  { %v310_v44 = vpop.f32.mrf.mxu0  ;;  %v775_v45 = vpop.f32.mrf.mxu1 }
  0xa1   :  { %v2086_v48 = vadd.f32 %v2860_v14, %v2018_v43  ;;  %2427 = vmatmul.msk.f32.gmra.mxu2 %vm91_vm0, %v1041_v41  ;;  %2491 = vmatmul.msk.f32.gmra.mxu3 %vm91_vm0, %v1506_v42  ;;  %v961_v50 = vmax.f32 %v310_v44, %v775_v45  ;;  %v1046_v43 = vld [vmem:[%s3876_s2 + $0xc0] sm:$0xff] }
  0xa2   :  { %v1511_v44 = vld [vmem:[%s3877_s3 + $0xc0] sm:$0xff] }
  0xa3   :  { %v2150_v49 = vmax.f32 %v2086_v48, 0.0  ;;  %2299 = vmatmul.msk.f32.gmra.mxu0 %vm91_vm0, %v46_v46  ;;  %2363 = vmatmul.msk.f32.gmra.mxu1 %vm91_vm0, %v512_v47  ;;  %v51_v48 = vld [vmem:[%s3878_s0 + $0xc0] sm:$0xff] }
  0xa4   :  { %v1304_v51 = vpop.f32.mrf.mxu2  ;;  %v1769_v52 = vpop.f32.mrf.mxu3 }
  0xa5   :  { %2214 = vst [vmem:[%s3881_s6 + $0x10] sm:$0xff] %v2150_v49  ;;  %v1955_v53 = vmax.f32 %v1304_v51, %v1769_v52  ;;  %v517_v49 = vld [vmem:[%s3879_s1 + $0xc0] sm:$0xff] }
  0xa7   :  { %v2019_v56 = vmax.f32 %v961_v50, %v1955_v53 }
  0xa8   :  { %v313_v57 = vpop.f32.mrf.mxu0  ;;  %v778_v58 = vpop.f32.mrf.mxu1 }
  0xa9   :  { %v2087_v61 = vadd.f32 %v2860_v14, %v2019_v56  ;;  %2428 = vmatmul.msk.f32.gmra.mxu2 %vm91_vm0, %v1042_v54  ;;  %2492 = vmatmul.msk.f32.gmra.mxu3 %vm91_vm0, %v1507_v55  ;;  %v962_v63 = vmax.f32 %v313_v57, %v778_v58  ;;  %v1047_v56 = vld [vmem:[%s3876_s2 + $0xc8] sm:$0xff] }
  0xaa   :  { %v1512_v57 = vld [vmem:[%s3877_s3 + $0xc8] sm:$0xff] }
  0xab   :  { %v2151_v62 = vmax.f32 %v2087_v61, 0.0  ;;  %2300 = vmatmul.msk.f32.gmra.mxu0 %vm91_vm0, %v47_v59  ;;  %2364 = vmatmul.msk.f32.gmra.mxu1 %vm91_vm0, %v513_v60  ;;  %v52_v61 = vld [vmem:[%s3878_s0 + $0xc8] sm:$0xff] }
  0xac   :  { %v1307_v0 = vpop.f32.mrf.mxu2  ;;  %v1772_v1 = vpop.f32.mrf.mxu3 }
  0xad   :  { %2215 = vst [vmem:[%s3881_s6 + $0x18] sm:$0xff] %v2151_v62  ;;  %v1956_v2 = vmax.f32 %v1307_v0, %v1772_v1  ;;  %v518_v62 = vld [vmem:[%s3879_s1 + $0xc8] sm:$0xff] }
  0xaf   :  { %v2020_v5 = vmax.f32 %v962_v63, %v1956_v2 }
  0xb0   :  { %v316_v6 = vpop.f32.mrf.mxu0  ;;  %v781_v7 = vpop.f32.mrf.mxu1 }
  0xb1   :  { %v2088_v10 = vadd.f32 %v2860_v14, %v2020_v5  ;;  %2429 = vmatmul.msk.f32.gmra.mxu2 %vm91_vm0, %v1043_v3  ;;  %2493 = vmatmul.msk.f32.gmra.mxu3 %vm91_vm0, %v1508_v4  ;;  %v963_v12 = vmax.f32 %v316_v6, %v781_v7  ;;  %v1048_v5 = vld [vmem:[%s3876_s2 + $0xd0] sm:$0xff] }
  0xb2   :  { %v1513_v6 = vld [vmem:[%s3877_s3 + $0xd0] sm:$0xff] }
  0xb3   :  { %v2152_v11 = vmax.f32 %v2088_v10, 0.0  ;;  %2301 = vmatmul.msk.f32.gmra.mxu0 %vm91_vm0, %v48_v8  ;;  %2365 = vmatmul.msk.f32.gmra.mxu1 %vm91_vm0, %v514_v9  ;;  %v53_v10 = vld [vmem:[%s3878_s0 + $0xd0] sm:$0xff] }
  0xb4   :  { %v1310_v13 = vpop.f32.mrf.mxu2  ;;  %v1775_v15 = vpop.f32.mrf.mxu3 }
  0xb5   :  { %2216 = vst [vmem:[%s3881_s6 + $0x20] sm:$0xff] %v2152_v11  ;;  %v1957_v16 = vmax.f32 %v1310_v13, %v1775_v15  ;;  %v519_v11 = vld [vmem:[%s3879_s1 + $0xd0] sm:$0xff] }
  0xb7   :  { %v2021_v19 = vmax.f32 %v963_v12, %v1957_v16 }
  0xb8   :  { %v319_v20 = vpop.f32.mrf.mxu0  ;;  %v784_v21 = vpop.f32.mrf.mxu1 }
  0xb9   :  { %v2089_v24 = vadd.f32 %v2860_v14, %v2021_v19  ;;  %2430 = vmatmul.msk.f32.gmra.mxu2 %vm91_vm0, %v1044_v17  ;;  %2494 = vmatmul.msk.f32.gmra.mxu3 %vm91_vm0, %v1509_v18  ;;  %v964_v26 = vmax.f32 %v319_v20, %v784_v21  ;;  %v1049_v19 = vld [vmem:[%s3876_s2 + $0xd8] sm:$0xff] }
  0xba   :  { %v1514_v20 = vld [vmem:[%s3877_s3 + $0xd8] sm:$0xff] }
  0xbb   :  { %v2153_v25 = vmax.f32 %v2089_v24, 0.0  ;;  %2302 = vmatmul.msk.f32.gmra.mxu0 %vm91_vm0, %v49_v22  ;;  %2366 = vmatmul.msk.f32.gmra.mxu1 %vm91_vm0, %v515_v23  ;;  %v54_v24 = vld [vmem:[%s3878_s0 + $0xd8] sm:$0xff] }
  0xbc   :  { %v1313_v27 = vpop.f32.mrf.mxu2  ;;  %v1778_v28 = vpop.f32.mrf.mxu3 }
  0xbd   :  { %2217 = vst [vmem:[%s3881_s6 + $0x28] sm:$0xff] %v2153_v25  ;;  %v1958_v29 = vmax.f32 %v1313_v27, %v1778_v28  ;;  %v520_v25 = vld [vmem:[%s3879_s1 + $0xd8] sm:$0xff] }
  0xbf   :  { %v2022_v32 = vmax.f32 %v964_v26, %v1958_v29 }
  0xc0   :  { %v322_v33 = vpop.f32.mrf.mxu0  ;;  %v787_v34 = vpop.f32.mrf.mxu1 }
  0xc1   :  { %v2090_v37 = vadd.f32 %v2860_v14, %v2022_v32  ;;  %2431 = vmatmul.msk.f32.gmra.mxu2 %vm91_vm0, %v1045_v30  ;;  %2495 = vmatmul.msk.f32.gmra.mxu3 %vm91_vm0, %v1510_v31  ;;  %v965_v39 = vmax.f32 %v322_v33, %v787_v34  ;;  %v1050_v32 = vld [vmem:[%s3876_s2 + $0xe0] sm:$0xff] }
  0xc2   :  { %v1515_v33 = vld [vmem:[%s3877_s3 + $0xe0] sm:$0xff] }
  0xc3   :  { %v2154_v38 = vmax.f32 %v2090_v37, 0.0  ;;  %2303 = vmatmul.msk.f32.gmra.mxu0 %vm91_vm0, %v50_v35  ;;  %2367 = vmatmul.msk.f32.gmra.mxu1 %vm91_vm0, %v516_v36  ;;  %v55_v37 = vld [vmem:[%s3878_s0 + $0xe0] sm:$0xff] }
  0xc4   :  { %v1316_v40 = vpop.f32.mrf.mxu2  ;;  %v1781_v41 = vpop.f32.mrf.mxu3 }
  0xc5   :  { %2218 = vst [vmem:[%s3881_s6 + $0x30] sm:$0xff] %v2154_v38  ;;  %v1959_v42 = vmax.f32 %v1316_v40, %v1781_v41  ;;  %v521_v38 = vld [vmem:[%s3879_s1 + $0xe0] sm:$0xff] }
  0xc7   :  { %v2023_v45 = vmax.f32 %v965_v39, %v1959_v42 }
  0xc8   :  { %v325_v46 = vpop.f32.mrf.mxu0  ;;  %v790_v47 = vpop.f32.mrf.mxu1 }
  0xc9   :  { %v2091_v50 = vadd.f32 %v2860_v14, %v2023_v45  ;;  %2432 = vmatmul.msk.f32.gmra.mxu2 %vm91_vm0, %v1046_v43  ;;  %2496 = vmatmul.msk.f32.gmra.mxu3 %vm91_vm0, %v1511_v44  ;;  %v966_v52 = vmax.f32 %v325_v46, %v790_v47  ;;  %v1051_v45 = vld [vmem:[%s3876_s2 + $0xe8] sm:$0xff] }
  0xca   :  { %v1516_v46 = vld [vmem:[%s3877_s3 + $0xe8] sm:$0xff] }
  0xcb   :  { %v2155_v51 = vmax.f32 %v2091_v50, 0.0  ;;  %2304 = vmatmul.msk.f32.gmra.mxu0 %vm91_vm0, %v51_v48  ;;  %2368 = vmatmul.msk.f32.gmra.mxu1 %vm91_vm0, %v517_v49  ;;  %v56_v50 = vld [vmem:[%s3878_s0 + $0xe8] sm:$0xff] }
  0xcc   :  { %v1319_v53 = vpop.f32.mrf.mxu2  ;;  %v1784_v54 = vpop.f32.mrf.mxu3 }
  0xcd   :  { %2219 = vst [vmem:[%s3881_s6 + $0x38] sm:$0xff] %v2155_v51  ;;  %v1960_v55 = vmax.f32 %v1319_v53, %v1784_v54  ;;  %v522_v51 = vld [vmem:[%s3879_s1 + $0xe8] sm:$0xff] }
  0xcf   :  { %v2024_v58 = vmax.f32 %v966_v52, %v1960_v55 }
  0xd0   :  { %v328_v59 = vpop.f32.mrf.mxu0  ;;  %v793_v60 = vpop.f32.mrf.mxu1 }
  0xd1   :  { %v2092_v63 = vadd.f32 %v2860_v14, %v2024_v58  ;;  %2433 = vmatmul.msk.f32.gmra.mxu2 %vm91_vm0, %v1047_v56  ;;  %2497 = vmatmul.msk.f32.gmra.mxu3 %vm91_vm0, %v1512_v57  ;;  %v967_v1 = vmax.f32 %v328_v59, %v793_v60  ;;  %v1052_v58 = vld [vmem:[%s3876_s2 + $0xf0] sm:$0xff] }
  0xd2   :  { %v1517_v59 = vld [vmem:[%s3877_s3 + $0xf0] sm:$0xff] }
  0xd3   :  { %v2156_v0 = vmax.f32 %v2092_v63, 0.0  ;;  %2305 = vmatmul.msk.f32.gmra.mxu0 %vm91_vm0, %v52_v61  ;;  %2369 = vmatmul.msk.f32.gmra.mxu1 %vm91_vm0, %v518_v62  ;;  %v57_v63 = vld [vmem:[%s3878_s0 + $0xf0] sm:$0xff] }
  0xd4   :  { %v1322_v2 = vpop.f32.mrf.mxu2  ;;  %v1787_v3 = vpop.f32.mrf.mxu3 }
  0xd5   :  { %2220 = vst [vmem:[%s3881_s6 + $0x40] sm:$0xff] %v2156_v0  ;;  %v1961_v4 = vmax.f32 %v1322_v2, %v1787_v3  ;;  %v523_v0 = vld [vmem:[%s3879_s1 + $0xf0] sm:$0xff] }
  0xd7   :  { %v2025_v7 = vmax.f32 %v967_v1, %v1961_v4 }
  0xd8   :  { %v331_v8 = vpop.f32.mrf.mxu0  ;;  %v796_v9 = vpop.f32.mrf.mxu1 }
  0xd9   :  { %v2093_v12 = vadd.f32 %v2860_v14, %v2025_v7  ;;  %2434 = vmatmul.msk.f32.gmra.mxu2 %vm91_vm0, %v1048_v5  ;;  %2498 = vmatmul.msk.f32.gmra.mxu3 %vm91_vm0, %v1513_v6  ;;  %v968_v15 = vmax.f32 %v331_v8, %v796_v9  ;;  %v1053_v7 = vld [vmem:[%s3876_s2 + $0xf8] sm:$0xff] }
  0xda   :  { %v1518_v8 = vld [vmem:[%s3877_s3 + $0xf8] sm:$0xff] }
  0xdb   :  { %v2157_v13 = vmax.f32 %v2093_v12, 0.0  ;;  %2306 = vmatmul.msk.f32.gmra.mxu0 %vm91_vm0, %v53_v10  ;;  %2370 = vmatmul.msk.f32.gmra.mxu1 %vm91_vm0, %v519_v11  ;;  %v58_v12 = vld [vmem:[%s3878_s0 + $0xf8] sm:$0xff] }
  0xdc   :  { %v1325_v16 = vpop.f32.mrf.mxu2  ;;  %v1790_v17 = vpop.f32.mrf.mxu3 }
  0xdd   :  { %2221 = vst [vmem:[%s3881_s6 + $0x48] sm:$0xff] %v2157_v13  ;;  %v1962_v18 = vmax.f32 %v1325_v16, %v1790_v17  ;;  %v524_v13 = vld [vmem:[%s3879_s1 + $0xf8] sm:$0xff] }
  0xdf   :  { %v2026_v21 = vmax.f32 %v968_v15, %v1962_v18 }
  0xe0   :  { %v334_v22 = vpop.f32.mrf.mxu0  ;;  %v799_v23 = vpop.f32.mrf.mxu1 }
  0xe1   :  { %v2094_v26 = vadd.f32 %v2860_v14, %v2026_v21  ;;  %2435 = vmatmul.msk.f32.gmra.mxu2 %vm91_vm0, %v1049_v19  ;;  %2499 = vmatmul.msk.f32.gmra.mxu3 %vm91_vm0, %v1514_v20  ;;  %v969_v28 = vmax.f32 %v334_v22, %v799_v23  ;;  %v1054_v21 = vld [vmem:[%s3876_s2 + $0x100] sm:$0xff] }
  0xe2   :  { %v1519_v22 = vld [vmem:[%s3877_s3 + $0x100] sm:$0xff] }
  0xe3   :  { %v2158_v27 = vmax.f32 %v2094_v26, 0.0  ;;  %2307 = vmatmul.msk.f32.gmra.mxu0 %vm91_vm0, %v54_v24  ;;  %2371 = vmatmul.msk.f32.gmra.mxu1 %vm91_vm0, %v520_v25  ;;  %v59_v26 = vld [vmem:[%s3878_s0 + $0x100] sm:$0xff] }
  0xe4   :  { %v1328_v29 = vpop.f32.mrf.mxu2  ;;  %v1793_v30 = vpop.f32.mrf.mxu3 }
  0xe5   :  { %2222 = vst [vmem:[%s3881_s6 + $0x50] sm:$0xff] %v2158_v27  ;;  %v1963_v31 = vmax.f32 %v1328_v29, %v1793_v30  ;;  %v525_v27 = vld [vmem:[%s3879_s1 + $0x100] sm:$0xff] }
  0xe7   :  { %v2027_v34 = vmax.f32 %v969_v28, %v1963_v31 }
  0xe8   :  { %v337_v35 = vpop.f32.mrf.mxu0  ;;  %v802_v36 = vpop.f32.mrf.mxu1 }
  0xe9   :  { %v2095_v39 = vadd.f32 %v2860_v14, %v2027_v34  ;;  %2436 = vmatmul.msk.f32.gmra.mxu2 %vm91_vm0, %v1050_v32  ;;  %2500 = vmatmul.msk.f32.gmra.mxu3 %vm91_vm0, %v1515_v33  ;;  %v970_v41 = vmax.f32 %v337_v35, %v802_v36  ;;  %v1055_v34 = vld [vmem:[%s3876_s2 + $0x108] sm:$0xff] }
  0xea   :  { %v1520_v35 = vld [vmem:[%s3877_s3 + $0x108] sm:$0xff] }
  0xeb   :  { %v2159_v40 = vmax.f32 %v2095_v39, 0.0  ;;  %2308 = vmatmul.msk.f32.gmra.mxu0 %vm91_vm0, %v55_v37  ;;  %2372 = vmatmul.msk.f32.gmra.mxu1 %vm91_vm0, %v521_v38  ;;  %v60_v39 = vld [vmem:[%s3878_s0 + $0x108] sm:$0xff] }
  0xec   :  { %v1331_v42 = vpop.f32.mrf.mxu2  ;;  %v1796_v43 = vpop.f32.mrf.mxu3 }
  0xed   :  { %2223 = vst [vmem:[%s3881_s6 + $0x58] sm:$0xff] %v2159_v40  ;;  %v1964_v44 = vmax.f32 %v1331_v42, %v1796_v43  ;;  %v526_v40 = vld [vmem:[%s3879_s1 + $0x108] sm:$0xff] }
  0xef   :  { %v2028_v47 = vmax.f32 %v970_v41, %v1964_v44 }
  0xf0   :  { %v340_v48 = vpop.f32.mrf.mxu0  ;;  %v805_v49 = vpop.f32.mrf.mxu1 }
  0xf1   :  { %v2096_v52 = vadd.f32 %v2860_v14, %v2028_v47  ;;  %2437 = vmatmul.msk.f32.gmra.mxu2 %vm91_vm0, %v1051_v45  ;;  %2501 = vmatmul.msk.f32.gmra.mxu3 %vm91_vm0, %v1516_v46  ;;  %v971_v54 = vmax.f32 %v340_v48, %v805_v49  ;;  %v1056_v47 = vld [vmem:[%s3876_s2 + $0x110] sm:$0xff] }
  0xf2   :  { %v1521_v48 = vld [vmem:[%s3877_s3 + $0x110] sm:$0xff] }
  0xf3   :  { %v2160_v53 = vmax.f32 %v2096_v52, 0.0  ;;  %2309 = vmatmul.msk.f32.gmra.mxu0 %vm91_vm0, %v56_v50  ;;  %2373 = vmatmul.msk.f32.gmra.mxu1 %vm91_vm0, %v522_v51  ;;  %v61_v52 = vld [vmem:[%s3878_s0 + $0x110] sm:$0xff] }
  0xf4   :  { %v1334_v55 = vpop.f32.mrf.mxu2  ;;  %v1799_v56 = vpop.f32.mrf.mxu3 }
  0xf5   :  { %2224 = vst [vmem:[%s3881_s6 + $0x60] sm:$0xff] %v2160_v53  ;;  %v1965_v57 = vmax.f32 %v1334_v55, %v1799_v56  ;;  %v527_v53 = vld [vmem:[%s3879_s1 + $0x110] sm:$0xff] }
  0xf7   :  { %v2029_v60 = vmax.f32 %v971_v54, %v1965_v57 }
  0xf8   :  { %v343_v61 = vpop.f32.mrf.mxu0  ;;  %v808_v62 = vpop.f32.mrf.mxu1 }
  0xf9   :  { %v2097_v1 = vadd.f32 %v2860_v14, %v2029_v60  ;;  %2438 = vmatmul.msk.f32.gmra.mxu2 %vm91_vm0, %v1052_v58  ;;  %2502 = vmatmul.msk.f32.gmra.mxu3 %vm91_vm0, %v1517_v59  ;;  %v972_v3 = vmax.f32 %v343_v61, %v808_v62  ;;  %v1057_v60 = vld [vmem:[%s3876_s2 + $0x118] sm:$0xff] }
  0xfa   :  { %v1522_v61 = vld [vmem:[%s3877_s3 + $0x118] sm:$0xff] }
  0xfb   :  { %v2161_v2 = vmax.f32 %v2097_v1, 0.0  ;;  %2310 = vmatmul.msk.f32.gmra.mxu0 %vm91_vm0, %v57_v63  ;;  %2374 = vmatmul.msk.f32.gmra.mxu1 %vm91_vm0, %v523_v0  ;;  %v62_v1 = vld [vmem:[%s3878_s0 + $0x118] sm:$0xff] }
  0xfc   :  { %v1337_v4 = vpop.f32.mrf.mxu2  ;;  %v1802_v5 = vpop.f32.mrf.mxu3 }
  0xfd   :  { %2225 = vst [vmem:[%s3881_s6 + $0x68] sm:$0xff] %v2161_v2  ;;  %v1966_v6 = vmax.f32 %v1337_v4, %v1802_v5  ;;  %v528_v2 = vld [vmem:[%s3879_s1 + $0x118] sm:$0xff] }
  0xff   :  { %v2030_v9 = vmax.f32 %v972_v3, %v1966_v6 }
 0x100   :  { %v346_v10 = vpop.f32.mrf.mxu0  ;;  %v811_v11 = vpop.f32.mrf.mxu1 }
 0x101   :  { %v2098_v15 = vadd.f32 %v2860_v14, %v2030_v9  ;;  %2439 = vmatmul.msk.f32.gmra.mxu2 %vm91_vm0, %v1053_v7  ;;  %2503 = vmatmul.msk.f32.gmra.mxu3 %vm91_vm0, %v1518_v8  ;;  %v973_v17 = vmax.f32 %v346_v10, %v811_v11  ;;  %v1058_v9 = vld [vmem:[%s3876_s2 + $0x120] sm:$0xff] }
 0x102   :  { %v1523_v10 = vld [vmem:[%s3877_s3 + $0x120] sm:$0xff] }
 0x103   :  { %v2162_v16 = vmax.f32 %v2098_v15, 0.0  ;;  %2311 = vmatmul.msk.f32.gmra.mxu0 %vm91_vm0, %v58_v12  ;;  %2375 = vmatmul.msk.f32.gmra.mxu1 %vm91_vm0, %v524_v13  ;;  %v63_v15 = vld [vmem:[%s3878_s0 + $0x120] sm:$0xff] }
 0x104   :  { %v1340_v18 = vpop.f32.mrf.mxu2  ;;  %v1805_v19 = vpop.f32.mrf.mxu3 }
 0x105   :  { %2226 = vst [vmem:[%s3881_s6 + $0x70] sm:$0xff] %v2162_v16  ;;  %v1967_v20 = vmax.f32 %v1340_v18, %v1805_v19  ;;  %v529_v16 = vld [vmem:[%s3879_s1 + $0x120] sm:$0xff] }
 0x107   :  { %v2031_v23 = vmax.f32 %v973_v17, %v1967_v20 }
 0x108   :  { %v349_v24 = vpop.f32.mrf.mxu0  ;;  %v814_v25 = vpop.f32.mrf.mxu1 }
 0x109   :  { %v2099_v28 = vadd.f32 %v2860_v14, %v2031_v23  ;;  %2440 = vmatmul.msk.f32.gmra.mxu2 %vm91_vm0, %v1054_v21  ;;  %2504 = vmatmul.msk.f32.gmra.mxu3 %vm91_vm0, %v1519_v22  ;;  %v974_v30 = vmax.f32 %v349_v24, %v814_v25  ;;  %v1059_v23 = vld [vmem:[%s3876_s2 + $0x128] sm:$0xff] }
 0x10a   :  { %v1524_v24 = vld [vmem:[%s3877_s3 + $0x128] sm:$0xff] }
 0x10b   :  { %v2163_v29 = vmax.f32 %v2099_v28, 0.0  ;;  %2312 = vmatmul.msk.f32.gmra.mxu0 %vm91_vm0, %v59_v26  ;;  %2376 = vmatmul.msk.f32.gmra.mxu1 %vm91_vm0, %v525_v27  ;;  %v64_v28 = vld [vmem:[%s3878_s0 + $0x128] sm:$0xff] }
 0x10c   :  { %v1343_v31 = vpop.f32.mrf.mxu2  ;;  %v1808_v32 = vpop.f32.mrf.mxu3 }
 0x10d   :  { %2227 = vst [vmem:[%s3881_s6 + $0x78] sm:$0xff] %v2163_v29  ;;  %v1968_v33 = vmax.f32 %v1343_v31, %v1808_v32  ;;  %v530_v29 = vld [vmem:[%s3879_s1 + $0x128] sm:$0xff] }
 0x10f   :  { %v2032_v36 = vmax.f32 %v974_v30, %v1968_v33 }
 0x110   :  { %v352_v37 = vpop.f32.mrf.mxu0  ;;  %v817_v38 = vpop.f32.mrf.mxu1 }
 0x111   :  { %v2100_v41 = vadd.f32 %v2860_v14, %v2032_v36  ;;  %2441 = vmatmul.msk.f32.gmra.mxu2 %vm91_vm0, %v1055_v34  ;;  %2505 = vmatmul.msk.f32.gmra.mxu3 %vm91_vm0, %v1520_v35  ;;  %v975_v43 = vmax.f32 %v352_v37, %v817_v38  ;;  %v1060_v36 = vld [vmem:[%s3876_s2 + $0x130] sm:$0xff] }
 0x112   :  { %v1525_v37 = vld [vmem:[%s3877_s3 + $0x130] sm:$0xff] }
 0x113   :  { %v2164_v42 = vmax.f32 %v2100_v41, 0.0  ;;  %2313 = vmatmul.msk.f32.gmra.mxu0 %vm91_vm0, %v60_v39  ;;  %2377 = vmatmul.msk.f32.gmra.mxu1 %vm91_vm0, %v526_v40  ;;  %v65_v41 = vld [vmem:[%s3878_s0 + $0x130] sm:$0xff] }
 0x114   :  { %v1346_v44 = vpop.f32.mrf.mxu2  ;;  %v1811_v45 = vpop.f32.mrf.mxu3 }
 0x115   :  { %2228 = vst [vmem:[%s3881_s6 + $0x80] sm:$0xff] %v2164_v42  ;;  %v1969_v46 = vmax.f32 %v1346_v44, %v1811_v45  ;;  %v531_v42 = vld [vmem:[%s3879_s1 + $0x130] sm:$0xff] }
 0x117   :  { %v2033_v49 = vmax.f32 %v975_v43, %v1969_v46 }
 0x118   :  { %v355_v50 = vpop.f32.mrf.mxu0  ;;  %v820_v51 = vpop.f32.mrf.mxu1 }
 0x119   :  { %v2101_v54 = vadd.f32 %v2860_v14, %v2033_v49  ;;  %2442 = vmatmul.msk.f32.gmra.mxu2 %vm91_vm0, %v1056_v47  ;;  %2506 = vmatmul.msk.f32.gmra.mxu3 %vm91_vm0, %v1521_v48  ;;  %v976_v56 = vmax.f32 %v355_v50, %v820_v51  ;;  %v1061_v49 = vld [vmem:[%s3876_s2 + $0x138] sm:$0xff] }
 0x11a   :  { %v1526_v50 = vld [vmem:[%s3877_s3 + $0x138] sm:$0xff] }
 0x11b   :  { %v2165_v55 = vmax.f32 %v2101_v54, 0.0  ;;  %2314 = vmatmul.msk.f32.gmra.mxu0 %vm91_vm0, %v61_v52  ;;  %2378 = vmatmul.msk.f32.gmra.mxu1 %vm91_vm0, %v527_v53  ;;  %v66_v54 = vld [vmem:[%s3878_s0 + $0x138] sm:$0xff] }
 0x11c   :  { %v1349_v57 = vpop.f32.mrf.mxu2  ;;  %v1814_v58 = vpop.f32.mrf.mxu3 }
 0x11d   :  { %2229 = vst [vmem:[%s3881_s6 + $0x88] sm:$0xff] %v2165_v55  ;;  %v1970_v59 = vmax.f32 %v1349_v57, %v1814_v58  ;;  %v532_v55 = vld [vmem:[%s3879_s1 + $0x138] sm:$0xff] }
 0x11f   :  { %v2034_v62 = vmax.f32 %v976_v56, %v1970_v59 }
 0x120   :  { %v358_v63 = vpop.f32.mrf.mxu0  ;;  %v823_v0 = vpop.f32.mrf.mxu1 }
 0x121   :  { %v2102_v3 = vadd.f32 %v2860_v14, %v2034_v62  ;;  %2443 = vmatmul.msk.f32.gmra.mxu2 %vm91_vm0, %v1057_v60  ;;  %2507 = vmatmul.msk.f32.gmra.mxu3 %vm91_vm0, %v1522_v61  ;;  %v977_v5 = vmax.f32 %v358_v63, %v823_v0  ;;  %v1062_v62 = vld [vmem:[%s3876_s2 + $0x140] sm:$0xff] }
 0x122   :  { %v1527_v63 = vld [vmem:[%s3877_s3 + $0x140] sm:$0xff] }
 0x123   :  { %v2166_v4 = vmax.f32 %v2102_v3, 0.0  ;;  %2315 = vmatmul.msk.f32.gmra.mxu0 %vm91_vm0, %v62_v1  ;;  %2379 = vmatmul.msk.f32.gmra.mxu1 %vm91_vm0, %v528_v2  ;;  %v67_v3 = vld [vmem:[%s3878_s0 + $0x140] sm:$0xff] }
 0x124   :  { %v1352_v6 = vpop.f32.mrf.mxu2  ;;  %v1817_v7 = vpop.f32.mrf.mxu3 }
 0x125   :  { %2230 = vst [vmem:[%s3881_s6 + $0x90] sm:$0xff] %v2166_v4  ;;  %v1971_v8 = vmax.f32 %v1352_v6, %v1817_v7  ;;  %v533_v4 = vld [vmem:[%s3879_s1 + $0x140] sm:$0xff] }
 0x127   :  { %v2035_v11 = vmax.f32 %v977_v5, %v1971_v8 }
 0x128   :  { %v361_v12 = vpop.f32.mrf.mxu0  ;;  %v826_v13 = vpop.f32.mrf.mxu1 }
 0x129   :  { %v2103_v17 = vadd.f32 %v2860_v14, %v2035_v11  ;;  %2444 = vmatmul.msk.f32.gmra.mxu2 %vm91_vm0, %v1058_v9  ;;  %2508 = vmatmul.msk.f32.gmra.mxu3 %vm91_vm0, %v1523_v10  ;;  %v978_v19 = vmax.f32 %v361_v12, %v826_v13  ;;  %v1063_v11 = vld [vmem:[%s3876_s2 + $0x148] sm:$0xff] }
 0x12a   :  { %v1528_v12 = vld [vmem:[%s3877_s3 + $0x148] sm:$0xff] }
 0x12b   :  { %v2167_v18 = vmax.f32 %v2103_v17, 0.0  ;;  %2316 = vmatmul.msk.f32.gmra.mxu0 %vm91_vm0, %v63_v15  ;;  %2380 = vmatmul.msk.f32.gmra.mxu1 %vm91_vm0, %v529_v16  ;;  %v68_v17 = vld [vmem:[%s3878_s0 + $0x148] sm:$0xff] }
 0x12c   :  { %v1355_v20 = vpop.f32.mrf.mxu2  ;;  %v1820_v21 = vpop.f32.mrf.mxu3 }
 0x12d   :  { %2231 = vst [vmem:[%s3881_s6 + $0x98] sm:$0xff] %v2167_v18  ;;  %v1972_v22 = vmax.f32 %v1355_v20, %v1820_v21  ;;  %v534_v18 = vld [vmem:[%s3879_s1 + $0x148] sm:$0xff] }
 0x12f   :  { %v2036_v25 = vmax.f32 %v978_v19, %v1972_v22 }
 0x130   :  { %v364_v26 = vpop.f32.mrf.mxu0  ;;  %v829_v27 = vpop.f32.mrf.mxu1 }
 0x131   :  { %v2104_v30 = vadd.f32 %v2860_v14, %v2036_v25  ;;  %2445 = vmatmul.msk.f32.gmra.mxu2 %vm91_vm0, %v1059_v23  ;;  %2509 = vmatmul.msk.f32.gmra.mxu3 %vm91_vm0, %v1524_v24  ;;  %v979_v32 = vmax.f32 %v364_v26, %v829_v27  ;;  %v1064_v25 = vld [vmem:[%s3876_s2 + $0x150] sm:$0xff] }
 0x132   :  { %v1529_v26 = vld [vmem:[%s3877_s3 + $0x150] sm:$0xff] }
 0x133   :  { %v2168_v31 = vmax.f32 %v2104_v30, 0.0  ;;  %2317 = vmatmul.msk.f32.gmra.mxu0 %vm91_vm0, %v64_v28  ;;  %2381 = vmatmul.msk.f32.gmra.mxu1 %vm91_vm0, %v530_v29  ;;  %v69_v30 = vld [vmem:[%s3878_s0 + $0x150] sm:$0xff] }
 0x134   :  { %v1358_v33 = vpop.f32.mrf.mxu2  ;;  %v1823_v34 = vpop.f32.mrf.mxu3 }
 0x135   :  { %2232 = vst [vmem:[%s3881_s6 + $0xa0] sm:$0xff] %v2168_v31  ;;  %v1973_v35 = vmax.f32 %v1358_v33, %v1823_v34  ;;  %v535_v31 = vld [vmem:[%s3879_s1 + $0x150] sm:$0xff] }
 0x137   :  { %v2037_v38 = vmax.f32 %v979_v32, %v1973_v35 }
 0x138   :  { %v367_v39 = vpop.f32.mrf.mxu0  ;;  %v832_v40 = vpop.f32.mrf.mxu1 }
 0x139   :  { %v2105_v43 = vadd.f32 %v2860_v14, %v2037_v38  ;;  %2446 = vmatmul.msk.f32.gmra.mxu2 %vm91_vm0, %v1060_v36  ;;  %2510 = vmatmul.msk.f32.gmra.mxu3 %vm91_vm0, %v1525_v37  ;;  %v980_v45 = vmax.f32 %v367_v39, %v832_v40  ;;  %v1065_v38 = vld [vmem:[%s3876_s2 + $0x158] sm:$0xff] }
 0x13a   :  { %v1530_v39 = vld [vmem:[%s3877_s3 + $0x158] sm:$0xff] }
 0x13b   :  { %v2169_v44 = vmax.f32 %v2105_v43, 0.0  ;;  %2318 = vmatmul.msk.f32.gmra.mxu0 %vm91_vm0, %v65_v41  ;;  %2382 = vmatmul.msk.f32.gmra.mxu1 %vm91_vm0, %v531_v42  ;;  %v70_v43 = vld [vmem:[%s3878_s0 + $0x158] sm:$0xff] }
 0x13c   :  { %v1361_v46 = vpop.f32.mrf.mxu2  ;;  %v1826_v47 = vpop.f32.mrf.mxu3 }
 0x13d   :  { %2233 = vst [vmem:[%s3881_s6 + $0xa8] sm:$0xff] %v2169_v44  ;;  %v1974_v48 = vmax.f32 %v1361_v46, %v1826_v47  ;;  %v536_v44 = vld [vmem:[%s3879_s1 + $0x158] sm:$0xff] }
 0x13f   :  { %v2038_v51 = vmax.f32 %v980_v45, %v1974_v48 }
 0x140   :  { %v370_v52 = vpop.f32.mrf.mxu0  ;;  %v835_v53 = vpop.f32.mrf.mxu1 }
 0x141   :  { %v2106_v56 = vadd.f32 %v2860_v14, %v2038_v51  ;;  %2447 = vmatmul.msk.f32.gmra.mxu2 %vm91_vm0, %v1061_v49  ;;  %2511 = vmatmul.msk.f32.gmra.mxu3 %vm91_vm0, %v1526_v50  ;;  %v981_v58 = vmax.f32 %v370_v52, %v835_v53  ;;  %v1066_v51 = vld [vmem:[%s3876_s2 + $0x160] sm:$0xff] }
 0x142   :  { %v1531_v52 = vld [vmem:[%s3877_s3 + $0x160] sm:$0xff] }
 0x143   :  { %v2170_v57 = vmax.f32 %v2106_v56, 0.0  ;;  %2319 = vmatmul.msk.f32.gmra.mxu0 %vm91_vm0, %v66_v54  ;;  %2383 = vmatmul.msk.f32.gmra.mxu1 %vm91_vm0, %v532_v55  ;;  %v71_v56 = vld [vmem:[%s3878_s0 + $0x160] sm:$0xff] }
 0x144   :  { %v1364_v59 = vpop.f32.mrf.mxu2  ;;  %v1829_v60 = vpop.f32.mrf.mxu3 }
 0x145   :  { %2234 = vst [vmem:[%s3881_s6 + $0xb0] sm:$0xff] %v2170_v57  ;;  %v1975_v61 = vmax.f32 %v1364_v59, %v1829_v60  ;;  %v537_v57 = vld [vmem:[%s3879_s1 + $0x160] sm:$0xff] }
 0x147   :  { %v2039_v0 = vmax.f32 %v981_v58, %v1975_v61 }
 0x148   :  { %v373_v1 = vpop.f32.mrf.mxu0  ;;  %v838_v2 = vpop.f32.mrf.mxu1 }
 0x149   :  { %v2107_v5 = vadd.f32 %v2860_v14, %v2039_v0  ;;  %2448 = vmatmul.msk.f32.gmra.mxu2 %vm91_vm0, %v1062_v62  ;;  %2512 = vmatmul.msk.f32.gmra.mxu3 %vm91_vm0, %v1527_v63  ;;  %v982_v7 = vmax.f32 %v373_v1, %v838_v2  ;;  %v1532_v0 = vld [vmem:[%s3877_s3 + $0x168] sm:$0xff] }
 0x14b   :  { %v2171_v6 = vmax.f32 %v2107_v5, 0.0  ;;  %2320 = vmatmul.msk.f32.gmra.mxu0 %vm91_vm0, %v67_v3  ;;  %2384 = vmatmul.msk.f32.gmra.mxu1 %vm91_vm0, %v533_v4  ;;  %v72_v4 = vld [vmem:[%s3878_s0 + $0x168] sm:$0xff] }
 0x14c   :  { %v1367_v8 = vpop.f32.mrf.mxu2  ;;  %v1832_v9 = vpop.f32.mrf.mxu3  ;;  %v538_v5 = vld [vmem:[%s3879_s1 + $0x168] sm:$0xff] }
 0x14d   :  { %2235 = vst [vmem:[%s3881_s6 + $0xb8] sm:$0xff] %v2171_v6  ;;  %v1976_v10 = vmax.f32 %v1367_v8, %v1832_v9  ;;  %v3437_v6 = vld [vmem:[%s3880_s5] ss:$0 sm:$0xff] }
 0x14f   :  { %v2040_v13 = vmax.f32 %v982_v7, %v1976_v10 }
 0x150   :  { %v376_v15 = vpop.f32.mrf.mxu0  ;;  %v841_v16 = vpop.f32.mrf.mxu1 }
 0x151   :  { %v2108_v19 = vadd.f32 %v2860_v14, %v2040_v13  ;;  %2449 = vmatmul.msk.f32.gmra.mxu2 %vm91_vm0, %v1063_v11  ;;  %2513 = vmatmul.msk.f32.gmra.mxu3 %vm91_vm0, %v1528_v12  ;;  %v983_v21 = vmax.f32 %v376_v15, %v841_v16  ;;  %v1068_v13 = vld [vmem:[%s3876_s2 + $0x170] sm:$0xff] }
 0x152   :  { %v1533_v15 = vld [vmem:[%s3877_s3 + $0x170] sm:$0xff] }
 0x153   :  { %v2172_v20 = vmax.f32 %v2108_v19, 0.0  ;;  %2321 = vmatmul.msk.f32.gmra.mxu0 %vm91_vm0, %v68_v17  ;;  %2385 = vmatmul.msk.f32.gmra.mxu1 %vm91_vm0, %v534_v18  ;;  %v73_v19 = vld [vmem:[%s3878_s0 + $0x170] sm:$0xff] }
 0x154   :  { %v1370_v22 = vpop.f32.mrf.mxu2  ;;  %v1835_v23 = vpop.f32.mrf.mxu3 }
 0x155   :  { %2236 = vst [vmem:[%s3881_s6 + $0xc0] sm:$0xff] %v2172_v20  ;;  %v1977_v24 = vmax.f32 %v1370_v22, %v1835_v23  ;;  %v539_v20 = vld [vmem:[%s3879_s1 + $0x170] sm:$0xff] }
 0x157   :  { %v2041_v27 = vmax.f32 %v983_v21, %v1977_v24 }
 0x158   :  { %v379_v28 = vpop.f32.mrf.mxu0  ;;  %v844_v29 = vpop.f32.mrf.mxu1 }
 0x159   :  { %v2109_v32 = vadd.f32 %v2860_v14, %v2041_v27  ;;  %2450 = vmatmul.msk.f32.gmra.mxu2 %vm91_vm0, %v1064_v25  ;;  %2514 = vmatmul.msk.f32.gmra.mxu3 %vm91_vm0, %v1529_v26  ;;  %v984_v34 = vmax.f32 %v379_v28, %v844_v29  ;;  %v1069_v27 = vld [vmem:[%s3876_s2 + $0x178] sm:$0xff] }
 0x15a   :  { %v1534_v28 = vld [vmem:[%s3877_s3 + $0x178] sm:$0xff] }
 0x15b   :  { %v2173_v33 = vmax.f32 %v2109_v32, 0.0  ;;  %2322 = vmatmul.msk.f32.gmra.mxu0 %vm91_vm0, %v69_v30  ;;  %2386 = vmatmul.msk.f32.gmra.mxu1 %vm91_vm0, %v535_v31  ;;  %v74_v32 = vld [vmem:[%s3878_s0 + $0x178] sm:$0xff] }
 0x15c   :  { %v1373_v35 = vpop.f32.mrf.mxu2  ;;  %v1838_v36 = vpop.f32.mrf.mxu3 }
 0x15d   :  { %2237 = vst [vmem:[%s3881_s6 + $0xc8] sm:$0xff] %v2173_v33  ;;  %v1978_v37 = vmax.f32 %v1373_v35, %v1838_v36  ;;  %v540_v33 = vld [vmem:[%s3879_s1 + $0x178] sm:$0xff] }
 0x15f   :  { %v2042_v40 = vmax.f32 %v984_v34, %v1978_v37 }
 0x160   :  { %v382_v41 = vpop.f32.mrf.mxu0  ;;  %v847_v42 = vpop.f32.mrf.mxu1 }
 0x161   :  { %v2110_v45 = vadd.f32 %v2860_v14, %v2042_v40  ;;  %2451 = vmatmul.msk.f32.gmra.mxu2 %vm91_vm0, %v1065_v38  ;;  %2515 = vmatmul.msk.f32.gmra.mxu3 %vm91_vm0, %v1530_v39  ;;  %v985_v47 = vmax.f32 %v382_v41, %v847_v42  ;;  %v1070_v40 = vld [vmem:[%s3876_s2 + $0x180] sm:$0xff] }
 0x162   :  { %v1535_v41 = vld [vmem:[%s3877_s3 + $0x180] sm:$0xff] }
 0x163   :  { %v2174_v46 = vmax.f32 %v2110_v45, 0.0  ;;  %2323 = vmatmul.msk.f32.gmra.mxu0 %vm91_vm0, %v70_v43  ;;  %2387 = vmatmul.msk.f32.gmra.mxu1 %vm91_vm0, %v536_v44  ;;  %v75_v45 = vld [vmem:[%s3878_s0 + $0x180] sm:$0xff] }
 0x164   :  { %v1376_v48 = vpop.f32.mrf.mxu2  ;;  %v1841_v49 = vpop.f32.mrf.mxu3 }
 0x165   :  { %2238 = vst [vmem:[%s3881_s6 + $0xd0] sm:$0xff] %v2174_v46  ;;  %v1979_v50 = vmax.f32 %v1376_v48, %v1841_v49  ;;  %v541_v46 = vld [vmem:[%s3879_s1 + $0x180] sm:$0xff] }
 0x167   :  { %v2043_v53 = vmax.f32 %v985_v47, %v1979_v50 }
 0x168   :  { %v385_v54 = vpop.f32.mrf.mxu0  ;;  %v850_v55 = vpop.f32.mrf.mxu1 }
 0x169   :  { %v2111_v58 = vadd.f32 %v2860_v14, %v2043_v53  ;;  %2452 = vmatmul.msk.f32.gmra.mxu2 %vm91_vm0, %v1066_v51  ;;  %2516 = vmatmul.msk.f32.gmra.mxu3 %vm91_vm0, %v1531_v52  ;;  %v986_v60 = vmax.f32 %v385_v54, %v850_v55  ;;  %v1067_v14 = vld [vmem:[%s3876_s2 + $0x168] sm:$0xff] }
 0x16a   :  { %v1071_v53 = vld [vmem:[%s3876_s2 + $0x188] sm:$0xff] }
 0x16b   :  { %v2175_v59 = vmax.f32 %v2111_v58, 0.0  ;;  %2324 = vmatmul.msk.f32.gmra.mxu0 %vm91_vm0, %v71_v56  ;;  %2388 = vmatmul.msk.f32.gmra.mxu1 %vm91_vm0, %v537_v57  ;;  %v1536_v54 = vld [vmem:[%s3877_s3 + $0x188] sm:$0xff] }
 0x16c   :  { %v1379_v61 = vpop.f32.mrf.mxu2  ;;  %v1844_v62 = vpop.f32.mrf.mxu3  ;;  %v76_v58 = vld [vmem:[%s3878_s0 + $0x188] sm:$0xff] }
 0x16d   :  { %2239 = vst [vmem:[%s3881_s6 + $0xd8] sm:$0xff] %v2175_v59  ;;  %v1980_v63 = vmax.f32 %v1379_v61, %v1844_v62  ;;  %v542_v59 = vld [vmem:[%s3879_s1 + $0x188] sm:$0xff] }
 0x16f   :  { %v2044_v1 = vmax.f32 %v986_v60, %v1980_v63 }
 0x170   :  { %v388_v2 = vpop.f32.mrf.mxu0  ;;  %v853_v3 = vpop.f32.mrf.mxu1 }
 0x171   :  { %v2112_v7 = vadd.f32 %v3437_v6, %v2044_v1  ;;  %2453 = vmatmul.msk.f32.gmra.mxu2 %vm91_vm0, %v1067_v14  ;;  %2517 = vmatmul.msk.f32.gmra.mxu3 %vm91_vm0, %v1532_v0  ;;  %v987_v9 = vmax.f32 %v388_v2, %v853_v3  ;;  %v1072_v1 = vld [vmem:[%s3876_s2 + $0x190] sm:$0xff] }
 0x172   :  { %v1537_v2 = vld [vmem:[%s3877_s3 + $0x190] sm:$0xff] }
 0x173   :  { %v2176_v8 = vmax.f32 %v2112_v7, 0.0  ;;  %2325 = vmatmul.msk.f32.gmra.mxu0 %vm91_vm0, %v72_v4  ;;  %2389 = vmatmul.msk.f32.gmra.mxu1 %vm91_vm0, %v538_v5  ;;  %v77_v7 = vld [vmem:[%s3878_s0 + $0x190] sm:$0xff] }
 0x174   :  { %v1382_v10 = vpop.f32.mrf.mxu2  ;;  %v1847_v11 = vpop.f32.mrf.mxu3 }
 0x175   :  { %2240 = vst [vmem:[%s3881_s6 + $0xe0] sm:$0xff] %v2176_v8  ;;  %v1981_v12 = vmax.f32 %v1382_v10, %v1847_v11  ;;  %v543_v8 = vld [vmem:[%s3879_s1 + $0x190] sm:$0xff] }
 0x177   :  { %v2045_v16 = vmax.f32 %v987_v9, %v1981_v12 }
 0x178   :  { %v391_v17 = vpop.f32.mrf.mxu0  ;;  %v856_v18 = vpop.f32.mrf.mxu1 }
 0x179   :  { %v2113_v21 = vadd.f32 %v3437_v6, %v2045_v16  ;;  %2454 = vmatmul.msk.f32.gmra.mxu2 %vm91_vm0, %v1068_v13  ;;  %2518 = vmatmul.msk.f32.gmra.mxu3 %vm91_vm0, %v1533_v15  ;;  %v988_v23 = vmax.f32 %v391_v17, %v856_v18  ;;  %v1073_v16 = vld [vmem:[%s3876_s2 + $0x198] sm:$0xff] }
 0x17a   :  { %v1538_v17 = vld [vmem:[%s3877_s3 + $0x198] sm:$0xff] }
 0x17b   :  { %v2177_v22 = vmax.f32 %v2113_v21, 0.0  ;;  %2326 = vmatmul.msk.f32.gmra.mxu0 %vm91_vm0, %v73_v19  ;;  %2390 = vmatmul.msk.f32.gmra.mxu1 %vm91_vm0, %v539_v20  ;;  %v78_v21 = vld [vmem:[%s3878_s0 + $0x198] sm:$0xff] }
 0x17c   :  { %v1385_v24 = vpop.f32.mrf.mxu2  ;;  %v1850_v25 = vpop.f32.mrf.mxu3 }
 0x17d   :  { %2241 = vst [vmem:[%s3881_s6 + $0xe8] sm:$0xff] %v2177_v22  ;;  %v1982_v26 = vmax.f32 %v1385_v24, %v1850_v25  ;;  %v544_v22 = vld [vmem:[%s3879_s1 + $0x198] sm:$0xff] }
 0x17f   :  { %v2046_v29 = vmax.f32 %v988_v23, %v1982_v26 }
 0x180   :  { %v394_v30 = vpop.f32.mrf.mxu0  ;;  %v859_v31 = vpop.f32.mrf.mxu1 }
 0x181   :  { %v2114_v34 = vadd.f32 %v3437_v6, %v2046_v29  ;;  %2455 = vmatmul.msk.f32.gmra.mxu2 %vm91_vm0, %v1069_v27  ;;  %2519 = vmatmul.msk.f32.gmra.mxu3 %vm91_vm0, %v1534_v28  ;;  %v989_v36 = vmax.f32 %v394_v30, %v859_v31  ;;  %v1074_v29 = vld [vmem:[%s3876_s2 + $0x1a0] sm:$0xff] }
 0x182   :  { %v1539_v30 = vld [vmem:[%s3877_s3 + $0x1a0] sm:$0xff] }
 0x183   :  { %v2178_v35 = vmax.f32 %v2114_v34, 0.0  ;;  %2327 = vmatmul.msk.f32.gmra.mxu0 %vm91_vm0, %v74_v32  ;;  %2391 = vmatmul.msk.f32.gmra.mxu1 %vm91_vm0, %v540_v33  ;;  %v79_v34 = vld [vmem:[%s3878_s0 + $0x1a0] sm:$0xff] }
 0x184   :  { %v1388_v37 = vpop.f32.mrf.mxu2  ;;  %v1853_v38 = vpop.f32.mrf.mxu3 }
 0x185   :  { %2242 = vst [vmem:[%s3881_s6 + $0xf0] sm:$0xff] %v2178_v35  ;;  %v1983_v39 = vmax.f32 %v1388_v37, %v1853_v38  ;;  %v545_v35 = vld [vmem:[%s3879_s1 + $0x1a0] sm:$0xff] }
 0x187   :  { %v2047_v42 = vmax.f32 %v989_v36, %v1983_v39 }
 0x188   :  { %v397_v43 = vpop.f32.mrf.mxu0  ;;  %v862_v44 = vpop.f32.mrf.mxu1 }
 0x189   :  { %v2115_v47 = vadd.f32 %v3437_v6, %v2047_v42  ;;  %2456 = vmatmul.msk.f32.gmra.mxu2 %vm91_vm0, %v1070_v40  ;;  %2520 = vmatmul.msk.f32.gmra.mxu3 %vm91_vm0, %v1535_v41  ;;  %v990_v49 = vmax.f32 %v397_v43, %v862_v44  ;;  %v1075_v42 = vld [vmem:[%s3876_s2 + $0x1a8] sm:$0xff] }
 0x18a   :  { %v1540_v43 = vld [vmem:[%s3877_s3 + $0x1a8] sm:$0xff] }
 0x18b   :  { %v2179_v48 = vmax.f32 %v2115_v47, 0.0  ;;  %2328 = vmatmul.msk.f32.gmra.mxu0 %vm91_vm0, %v75_v45  ;;  %2392 = vmatmul.msk.f32.gmra.mxu1 %vm91_vm0, %v541_v46  ;;  %v80_v47 = vld [vmem:[%s3878_s0 + $0x1a8] sm:$0xff] }
 0x18c   :  { %v1391_v50 = vpop.f32.mrf.mxu2  ;;  %v1856_v51 = vpop.f32.mrf.mxu3 }
 0x18d   :  { %2243 = vst [vmem:[%s3881_s6 + $0xf8] sm:$0xff] %v2179_v48  ;;  %v1984_v52 = vmax.f32 %v1391_v50, %v1856_v51  ;;  %v546_v48 = vld [vmem:[%s3879_s1 + $0x1a8] sm:$0xff] }
 0x18f   :  { %v2048_v55 = vmax.f32 %v990_v49, %v1984_v52 }
 0x190   :  { %v400_v56 = vpop.f32.mrf.mxu0  ;;  %v865_v57 = vpop.f32.mrf.mxu1 }
 0x191   :  { %v2116_v60 = vadd.f32 %v3437_v6, %v2048_v55  ;;  %2457 = vmatmul.msk.f32.gmra.mxu2 %vm91_vm0, %v1071_v53  ;;  %2521 = vmatmul.msk.f32.gmra.mxu3 %vm91_vm0, %v1536_v54  ;;  %v991_v62 = vmax.f32 %v400_v56, %v865_v57  ;;  %v1076_v55 = vld [vmem:[%s3876_s2 + $0x1b0] sm:$0xff] }
 0x192   :  { %v1541_v56 = vld [vmem:[%s3877_s3 + $0x1b0] sm:$0xff] }
 0x193   :  { %v2180_v61 = vmax.f32 %v2116_v60, 0.0  ;;  %2329 = vmatmul.msk.f32.gmra.mxu0 %vm91_vm0, %v76_v58  ;;  %2393 = vmatmul.msk.f32.gmra.mxu1 %vm91_vm0, %v542_v59  ;;  %v81_v60 = vld [vmem:[%s3878_s0 + $0x1b0] sm:$0xff] }
 0x194   :  { %v1394_v63 = vpop.f32.mrf.mxu2  ;;  %v1859_v14 = vpop.f32.mrf.mxu3 }
 0x195   :  { %2244 = vst [vmem:[%s3881_s6 + $0x100] sm:$0xff] %v2180_v61  ;;  %v1985_v0 = vmax.f32 %v1394_v63, %v1859_v14  ;;  %v547_v61 = vld [vmem:[%s3879_s1 + $0x1b0] sm:$0xff] }
 0x197   :  { %v2049_v3 = vmax.f32 %v991_v62, %v1985_v0 }
 0x198   :  { %v403_v4 = vpop.f32.mrf.mxu0  ;;  %v868_v5 = vpop.f32.mrf.mxu1 }
 0x199   :  { %v2117_v9 = vadd.f32 %v3437_v6, %v2049_v3  ;;  %2458 = vmatmul.msk.f32.gmra.mxu2 %vm91_vm0, %v1072_v1  ;;  %2522 = vmatmul.msk.f32.gmra.mxu3 %vm91_vm0, %v1537_v2  ;;  %v992_v11 = vmax.f32 %v403_v4, %v868_v5  ;;  %v1077_v3 = vld [vmem:[%s3876_s2 + $0x1b8] sm:$0xff] }
 0x19a   :  { %v1542_v4 = vld [vmem:[%s3877_s3 + $0x1b8] sm:$0xff] }
 0x19b   :  { %v2181_v10 = vmax.f32 %v2117_v9, 0.0  ;;  %2330 = vmatmul.msk.f32.gmra.mxu0 %vm91_vm0, %v77_v7  ;;  %2394 = vmatmul.msk.f32.gmra.mxu1 %vm91_vm0, %v543_v8  ;;  %v82_v9 = vld [vmem:[%s3878_s0 + $0x1b8] sm:$0xff] }
 0x19c   :  { %v1397_v12 = vpop.f32.mrf.mxu2  ;;  %v1862_v13 = vpop.f32.mrf.mxu3 }
 0x19d   :  { %2245 = vst [vmem:[%s3881_s6 + $0x108] sm:$0xff] %v2181_v10  ;;  %v1986_v15 = vmax.f32 %v1397_v12, %v1862_v13  ;;  %v548_v10 = vld [vmem:[%s3879_s1 + $0x1b8] sm:$0xff] }
 0x19f   :  { %v2050_v18 = vmax.f32 %v992_v11, %v1986_v15 }
 0x1a0   :  { %v406_v19 = vpop.f32.mrf.mxu0  ;;  %v871_v20 = vpop.f32.mrf.mxu1 }
 0x1a1   :  { %v2118_v23 = vadd.f32 %v3437_v6, %v2050_v18  ;;  %2459 = vmatmul.msk.f32.gmra.mxu2 %vm91_vm0, %v1073_v16  ;;  %2523 = vmatmul.msk.f32.gmra.mxu3 %vm91_vm0, %v1538_v17  ;;  %v993_v25 = vmax.f32 %v406_v19, %v871_v20  ;;  %v1078_v18 = vld [vmem:[%s3876_s2 + $0x1c0] sm:$0xff] }
 0x1a2   :  { %v1543_v19 = vld [vmem:[%s3877_s3 + $0x1c0] sm:$0xff] }
 0x1a3   :  { %v2182_v24 = vmax.f32 %v2118_v23, 0.0  ;;  %2331 = vmatmul.msk.f32.gmra.mxu0 %vm91_vm0, %v78_v21  ;;  %2395 = vmatmul.msk.f32.gmra.mxu1 %vm91_vm0, %v544_v22  ;;  %v83_v23 = vld [vmem:[%s3878_s0 + $0x1c0] sm:$0xff] }
 0x1a4   :  { %v1400_v26 = vpop.f32.mrf.mxu2  ;;  %v1865_v27 = vpop.f32.mrf.mxu3 }
 0x1a5   :  { %2246 = vst [vmem:[%s3881_s6 + $0x110] sm:$0xff] %v2182_v24  ;;  %v1987_v28 = vmax.f32 %v1400_v26, %v1865_v27  ;;  %v549_v24 = vld [vmem:[%s3879_s1 + $0x1c0] sm:$0xff] }
 0x1a7   :  { %v2051_v31 = vmax.f32 %v993_v25, %v1987_v28 }
 0x1a8   :  { %v409_v32 = vpop.f32.mrf.mxu0  ;;  %v874_v33 = vpop.f32.mrf.mxu1 }
 0x1a9   :  { %v2119_v36 = vadd.f32 %v3437_v6, %v2051_v31  ;;  %2460 = vmatmul.msk.f32.gmra.mxu2 %vm91_vm0, %v1074_v29  ;;  %2524 = vmatmul.msk.f32.gmra.mxu3 %vm91_vm0, %v1539_v30  ;;  %v994_v38 = vmax.f32 %v409_v32, %v874_v33  ;;  %v1079_v31 = vld [vmem:[%s3876_s2 + $0x1c8] sm:$0xff] }
 0x1aa   :  { %v1544_v32 = vld [vmem:[%s3877_s3 + $0x1c8] sm:$0xff] }
 0x1ab   :  { %v2183_v37 = vmax.f32 %v2119_v36, 0.0  ;;  %2332 = vmatmul.msk.f32.gmra.mxu0 %vm91_vm0, %v79_v34  ;;  %2396 = vmatmul.msk.f32.gmra.mxu1 %vm91_vm0, %v545_v35  ;;  %v84_v36 = vld [vmem:[%s3878_s0 + $0x1c8] sm:$0xff] }
 0x1ac   :  { %v1403_v39 = vpop.f32.mrf.mxu2  ;;  %v1868_v40 = vpop.f32.mrf.mxu3 }
 0x1ad   :  { %2247 = vst [vmem:[%s3881_s6 + $0x118] sm:$0xff] %v2183_v37  ;;  %v1988_v41 = vmax.f32 %v1403_v39, %v1868_v40  ;;  %v550_v37 = vld [vmem:[%s3879_s1 + $0x1c8] sm:$0xff] }
 0x1af   :  { %v2052_v44 = vmax.f32 %v994_v38, %v1988_v41 }
 0x1b0   :  { %v412_v45 = vpop.f32.mrf.mxu0  ;;  %v877_v46 = vpop.f32.mrf.mxu1 }
 0x1b1   :  { %v2120_v49 = vadd.f32 %v3437_v6, %v2052_v44  ;;  %2461 = vmatmul.msk.f32.gmra.mxu2 %vm91_vm0, %v1075_v42  ;;  %2525 = vmatmul.msk.f32.gmra.mxu3 %vm91_vm0, %v1540_v43  ;;  %v995_v51 = vmax.f32 %v412_v45, %v877_v46  ;;  %v1080_v44 = vld [vmem:[%s3876_s2 + $0x1d0] sm:$0xff] }
 0x1b2   :  { %v1545_v45 = vld [vmem:[%s3877_s3 + $0x1d0] sm:$0xff] }
 0x1b3   :  { %v2184_v50 = vmax.f32 %v2120_v49, 0.0  ;;  %2333 = vmatmul.msk.f32.gmra.mxu0 %vm91_vm0, %v80_v47  ;;  %2397 = vmatmul.msk.f32.gmra.mxu1 %vm91_vm0, %v546_v48  ;;  %v85_v49 = vld [vmem:[%s3878_s0 + $0x1d0] sm:$0xff] }
 0x1b4   :  { %v1406_v52 = vpop.f32.mrf.mxu2  ;;  %v1871_v53 = vpop.f32.mrf.mxu3 }
 0x1b5   :  { %2248 = vst [vmem:[%s3881_s6 + $0x120] sm:$0xff] %v2184_v50  ;;  %v1989_v54 = vmax.f32 %v1406_v52, %v1871_v53  ;;  %v551_v50 = vld [vmem:[%s3879_s1 + $0x1d0] sm:$0xff] }
 0x1b7   :  { %v2053_v57 = vmax.f32 %v995_v51, %v1989_v54 }
 0x1b8   :  { %v415_v58 = vpop.f32.mrf.mxu0  ;;  %v880_v59 = vpop.f32.mrf.mxu1 }
 0x1b9   :  { %v2121_v62 = vadd.f32 %v3437_v6, %v2053_v57  ;;  %2462 = vmatmul.msk.f32.gmra.mxu2 %vm91_vm0, %v1076_v55  ;;  %2526 = vmatmul.msk.f32.gmra.mxu3 %vm91_vm0, %v1541_v56  ;;  %v996_v14 = vmax.f32 %v415_v58, %v880_v59  ;;  %v1081_v57 = vld [vmem:[%s3876_s2 + $0x1d8] sm:$0xff] }
 0x1ba   :  { %v1546_v58 = vld [vmem:[%s3877_s3 + $0x1d8] sm:$0xff] }
 0x1bb   :  { %v2185_v63 = vmax.f32 %v2121_v62, 0.0  ;;  %2334 = vmatmul.msk.f32.gmra.mxu0 %vm91_vm0, %v81_v60  ;;  %2398 = vmatmul.msk.f32.gmra.mxu1 %vm91_vm0, %v547_v61  ;;  %v86_v62 = vld [vmem:[%s3878_s0 + $0x1d8] sm:$0xff] }
 0x1bc   :  { %v1409_v0 = vpop.f32.mrf.mxu2  ;;  %v1874_v1 = vpop.f32.mrf.mxu3 }
 0x1bd   :  { %2249 = vst [vmem:[%s3881_s6 + $0x128] sm:$0xff] %v2185_v63  ;;  %v1990_v2 = vmax.f32 %v1409_v0, %v1874_v1  ;;  %v552_v63 = vld [vmem:[%s3879_s1 + $0x1d8] sm:$0xff] }
 0x1bf   :  { %v2054_v5 = vmax.f32 %v996_v14, %v1990_v2 }
 0x1c0   :  { %v418_v7 = vpop.f32.mrf.mxu0  ;;  %v883_v8 = vpop.f32.mrf.mxu1 }
 0x1c1   :  { %v2122_v11 = vadd.f32 %v3437_v6, %v2054_v5  ;;  %2463 = vmatmul.msk.f32.gmra.mxu2 %vm91_vm0, %v1077_v3  ;;  %2527 = vmatmul.msk.f32.gmra.mxu3 %vm91_vm0, %v1542_v4  ;;  %v997_v13 = vmax.f32 %v418_v7, %v883_v8  ;;  %v1082_v5 = vld [vmem:[%s3876_s2 + $0x1e0] sm:$0xff] }
 0x1c2   :  { %v1547_v7 = vld [vmem:[%s3877_s3 + $0x1e0] sm:$0xff] }
 0x1c3   :  { %v2186_v12 = vmax.f32 %v2122_v11, 0.0  ;;  %2335 = vmatmul.msk.f32.gmra.mxu0 %vm91_vm0, %v82_v9  ;;  %2399 = vmatmul.msk.f32.gmra.mxu1 %vm91_vm0, %v548_v10  ;;  %v87_v11 = vld [vmem:[%s3878_s0 + $0x1e0] sm:$0xff] }
 0x1c4   :  { %v1412_v15 = vpop.f32.mrf.mxu2  ;;  %v1877_v16 = vpop.f32.mrf.mxu3 }
 0x1c5   :  { %2250 = vst [vmem:[%s3881_s6 + $0x130] sm:$0xff] %v2186_v12  ;;  %v1991_v17 = vmax.f32 %v1412_v15, %v1877_v16  ;;  %v553_v12 = vld [vmem:[%s3879_s1 + $0x1e0] sm:$0xff] }
 0x1c7   :  { %v2055_v20 = vmax.f32 %v997_v13, %v1991_v17 }
 0x1c8   :  { %v421_v21 = vpop.f32.mrf.mxu0  ;;  %v886_v22 = vpop.f32.mrf.mxu1 }
 0x1c9   :  { %v2123_v25 = vadd.f32 %v3437_v6, %v2055_v20  ;;  %2464 = vmatmul.msk.f32.gmra.mxu2 %vm91_vm0, %v1078_v18  ;;  %2528 = vmatmul.msk.f32.gmra.mxu3 %vm91_vm0, %v1543_v19  ;;  %v998_v27 = vmax.f32 %v421_v21, %v886_v22  ;;  %v1083_v20 = vld [vmem:[%s3876_s2 + $0x1e8] sm:$0xff] }
 0x1ca   :  { %v1548_v21 = vld [vmem:[%s3877_s3 + $0x1e8] sm:$0xff] }
 0x1cb   :  { %v2187_v26 = vmax.f32 %v2123_v25, 0.0  ;;  %2336 = vmatmul.msk.f32.gmra.mxu0 %vm91_vm0, %v83_v23  ;;  %2400 = vmatmul.msk.f32.gmra.mxu1 %vm91_vm0, %v549_v24  ;;  %v88_v25 = vld [vmem:[%s3878_s0 + $0x1e8] sm:$0xff] }
 0x1cc   :  { %v1415_v28 = vpop.f32.mrf.mxu2  ;;  %v1880_v29 = vpop.f32.mrf.mxu3 }
 0x1cd   :  { %2251 = vst [vmem:[%s3881_s6 + $0x138] sm:$0xff] %v2187_v26  ;;  %v1992_v30 = vmax.f32 %v1415_v28, %v1880_v29  ;;  %v554_v26 = vld [vmem:[%s3879_s1 + $0x1e8] sm:$0xff] }
 0x1cf   :  { %v2056_v33 = vmax.f32 %v998_v27, %v1992_v30 }
 0x1d0   :  { %v424_v34 = vpop.f32.mrf.mxu0  ;;  %v889_v35 = vpop.f32.mrf.mxu1 }
 0x1d1   :  { %v2124_v38 = vadd.f32 %v3437_v6, %v2056_v33  ;;  %2465 = vmatmul.msk.f32.gmra.mxu2 %vm91_vm0, %v1079_v31  ;;  %2529 = vmatmul.msk.f32.gmra.mxu3 %vm91_vm0, %v1544_v32  ;;  %v999_v40 = vmax.f32 %v424_v34, %v889_v35  ;;  %v1084_v33 = vld [vmem:[%s3876_s2 + $0x1f0] sm:$0xff] }
 0x1d2   :  { %v1549_v34 = vld [vmem:[%s3877_s3 + $0x1f0] sm:$0xff] }
 0x1d3   :  { %v2188_v39 = vmax.f32 %v2124_v38, 0.0  ;;  %2337 = vmatmul.msk.f32.gmra.mxu0 %vm91_vm0, %v84_v36  ;;  %2401 = vmatmul.msk.f32.gmra.mxu1 %vm91_vm0, %v550_v37  ;;  %v89_v38 = vld [vmem:[%s3878_s0 + $0x1f0] sm:$0xff] }
 0x1d4   :  { %v1418_v41 = vpop.f32.mrf.mxu2  ;;  %v1883_v42 = vpop.f32.mrf.mxu3 }
 0x1d5   :  { %2252 = vst [vmem:[%s3881_s6 + $0x140] sm:$0xff] %v2188_v39  ;;  %v1993_v43 = vmax.f32 %v1418_v41, %v1883_v42  ;;  %v555_v39 = vld [vmem:[%s3879_s1 + $0x1f0] sm:$0xff] }
 0x1d7   :  { %v2057_v46 = vmax.f32 %v999_v40, %v1993_v43 }
 0x1d8   :  { %v427_v47 = vpop.f32.mrf.mxu0  ;;  %v892_v48 = vpop.f32.mrf.mxu1 }
 0x1d9   :  { %v2125_v51 = vadd.f32 %v3437_v6, %v2057_v46  ;;  %2466 = vmatmul.msk.f32.gmra.mxu2 %vm91_vm0, %v1080_v44  ;;  %2530 = vmatmul.msk.f32.gmra.mxu3 %vm91_vm0, %v1545_v45  ;;  %v1000_v53 = vmax.f32 %v427_v47, %v892_v48  ;;  %v1085_v46 = vld [vmem:[%s3876_s2 + $0x1f8] sm:$0xff] }
 0x1da   :  { %v1550_v47 = vld [vmem:[%s3877_s3 + $0x1f8] sm:$0xff] }
 0x1db   :  { %v2189_v52 = vmax.f32 %v2125_v51, 0.0  ;;  %2338 = vmatmul.msk.f32.gmra.mxu0 %vm91_vm0, %v85_v49  ;;  %2402 = vmatmul.msk.f32.gmra.mxu1 %vm91_vm0, %v551_v50  ;;  %v90_v51 = vld [vmem:[%s3878_s0 + $0x1f8] sm:$0xff] }
 0x1dc   :  { %v1421_v54 = vpop.f32.mrf.mxu2  ;;  %v1886_v55 = vpop.f32.mrf.mxu3 }
 0x1dd   :  { %2253 = vst [vmem:[%s3881_s6 + $0x148] sm:$0xff] %v2189_v52  ;;  %v1994_v56 = vmax.f32 %v1421_v54, %v1886_v55  ;;  %v556_v52 = vld [vmem:[%s3879_s1 + $0x1f8] sm:$0xff] }
 0x1df   :  { %v2058_v59 = vmax.f32 %v1000_v53, %v1994_v56 }
 0x1e0   :  { %v430_v60 = vpop.f32.mrf.mxu0  ;;  %v895_v61 = vpop.f32.mrf.mxu1 }
 0x1e1   :  { %v2126_v14 = vadd.f32 %v3437_v6, %v2058_v59  ;;  %2467 = vmatmul.msk.f32.gmra.mxu2 %vm91_vm0, %v1081_v57  ;;  %2531 = vmatmul.msk.f32.gmra.mxu3 %vm91_vm0, %v1546_v58  ;;  %v1001_v1 = vmax.f32 %v430_v60, %v895_v61 }
 0x1e3   :  { %v2190_v0 = vmax.f32 %v2126_v14, 0.0  ;;  %2339 = vmatmul.msk.f32.gmra.mxu0 %vm91_vm0, %v86_v62  ;;  %2403 = vmatmul.msk.f32.gmra.mxu1 %vm91_vm0, %v552_v63 }
 0x1e4   :  { %v1424_v2 = vpop.f32.mrf.mxu2  ;;  %v1889_v3 = vpop.f32.mrf.mxu3 }
 0x1e5   :  { %2254 = vst [vmem:[%s3881_s6 + $0x150] sm:$0xff] %v2190_v0  ;;  %v1995_v4 = vmax.f32 %v1424_v2, %v1889_v3 }
 0x1e7   :  { %v2059_v8 = vmax.f32 %v1001_v1, %v1995_v4 }
 0x1e8   :  { %v433_v9 = vpop.f32.mrf.mxu0  ;;  %v898_v10 = vpop.f32.mrf.mxu1 }
 0x1e9   :  { %v2127_v13 = vadd.f32 %v3437_v6, %v2059_v8  ;;  %2468 = vmatmul.msk.f32.gmra.mxu2 %vm91_vm0, %v1082_v5  ;;  %2532 = vmatmul.msk.f32.gmra.mxu3 %vm91_vm0, %v1547_v7  ;;  %v1002_v16 = vmax.f32 %v433_v9, %v898_v10 }
 0x1eb   :  { %v2191_v15 = vmax.f32 %v2127_v13, 0.0  ;;  %2340 = vmatmul.msk.f32.gmra.mxu0 %vm91_vm0, %v87_v11  ;;  %2404 = vmatmul.msk.f32.gmra.mxu1 %vm91_vm0, %v553_v12 }
 0x1ec   :  { %v1427_v17 = vpop.f32.mrf.mxu2  ;;  %v1892_v18 = vpop.f32.mrf.mxu3 }
 0x1ed   :  { %2255 = vst [vmem:[%s3881_s6 + $0x158] sm:$0xff] %v2191_v15  ;;  %v1996_v19 = vmax.f32 %v1427_v17, %v1892_v18 }
 0x1ef   :  { %v2060_v22 = vmax.f32 %v1002_v16, %v1996_v19 }
 0x1f0   :  { %v436_v23 = vpop.f32.mrf.mxu0  ;;  %v901_v24 = vpop.f32.mrf.mxu1 }
 0x1f1   :  { %v2128_v27 = vadd.f32 %v3437_v6, %v2060_v22  ;;  %2469 = vmatmul.msk.f32.gmra.mxu2 %vm91_vm0, %v1083_v20  ;;  %2533 = vmatmul.msk.f32.gmra.mxu3 %vm91_vm0, %v1548_v21  ;;  %v1003_v29 = vmax.f32 %v436_v23, %v901_v24 }
 0x1f3   :  { %v2192_v28 = vmax.f32 %v2128_v27, 0.0  ;;  %2341 = vmatmul.msk.f32.gmra.mxu0 %vm91_vm0, %v88_v25  ;;  %2405 = vmatmul.msk.f32.gmra.mxu1 %vm91_vm0, %v554_v26 }
 0x1f4   :  { %v1430_v30 = vpop.f32.mrf.mxu2  ;;  %v1895_v31 = vpop.f32.mrf.mxu3 }
 0x1f5   :  { %2256 = vst [vmem:[%s3881_s6 + $0x160] sm:$0xff] %v2192_v28  ;;  %v1997_v32 = vmax.f32 %v1430_v30, %v1895_v31 }
 0x1f7   :  { %v2061_v35 = vmax.f32 %v1003_v29, %v1997_v32 }
 0x1f8   :  { %v439_v36 = vpop.f32.mrf.mxu0  ;;  %v904_v37 = vpop.f32.mrf.mxu1 }
 0x1f9   :  { %v2129_v40 = vadd.f32 %v3437_v6, %v2061_v35  ;;  %2470 = vmatmul.msk.f32.gmra.mxu2 %vm91_vm0, %v1084_v33  ;;  %2534 = vmatmul.msk.f32.gmra.mxu3 %vm91_vm0, %v1549_v34  ;;  %v1004_v42 = vmax.f32 %v439_v36, %v904_v37 }
 0x1fb   :  { %v2193_v41 = vmax.f32 %v2129_v40, 0.0  ;;  %2342 = vmatmul.msk.f32.gmra.mxu0 %vm91_vm0, %v89_v38  ;;  %2406 = vmatmul.msk.f32.gmra.mxu1 %vm91_vm0, %v555_v39 }
 0x1fc   :  { %v1433_v43 = vpop.f32.mrf.mxu2  ;;  %v1898_v44 = vpop.f32.mrf.mxu3 }
 0x1fd   :  { %2257 = vst [vmem:[%s3881_s6 + $0x168] sm:$0xff] %v2193_v41  ;;  %v1998_v45 = vmax.f32 %v1433_v43, %v1898_v44 }
 0x1ff   :  { %v2062_v48 = vmax.f32 %v1004_v42, %v1998_v45 }
 0x200   :  { %v442_v49 = vpop.f32.mrf.mxu0  ;;  %v907_v50 = vpop.f32.mrf.mxu1 }
 0x201   :  { %v2130_v53 = vadd.f32 %v3437_v6, %v2062_v48  ;;  %2471 = vmatmul.msk.f32.gmra.mxu2 %vm91_vm0, %v1085_v46  ;;  %2535 = vmatmul.msk.f32.gmra.mxu3 %vm91_vm0, %v1550_v47  ;;  %v1005_v55 = vmax.f32 %v442_v49, %v907_v50 }
 0x203   :  { %v2194_v54 = vmax.f32 %v2130_v53, 0.0  ;;  %2343 = vmatmul.msk.f32.gmra.mxu0 %vm91_vm0, %v90_v51  ;;  %2407 = vmatmul.msk.f32.gmra.mxu1 %vm91_vm0, %v556_v52 }
 0x204   :  { %v1436_v56 = vpop.f32.mrf.mxu2  ;;  %v1901_v57 = vpop.f32.mrf.mxu3 }
 0x205   :  { %2258 = vst [vmem:[%s3881_s6 + $0x170] sm:$0xff] %v2194_v54  ;;  %v1999_v58 = vmax.f32 %v1436_v56, %v1901_v57 }
 0x207   :  { %v2063_v59 = vmax.f32 %v1005_v55, %v1999_v58 }
 0x208   :  { %v445_v60 = vpop.f32.mrf.mxu0  ;;  %v910_v61 = vpop.f32.mrf.mxu1 }
 0x209   :  { %v2131_v62 = vadd.f32 %v3437_v6, %v2063_v59  ;;  %v1006_v14 = vmax.f32 %v445_v60, %v910_v61 }
 0x20b   :  { %v2195_v63 = vmax.f32 %v2131_v62, 0.0 }
 0x20c   :  { %v1439_v0 = vpop.f32.mrf.mxu2  ;;  %v1904_v1 = vpop.f32.mrf.mxu3 }
 0x20d   :  { %2259 = vst [vmem:[%s3881_s6 + $0x178] sm:$0xff] %v2195_v63  ;;  %v2000_v2 = vmax.f32 %v1439_v0, %v1904_v1 }
 0x20f   :  { %v2064_v3 = vmax.f32 %v1006_v14, %v2000_v2 }
 0x210   :  { %v448_v4 = vpop.f32.mrf.mxu0  ;;  %v913_v5 = vpop.f32.mrf.mxu1 }
 0x211   :  { %v2132_v7 = vadd.f32 %v3437_v6, %v2064_v3  ;;  %v1007_v9 = vmax.f32 %v448_v4, %v913_v5 }
 0x213   :  { %v2196_v8 = vmax.f32 %v2132_v7, 0.0 }
 0x214   :  { %v1442_v10 = vpop.f32.mrf.mxu2  ;;  %v1907_v11 = vpop.f32.mrf.mxu3 }
 0x215   :  { %2260 = vst [vmem:[%s3881_s6 + $0x180] sm:$0xff] %v2196_v8  ;;  %v2001_v12 = vmax.f32 %v1442_v10, %v1907_v11 }
 0x217   :  { %v2065_v13 = vmax.f32 %v1007_v9, %v2001_v12 }
 0x218   :  { %v451_v15 = vpop.f32.mrf.mxu0  ;;  %v916_v16 = vpop.f32.mrf.mxu1 }
 0x219   :  { %v2133_v17 = vadd.f32 %v3437_v6, %v2065_v13  ;;  %v1008_v19 = vmax.f32 %v451_v15, %v916_v16 }
 0x21b   :  { %v2197_v18 = vmax.f32 %v2133_v17, 0.0 }
 0x21c   :  { %v1445_v20 = vpop.f32.mrf.mxu2  ;;  %v1910_v21 = vpop.f32.mrf.mxu3 }
 0x21d   :  { %2261 = vst [vmem:[%s3881_s6 + $0x188] sm:$0xff] %v2197_v18  ;;  %v2002_v22 = vmax.f32 %v1445_v20, %v1910_v21 }
 0x21f   :  { %v2066_v23 = vmax.f32 %v1008_v19, %v2002_v22 }
 0x220   :  { %v454_v24 = vpop.f32.mrf.mxu0  ;;  %v919_v25 = vpop.f32.mrf.mxu1 }
 0x221   :  { %v2134_v26 = vadd.f32 %v3437_v6, %v2066_v23  ;;  %v1009_v28 = vmax.f32 %v454_v24, %v919_v25 }
 0x223   :  { %v2198_v27 = vmax.f32 %v2134_v26, 0.0 }
 0x224   :  { %v1448_v29 = vpop.f32.mrf.mxu2  ;;  %v1913_v30 = vpop.f32.mrf.mxu3 }
 0x225   :  { %2262 = vst [vmem:[%s3881_s6 + $0x190] sm:$0xff] %v2198_v27  ;;  %v2003_v31 = vmax.f32 %v1448_v29, %v1913_v30 }
 0x227   :  { %v2067_v32 = vmax.f32 %v1009_v28, %v2003_v31 }
 0x228   :  { %v457_v33 = vpop.f32.mrf.mxu0  ;;  %v922_v34 = vpop.f32.mrf.mxu1 }
 0x229   :  { %v2135_v35 = vadd.f32 %v3437_v6, %v2067_v32  ;;  %v1010_v37 = vmax.f32 %v457_v33, %v922_v34 }
 0x22b   :  { %v2199_v36 = vmax.f32 %v2135_v35, 0.0 }
 0x22c   :  { %v1451_v38 = vpop.f32.mrf.mxu2  ;;  %v1916_v39 = vpop.f32.mrf.mxu3 }
 0x22d   :  { %2263 = vst [vmem:[%s3881_s6 + $0x198] sm:$0xff] %v2199_v36  ;;  %v2004_v40 = vmax.f32 %v1451_v38, %v1916_v39 }
 0x22f   :  { %v2068_v41 = vmax.f32 %v1010_v37, %v2004_v40 }
 0x230   :  { %v460_v42 = vpop.f32.mrf.mxu0  ;;  %v925_v43 = vpop.f32.mrf.mxu1 }
 0x231   :  { %v2136_v44 = vadd.f32 %v3437_v6, %v2068_v41  ;;  %v1011_v46 = vmax.f32 %v460_v42, %v925_v43 }
 0x233   :  { %v2200_v45 = vmax.f32 %v2136_v44, 0.0 }
 0x234   :  { %v1454_v47 = vpop.f32.mrf.mxu2  ;;  %v1919_v48 = vpop.f32.mrf.mxu3 }
 0x235   :  { %2264 = vst [vmem:[%s3881_s6 + $0x1a0] sm:$0xff] %v2200_v45  ;;  %v2005_v49 = vmax.f32 %v1454_v47, %v1919_v48 }
 0x237   :  { %v2069_v50 = vmax.f32 %v1011_v46, %v2005_v49 }
 0x238   :  { %v463_v51 = vpop.f32.mrf.mxu0  ;;  %v928_v52 = vpop.f32.mrf.mxu1 }
 0x239   :  { %v2137_v53 = vadd.f32 %v3437_v6, %v2069_v50  ;;  %v1012_v55 = vmax.f32 %v463_v51, %v928_v52 }
 0x23b   :  { %v2201_v54 = vmax.f32 %v2137_v53, 0.0 }
 0x23c   :  { %v1457_v56 = vpop.f32.mrf.mxu2  ;;  %v1922_v57 = vpop.f32.mrf.mxu3 }
 0x23d   :  { %2265 = vst [vmem:[%s3881_s6 + $0x1a8] sm:$0xff] %v2201_v54  ;;  %v2006_v58 = vmax.f32 %v1457_v56, %v1922_v57 }
 0x23f   :  { %v2070_v59 = vmax.f32 %v1012_v55, %v2006_v58 }
 0x240   :  { %v466_v60 = vpop.f32.mrf.mxu0  ;;  %v931_v61 = vpop.f32.mrf.mxu1 }
 0x241   :  { %v2138_v62 = vadd.f32 %v3437_v6, %v2070_v59  ;;  %v1013_v14 = vmax.f32 %v466_v60, %v931_v61 }
 0x243   :  { %v2202_v63 = vmax.f32 %v2138_v62, 0.0 }
 0x244   :  { %v1460_v0 = vpop.f32.mrf.mxu2  ;;  %v1925_v1 = vpop.f32.mrf.mxu3 }
 0x245   :  { %2266 = vst [vmem:[%s3881_s6 + $0x1b0] sm:$0xff] %v2202_v63  ;;  %v2007_v2 = vmax.f32 %v1460_v0, %v1925_v1 }
 0x247   :  { %v2071_v3 = vmax.f32 %v1013_v14, %v2007_v2 }
 0x248   :  { %v469_v4 = vpop.f32.mrf.mxu0  ;;  %v934_v5 = vpop.f32.mrf.mxu1 }
 0x249   :  { %v2139_v7 = vadd.f32 %v3437_v6, %v2071_v3  ;;  %v1014_v9 = vmax.f32 %v469_v4, %v934_v5 }
 0x24b   :  { %v2203_v8 = vmax.f32 %v2139_v7, 0.0 }
 0x24c   :  { %v1463_v10 = vpop.f32.mrf.mxu2  ;;  %v1928_v11 = vpop.f32.mrf.mxu3 }
 0x24d   :  { %2267 = vst [vmem:[%s3881_s6 + $0x1b8] sm:$0xff] %v2203_v8  ;;  %v2008_v12 = vmax.f32 %v1463_v10, %v1928_v11 }
 0x24f   :  { %v2072_v13 = vmax.f32 %v1014_v9, %v2008_v12 }
 0x250   :  { %v472_v15 = vpop.f32.mrf.mxu0  ;;  %v937_v16 = vpop.f32.mrf.mxu1 }
 0x251   :  { %v2140_v17 = vadd.f32 %v3437_v6, %v2072_v13  ;;  %v1015_v19 = vmax.f32 %v472_v15, %v937_v16 }
 0x253   :  { %v2204_v18 = vmax.f32 %v2140_v17, 0.0 }
 0x254   :  { %v1466_v20 = vpop.f32.mrf.mxu2  ;;  %v1931_v21 = vpop.f32.mrf.mxu3 }
 0x255   :  { %2268 = vst [vmem:[%s3881_s6 + $0x1c0] sm:$0xff] %v2204_v18  ;;  %v2009_v22 = vmax.f32 %v1466_v20, %v1931_v21 }
 0x257   :  { %v2073_v23 = vmax.f32 %v1015_v19, %v2009_v22 }
 0x258   :  { %v475_v24 = vpop.f32.mrf.mxu0  ;;  %v940_v25 = vpop.f32.mrf.mxu1 }
 0x259   :  { %v2141_v26 = vadd.f32 %v3437_v6, %v2073_v23  ;;  %v1016_v28 = vmax.f32 %v475_v24, %v940_v25 }
 0x25b   :  { %v2205_v27 = vmax.f32 %v2141_v26, 0.0 }
 0x25c   :  { %v1469_v29 = vpop.f32.mrf.mxu2  ;;  %v1934_v30 = vpop.f32.mrf.mxu3 }
 0x25d   :  { %2269 = vst [vmem:[%s3881_s6 + $0x1c8] sm:$0xff] %v2205_v27  ;;  %v2010_v31 = vmax.f32 %v1469_v29, %v1934_v30 }
 0x25f   :  { %v2074_v32 = vmax.f32 %v1016_v28, %v2010_v31 }
 0x260   :  { %v478_v33 = vpop.f32.mrf.mxu0  ;;  %v943_v34 = vpop.f32.mrf.mxu1 }
 0x261   :  { %v2142_v35 = vadd.f32 %v3437_v6, %v2074_v32  ;;  %v1017_v37 = vmax.f32 %v478_v33, %v943_v34 }
 0x263   :  { %v2206_v36 = vmax.f32 %v2142_v35, 0.0 }
 0x264   :  { %v1472_v38 = vpop.f32.mrf.mxu2  ;;  %v1937_v39 = vpop.f32.mrf.mxu3 }
 0x265   :  { %2270 = vst [vmem:[%s3881_s6 + $0x1d0] sm:$0xff] %v2206_v36  ;;  %v2011_v40 = vmax.f32 %v1472_v38, %v1937_v39 }
 0x267   :  { %v2075_v41 = vmax.f32 %v1017_v37, %v2011_v40 }
 0x268   :  { %v481_v42 = vpop.f32.mrf.mxu0  ;;  %v946_v43 = vpop.f32.mrf.mxu1 }
 0x269   :  { %v2143_v44 = vadd.f32 %v3437_v6, %v2075_v41  ;;  %v1018_v46 = vmax.f32 %v481_v42, %v946_v43 }
 0x26b   :  { %v2207_v45 = vmax.f32 %v2143_v44, 0.0 }
 0x26c   :  { %v1475_v47 = vpop.f32.mrf.mxu2  ;;  %v1940_v48 = vpop.f32.mrf.mxu3 }
 0x26d   :  { %2271 = vst [vmem:[%s3881_s6 + $0x1d8] sm:$0xff] %v2207_v45  ;;  %v2012_v49 = vmax.f32 %v1475_v47, %v1940_v48 }
 0x26f   :  { %v2076_v50 = vmax.f32 %v1018_v46, %v2012_v49 }
 0x270   :  { %v484_v51 = vpop.f32.mrf.mxu0  ;;  %v949_v52 = vpop.f32.mrf.mxu1 }
 0x271   :  { %v2144_v53 = vadd.f32 %v3437_v6, %v2076_v50  ;;  %v1019_v55 = vmax.f32 %v484_v51, %v949_v52 }
 0x273   :  { %v2208_v54 = vmax.f32 %v2144_v53, 0.0 }
 0x274   :  { %v1478_v56 = vpop.f32.mrf.mxu2  ;;  %v1943_v57 = vpop.f32.mrf.mxu3 }
 0x275   :  { %2272 = vst [vmem:[%s3881_s6 + $0x1e0] sm:$0xff] %v2208_v54  ;;  %v2013_v58 = vmax.f32 %v1478_v56, %v1943_v57 }
 0x277   :  { %v2077_v59 = vmax.f32 %v1019_v55, %v2013_v58 }
 0x278   :  { %v487_v60 = vpop.f32.mrf.mxu0  ;;  %v952_v61 = vpop.f32.mrf.mxu1 }
 0x279   :  { %v2145_v62 = vadd.f32 %v3437_v6, %v2077_v59  ;;  %v1020_v14 = vmax.f32 %v487_v60, %v952_v61 }
 0x27b   :  { %v2209_v63 = vmax.f32 %v2145_v62, 0.0 }
 0x27c   :  { %v1481_v0 = vpop.f32.mrf.mxu2  ;;  %v1946_v1 = vpop.f32.mrf.mxu3 }
 0x27d   :  { %2273 = vst [vmem:[%s3881_s6 + $0x1e8] sm:$0xff] %v2209_v63  ;;  %v2014_v2 = vmax.f32 %v1481_v0, %v1946_v1 }
 0x27f   :  { %v2078_v3 = vmax.f32 %v1020_v14, %v2014_v2 }
 0x280   :  { %v490_v4 = vpop.f32.mrf.mxu0  ;;  %v955_v5 = vpop.f32.mrf.mxu1 }
 0x281   :  { %v2146_v7 = vadd.f32 %v3437_v6, %v2078_v3  ;;  %v1021_v9 = vmax.f32 %v490_v4, %v955_v5 }
 0x283   :  { %v2210_v8 = vmax.f32 %v2146_v7, 0.0 }
 0x284   :  { %v1484_v10 = vpop.f32.mrf.mxu2  ;;  %v1949_v11 = vpop.f32.mrf.mxu3 }
 0x285   :  { %2274 = vst [vmem:[%s3881_s6 + $0x1f0] sm:$0xff] %v2210_v8  ;;  %v2015_v12 = vmax.f32 %v1484_v10, %v1949_v11 }
 0x287   :  { %v2079_v13 = vmax.f32 %v1021_v9, %v2015_v12 }
 0x289   :  { %v2147_v15 = vadd.f32 %v3437_v6, %v2079_v13 }
 0x28b   :  { %v2211_v16 = vmax.f32 %v2147_v15, 0.0 }
 0x28d   :  { %2275 = vst [vmem:[%s3881_s6 + $0x1f8] sm:$0xff] %v2211_v16 }

// kernel: net_forward.4
= control target key start
LH: loop header
LB: loop body
LE: loop exit
PB: predicated region body
PF: predicated region fallthrough
CT: control target
= control target key end

     0   :  { %vm74_vm0 = vcmask 195584   ;;  %s1957_s4 = inlined_call_operand.vmem [shape: f32[152,128], index: 4, kind: input, shape index: {}]   ;;  %s1958_s1 = inlined_call_operand.vmem [shape: f32[128,152], index: 1, kind: input, shape index: {}]   ;;  %s1959_s0 = inlined_call_operand.vmem [shape: f32[128,152], index: 0, kind: input, shape index: {}]   ;;  %s1960_s2 = inlined_call_operand.vmem [shape: f32[128,152], index: 2, kind: input, shape index: {}]   ;;  %s1961_s3 = inlined_call_operand.vmem [shape: f32[128,152], index: 3, kind: input, shape index: {}]   ;;  %s1962_s5 = inlined_call_operand.vmem [shape: f32[1,128], index: 5, kind: input, shape index: {}]   ;;  %s1963_s6 = inlined_call_operand.vmem [shape: f32[128,128], index: 6, kind: output, shape index: {}]  }
   0x1   :  { %v1109_v0 = vld [vmem:[%s1957_s4 + $0x78] sm:$0xff]  ;;  %v1114_v1 = vld [vmem:[%s1957_s4 + $0x90] sm:$0xff]  ;;  %v1126_v3 = vld [vmem:[%s1957_s4 + $0x88] sm:$0xff] }
   0x2   :  { %v1119_v2 = vld [vmem:[%s1957_s4 + $0x70] sm:$0xff]  ;;  %123 = vmatpush.msra.mxu0 %v1109_v0  ;;  %333 = vmatpush.msra.mxu2 %v1109_v0  ;;  %v1132_v4 = vld [vmem:[%s1957_s4 + $0x68] sm:$0xff]  ;;  %v1140_v5 = vld [vmem:[%s1957_s4 + $0x80] sm:$0xff] }
   0x3   :  { %411 = vmatpush.msra.mxu3 %v1114_v1  ;;  %201 = vmatpush.msra.mxu1 %v1114_v1  ;;  %v254_v6 = vld [vmem:[%s1958_s1 + $0x8] sm:$0xff]  ;;  %v1149_v7 = vld [vmem:[%s1957_s4 + $0x60] sm:$0xff]  ;;  %v1161_v9 = vld [vmem:[%s1957_s4 + $0x58] sm:$0xff] }
   0x4   :  { %124 = vmatpush.msra.mxu0 %v1119_v2  ;;  %334 = vmatpush.msra.mxu2 %v1119_v2  ;;  %v43_v8 = vld [vmem:[%s1959_s0 + $0x8] sm:$0xff]  ;;  %v1170_v10 = vld [vmem:[%s1957_s4 + $0x50] sm:$0xff]  ;;  %v256_v12 = vld [vmem:[%s1958_s1 + $0x18] sm:$0xff] }
   0x5   :  { %412 = vmatpush.msra.mxu3 %v1126_v3  ;;  %202 = vmatpush.msra.mxu1 %v1126_v3  ;;  %v1179_v11 = vld [vmem:[%s1957_s4 + $0x48] sm:$0xff]  ;;  %v1191_v13 = vld [vmem:[%s1957_s4 + $0x40] sm:$0xff]  ;;  %v45_v14 = vld [vmem:[%s1959_s0 + $0x18] sm:$0xff] }
   0x6   :  { %125 = vmatpush.msra.mxu0 %v1132_v4  ;;  %335 = vmatpush.msra.mxu2 %v1132_v4  ;;  %v1203_v15 = vld [vmem:[%s1957_s4 + $0x38] sm:$0xff]  ;;  %v1212_v16 = vld [vmem:[%s1957_s4 + $0x30] sm:$0xff]  ;;  %v1221_v17 = vld [vmem:[%s1957_s4 + $0x28] sm:$0xff] }
   0x7   :  { %413 = vmatpush.msra.mxu3 %v1140_v5  ;;  %203 = vmatpush.msra.mxu1 %v1140_v5  ;;  %v258_v18 = vld [vmem:[%s1958_s1 + $0x28] sm:$0xff]  ;;  %v1233_v19 = vld [vmem:[%s1957_s4 + $0x20] sm:$0xff]  ;;  %v1245_v21 = vld [vmem:[%s1957_s4 + $0x18] sm:$0xff] }
   0x8   :  { %1003 = vmatmul.msk.f32.vlgmr.msra.gmra.mxu3 %vm74_vm0, %v254_v6  ;;  %126 = vmatpush.msra.mxu0 %v1149_v7  ;;  %v47_v20 = vld [vmem:[%s1959_s0 + $0x28] sm:$0xff]  ;;  %v1254_v22 = vld [vmem:[%s1957_s4 + $0x10] sm:$0xff]  ;;  %v260_v24 = vld [vmem:[%s1958_s1 + $0x38] sm:$0xff] }
   0x9   :  { %336 = vmatpush.msra.mxu2 %v1149_v7  ;;  %987 = vmatmul.msk.f32.vlgmr.msra.gmra.mxu1 %vm74_vm0, %v43_v8  ;;  %v1263_v23 = vld [vmem:[%s1957_s4 + $0x8] sm:$0xff]  ;;  %v1274_v25 = vld [vmem:[%s1957_s4] sm:$0xff]  ;;  %v49_v28 = vld [vmem:[%s1959_s0 + $0x38] sm:$0xff] }
   0xa   :  { %127 = vmatpush.msra.mxu0 %v1161_v9  ;;  %637 = vmatpush.msrb.mxu3 %v1114_v1  ;;  %v42_v26 = vld [vmem:[%s1959_s0] sm:$0xff]  ;;  %v262_v29 = vld [vmem:[%s1958_s1 + $0x48] sm:$0xff]  ;;  %v44_v30 = vld [vmem:[%s1959_s0 + $0x10] sm:$0xff] }
   0xb   :  { %337 = vmatpush.msra.mxu2 %v1161_v9  ;;  %559 = vmatpush.msrb.mxu1 %v1109_v0  ;;  %v253_v27 = vld [vmem:[%s1958_s1] sm:$0xff]  ;;  %v255_v31 = vld [vmem:[%s1958_s1 + $0x10] sm:$0xff]  ;;  %v51_v32 = vld [vmem:[%s1959_s0 + $0x48] sm:$0xff] }
   0xc   :  { %128 = vmatpush.msra.mxu0 %v1170_v10  ;;  %638 = vmatpush.msrb.mxu3 %v1126_v3  ;;  %v264_v33 = vld [vmem:[%s1958_s1 + $0x58] sm:$0xff]  ;;  %v46_v34 = vld [vmem:[%s1959_s0 + $0x20] sm:$0xff]  ;;  %v266_v37 = vld [vmem:[%s1958_s1 + $0x68] sm:$0xff] }
   0xd   :  { %338 = vmatpush.msra.mxu2 %v1170_v10  ;;  %560 = vmatpush.msrb.mxu1 %v1119_v2  ;;  %v257_v35 = vld [vmem:[%s1958_s1 + $0x20] sm:$0xff]  ;;  %v53_v36 = vld [vmem:[%s1959_s0 + $0x58] sm:$0xff]  ;;  %v48_v38 = vld [vmem:[%s1959_s0 + $0x30] sm:$0xff] }
   0xe   :  { %129 = vmatpush.msra.mxu0 %v1179_v11  ;;  %639 = vmatpush.msrb.mxu3 %v1140_v5  ;;  %v259_v39 = vld [vmem:[%s1958_s1 + $0x30] sm:$0xff]  ;;  %v55_v40 = vld [vmem:[%s1959_s0 + $0x68] sm:$0xff]  ;;  %v268_v41 = vld [vmem:[%s1958_s1 + $0x78] sm:$0xff] }
   0xf   :  { %339 = vmatpush.msra.mxu2 %v1179_v11  ;;  %561 = vmatpush.msrb.mxu1 %v1132_v4  ;;  %v50_v42 = vld [vmem:[%s1959_s0 + $0x40] sm:$0xff]  ;;  %v57_v44 = vld [vmem:[%s1959_s0 + $0x78] sm:$0xff]  ;;  %v270_v45 = vld [vmem:[%s1958_s1 + $0x88] sm:$0xff] }
  0x10   :  { %1004 = vmatmul.msk.f32.gmra.mxu3 %vm74_vm0, %v256_v12  ;;  %130 = vmatpush.msra.mxu0 %v1191_v13  ;;  %v261_v43 = vld [vmem:[%s1958_s1 + $0x40] sm:$0xff]  ;;  %v52_v46 = vld [vmem:[%s1959_s0 + $0x50] sm:$0xff]  ;;  %v59_v48 = vld [vmem:[%s1959_s0 + $0x88] sm:$0xff] }
  0x11   :  { %340 = vmatpush.msra.mxu2 %v1191_v13  ;;  %988 = vmatmul.msk.f32.gmra.mxu1 %vm74_vm0, %v45_v14  ;;  %v263_v47 = vld [vmem:[%s1958_s1 + $0x50] sm:$0xff]  ;;  %v272_v49 = vld [vmem:[%s1958_s1 + $0x98] sm:$0xff]  ;;  %v54_v50 = vld [vmem:[%s1959_s0 + $0x60] sm:$0xff] }
  0x12   :  { %131 = vmatpush.msra.mxu0 %v1203_v15  ;;  %562 = vmatpush.msrb.mxu1 %v1149_v7  ;;  %v265_v51 = vld [vmem:[%s1958_s1 + $0x60] sm:$0xff]  ;;  %v61_v52 = vld [vmem:[%s1959_s0 + $0x98] sm:$0xff]  ;;  %v274_v53 = vld [vmem:[%s1958_s1 + $0xa8] sm:$0xff] }
  0x13   :  { %341 = vmatpush.msra.mxu2 %v1203_v15  ;;  %1067 = vmatpush.msra.mxu3 %v1114_v1  ;;  %v56_v54 = vld [vmem:[%s1959_s0 + $0x70] sm:$0xff]  ;;  %v63_v56 = vld [vmem:[%s1959_s0 + $0xa8] sm:$0xff]  ;;  %v276_v57 = vld [vmem:[%s1958_s1 + $0xb8] sm:$0xff] }
  0x14   :  { %132 = vmatpush.msra.mxu0 %v1212_v16  ;;  %563 = vmatpush.msrb.mxu1 %v1161_v9  ;;  %v267_v55 = vld [vmem:[%s1958_s1 + $0x70] sm:$0xff]  ;;  %v58_v58 = vld [vmem:[%s1959_s0 + $0x80] sm:$0xff]  ;;  %v65_v60 = vld [vmem:[%s1959_s0 + $0xb8] sm:$0xff] }
  0x15   :  { %342 = vmatpush.msra.mxu2 %v1212_v16  ;;  %1068 = vmatpush.msra.mxu3 %v1126_v3  ;;  %v269_v59 = vld [vmem:[%s1958_s1 + $0x80] sm:$0xff]  ;;  %v278_v61 = vld [vmem:[%s1958_s1 + $0xc8] sm:$0xff]  ;;  %v60_v62 = vld [vmem:[%s1959_s0 + $0x90] sm:$0xff] }
  0x16   :  { %133 = vmatpush.msra.mxu0 %v1221_v17  ;;  %564 = vmatpush.msrb.mxu1 %v1170_v10  ;;  %v271_v63 = vld [vmem:[%s1958_s1 + $0x90] sm:$0xff]  ;;  %v71_v8 = vld [vmem:[%s1959_s0 + $0xe8] sm:$0xff]  ;;  %v73_v12 = vld [vmem:[%s1959_s0 + $0xf8] sm:$0xff] }
  0x17   :  { %343 = vmatpush.msra.mxu2 %v1221_v17  ;;  %1069 = vmatpush.msra.mxu3 %v1140_v5  ;;  %v64_v6 = vld [vmem:[%s1959_s0 + $0xb0] sm:$0xff] }
  0x18   :  { %1005 = vmatmul.msk.f32.gmra.mxu3 %vm74_vm0, %v258_v18  ;;  %134 = vmatpush.msra.mxu0 %v1233_v19  ;;  %v68_v14 = vld [vmem:[%s1959_s0 + $0xd0] sm:$0xff] }
  0x19   :  { %344 = vmatpush.msra.mxu2 %v1233_v19  ;;  %989 = vmatmul.msk.f32.gmra.mxu1 %vm74_vm0, %v47_v20  ;;  %v70_v20 = vld [vmem:[%s1959_s0 + $0xe0] sm:$0xff] }
  0x1a   :  { %135 = vmatpush.msra.mxu0 %v1245_v21  ;;  %565 = vmatpush.msrb.mxu1 %v1179_v11 }
  0x1b   :  { %345 = vmatpush.msra.mxu2 %v1245_v21 }
  0x1c   :  { %136 = vmatpush.msra.mxu0 %v1254_v22  ;;  %566 = vmatpush.msrb.mxu1 %v1191_v13 }
  0x1d   :  { %346 = vmatpush.msra.mxu2 %v1254_v22 }
  0x1e   :  { %137 = vmatpush.msra.mxu0 %v1263_v23  ;;  %567 = vmatpush.msrb.mxu1 %v1203_v15 }
  0x1f   :  { %347 = vmatpush.msra.mxu2 %v1263_v23 }
  0x20   :  { %1006 = vmatmul.msk.f32.gmra.mxu3 %vm74_vm0, %v260_v24  ;;  %138 = vmatpush.msra.mxu0 %v1274_v25 }
  0x21   :  { %348 = vmatpush.msra.mxu2 %v1274_v25  ;;  %139 = vmatmul.f32.vlgmr.msra.gmra.mxu0 %v42_v26  ;;  %v72_v26 = vld [vmem:[%s1959_s0 + $0xf0] sm:$0xff] }
  0x22   :  { %349 = vmatmul.f32.vlgmr.msra.gmra.mxu2 %v253_v27  ;;  %990 = vmatmul.msk.f32.gmra.mxu1 %vm74_vm0, %v49_v28  ;;  %v283_v28 = vld [vmem:[%s1958_s1 + $0xf0] sm:$0xff] }
  0x23   :  { %847 = vmatpush.msrb.mxu2 %v1114_v1  ;;  %769 = vmatpush.msrb.mxu0 %v1109_v0  ;;  %v280_v1 = vld [vmem:[%s1958_s1 + $0xd8] sm:$0xff] }
  0x24   :  { %568 = vmatpush.msrb.mxu1 %v1212_v16 }
  0x25   :  { %770 = vmatpush.msrb.mxu0 %v1119_v2  ;;  %848 = vmatpush.msrb.mxu2 %v1126_v3  ;;  %v273_v3 = vld [vmem:[%s1958_s1 + $0xa0] sm:$0xff] }
  0x26   :  { %569 = vmatpush.msrb.mxu1 %v1221_v17 }
  0x27   :  { %771 = vmatpush.msrb.mxu0 %v1132_v4  ;;  %849 = vmatpush.msrb.mxu2 %v1140_v5  ;;  %v282_v5 = vld [vmem:[%s1958_s1 + $0xe8] sm:$0xff] }
  0x28   :  { %1007 = vmatmul.msk.f32.gmra.mxu3 %vm74_vm0, %v262_v29  ;;  %570 = vmatpush.msrb.mxu1 %v1233_v19  ;;  %v483_v29 = vld [vmem:[%s1960_s2 + $0x20] sm:$0xff] }
  0x29   :  { %142 = vmatmul.f32.gmra.mxu0 %v44_v30 }
  0x2a   :  { %352 = vmatmul.f32.gmra.mxu2 %v255_v31  ;;  %991 = vmatmul.msk.f32.gmra.mxu1 %vm74_vm0, %v51_v32  ;;  %v486_v31 = vld [vmem:[%s1960_s2 + $0x38] sm:$0xff] }
  0x2b   :  { %772 = vmatpush.msrb.mxu0 %v1149_v7  ;;  %571 = vmatpush.msrb.mxu1 %v1245_v21 }
  0x2d   :  { %773 = vmatpush.msrb.mxu0 %v1161_v9  ;;  %572 = vmatpush.msrb.mxu1 %v1254_v22 }
  0x2f   :  { %774 = vmatpush.msrb.mxu0 %v1170_v10  ;;  %573 = vmatpush.msrb.mxu1 %v1263_v23 }
  0x30   :  { %1008 = vmatmul.msk.f32.gmra.mxu3 %vm74_vm0, %v264_v33  ;;  %v689_v33 = vld [vmem:[%s1961_s3] sm:$0xff] }
  0x31   :  { %145 = vmatmul.f32.gmra.mxu0 %v46_v34  ;;  %574 = vmatpush.msrb.mxu1 %v1274_v25  ;;  %v690_v34 = vld [vmem:[%s1961_s3 + $0x8] sm:$0xff] }
  0x32   :  { %355 = vmatmul.f32.gmra.mxu2 %v257_v35  ;;  %992 = vmatmul.msk.f32.gmra.mxu1 %vm74_vm0, %v53_v36  ;;  %v485_v36 = vld [vmem:[%s1960_s2 + $0x30] sm:$0xff] }
  0x33   :  { %775 = vmatpush.msrb.mxu0 %v1179_v11  ;;  %1051 = vmatpush.msra.mxu1 %v1109_v0  ;;  %v67_v0 = vld [vmem:[%s1959_s0 + $0xc8] sm:$0xff] }
  0x35   :  { %776 = vmatpush.msrb.mxu0 %v1191_v13  ;;  %1052 = vmatpush.msra.mxu1 %v1119_v2  ;;  %v62_v2 = vld [vmem:[%s1959_s0 + $0xa0] sm:$0xff] }
  0x37   :  { %777 = vmatpush.msrb.mxu0 %v1203_v15  ;;  %1053 = vmatpush.msra.mxu1 %v1132_v4  ;;  %v69_v4 = vld [vmem:[%s1959_s0 + $0xd8] sm:$0xff] }
  0x38   :  { %1009 = vmatmul.msk.f32.gmra.mxu3 %vm74_vm0, %v266_v37 }
  0x39   :  { %148 = vmatmul.f32.gmra.mxu0 %v48_v38  ;;  %1054 = vmatpush.msra.mxu1 %v1149_v7  ;;  %v275_v7 = vld [vmem:[%s1958_s1 + $0xb0] sm:$0xff] }
  0x3a   :  { %358 = vmatmul.f32.gmra.mxu2 %v259_v39  ;;  %993 = vmatmul.msk.f32.gmra.mxu1 %vm74_vm0, %v55_v40  ;;  %v488_v39 = vld [vmem:[%s1960_s2 + $0x48] sm:$0xff] }
  0x3b   :  { %778 = vmatpush.msrb.mxu0 %v1212_v16  ;;  %1055 = vmatpush.msra.mxu1 %v1161_v9  ;;  %v284_v9 = vld [vmem:[%s1958_s1 + $0xf8] sm:$0xff] }
  0x3d   :  { %779 = vmatpush.msrb.mxu0 %v1221_v17  ;;  %1056 = vmatpush.msra.mxu1 %v1170_v10  ;;  %v66_v10 = vld [vmem:[%s1959_s0 + $0xc0] sm:$0xff] }
  0x3f   :  { %780 = vmatpush.msrb.mxu0 %v1233_v19  ;;  %1057 = vmatpush.msra.mxu1 %v1179_v11  ;;  %v277_v11 = vld [vmem:[%s1958_s1 + $0xc0] sm:$0xff] }
  0x40   :  { %1010 = vmatmul.msk.f32.gmra.mxu3 %vm74_vm0, %v268_v41 }
  0x41   :  { %151 = vmatmul.f32.gmra.mxu0 %v50_v42  ;;  %1058 = vmatpush.msra.mxu1 %v1191_v13  ;;  %v480_v13 = vld [vmem:[%s1960_s2 + $0x8] sm:$0xff] }
  0x42   :  { %361 = vmatmul.f32.gmra.mxu2 %v261_v43  ;;  %994 = vmatmul.msk.f32.gmra.mxu1 %vm74_vm0, %v57_v44  ;;  %v691_v43 = vld [vmem:[%s1961_s3 + $0x10] sm:$0xff]  ;;  %v692_v44 = vld [vmem:[%s1961_s3 + $0x18] sm:$0xff] }
  0x43   :  { %781 = vmatpush.msrb.mxu0 %v1245_v21  ;;  %1059 = vmatpush.msra.mxu1 %v1203_v15 }
  0x45   :  { %782 = vmatpush.msrb.mxu0 %v1254_v22  ;;  %1060 = vmatpush.msra.mxu1 %v1212_v16  ;;  %v279_v16 = vld [vmem:[%s1958_s1 + $0xd0] sm:$0xff] }
  0x47   :  { %783 = vmatpush.msrb.mxu0 %v1263_v23  ;;  %1061 = vmatpush.msra.mxu1 %v1221_v17  ;;  %v479_v17 = vld [vmem:[%s1960_s2] sm:$0xff] }
  0x48   :  { %1011 = vmatmul.msk.f32.gmra.mxu3 %vm74_vm0, %v270_v45 }
  0x49   :  { %154 = vmatmul.f32.gmra.mxu0 %v52_v46  ;;  %1062 = vmatpush.msra.mxu1 %v1233_v19  ;;  %v482_v19 = vld [vmem:[%s1960_s2 + $0x18] sm:$0xff]  ;;  %v487_v46 = vld [vmem:[%s1960_s2 + $0x40] sm:$0xff] }
  0x4a   :  { %364 = vmatmul.f32.gmra.mxu2 %v263_v47  ;;  %995 = vmatmul.msk.f32.gmra.mxu1 %vm74_vm0, %v59_v48 }
  0x4b   :  { %784 = vmatpush.msrb.mxu0 %v1274_v25  ;;  %1063 = vmatpush.msra.mxu1 %v1245_v21 }
  0x4d   :  { %1064 = vmatpush.msra.mxu1 %v1254_v22  ;;  %v281_v22 = vld [vmem:[%s1958_s1 + $0xe0] sm:$0xff] }
  0x4f   :  { %1065 = vmatpush.msra.mxu1 %v1263_v23  ;;  %v481_v23 = vld [vmem:[%s1960_s2 + $0x10] sm:$0xff] }
  0x50   :  { %1012 = vmatmul.msk.f32.gmra.mxu3 %vm74_vm0, %v272_v49 }
  0x51   :  { %157 = vmatmul.f32.gmra.mxu0 %v54_v50  ;;  %1066 = vmatpush.msra.mxu1 %v1274_v25  ;;  %v484_v25 = vld [vmem:[%s1960_s2 + $0x28] sm:$0xff]  ;;  %v490_v50 = vld [vmem:[%s1960_s2 + $0x58] sm:$0xff] }
  0x52   :  { %367 = vmatmul.f32.gmra.mxu2 %v265_v51  ;;  %996 = vmatmul.msk.f32.gmra.mxu1 %vm74_vm0, %v61_v52 }
  0x58   :  { %1013 = vmatmul.msk.f32.gmra.mxu3 %vm74_vm0, %v274_v53 }
  0x59   :  { %160 = vmatmul.f32.gmra.mxu0 %v56_v54  ;;  %v693_v54 = vld [vmem:[%s1961_s3 + $0x20] sm:$0xff] }
  0x5a   :  { %370 = vmatmul.f32.gmra.mxu2 %v267_v55  ;;  %997 = vmatmul.msk.f32.gmra.mxu1 %vm74_vm0, %v63_v56  ;;  %v694_v55 = vld [vmem:[%s1961_s3 + $0x28] sm:$0xff] }
  0x60   :  { %1014 = vmatmul.msk.f32.gmra.mxu3 %vm74_vm0, %v276_v57  ;;  %v489_v57 = vld [vmem:[%s1960_s2 + $0x50] sm:$0xff] }
  0x61   :  { %163 = vmatmul.f32.gmra.mxu0 %v58_v58 }
  0x62   :  { %373 = vmatmul.f32.gmra.mxu2 %v269_v59  ;;  %998 = vmatmul.msk.f32.gmra.mxu1 %vm74_vm0, %v65_v60 }
  0x68   :  { %1015 = vmatmul.msk.f32.gmra.mxu3 %vm74_vm0, %v278_v61  ;;  %v492_v61 = vld [vmem:[%s1960_s2 + $0x68] sm:$0xff] }
  0x69   :  { %166 = vmatmul.f32.gmra.mxu0 %v60_v62 }
  0x6a   :  { %376 = vmatmul.f32.gmra.mxu2 %v271_v63  ;;  %999 = vmatmul.msk.f32.gmra.mxu1 %vm74_vm0, %v67_v0 }
  0x70   :  { %1016 = vmatmul.msk.f32.gmra.mxu3 %vm74_vm0, %v280_v1  ;;  %v695_v1 = vld [vmem:[%s1961_s3 + $0x30] sm:$0xff] }
  0x71   :  { %169 = vmatmul.f32.gmra.mxu0 %v62_v2  ;;  %v696_v2 = vld [vmem:[%s1961_s3 + $0x38] sm:$0xff] }
  0x72   :  { %379 = vmatmul.f32.gmra.mxu2 %v273_v3  ;;  %1000 = vmatmul.msk.f32.gmra.mxu1 %vm74_vm0, %v69_v4  ;;  %v491_v4 = vld [vmem:[%s1960_s2 + $0x60] sm:$0xff] }
  0x78   :  { %1017 = vmatmul.msk.f32.gmra.mxu3 %vm74_vm0, %v282_v5 }
  0x79   :  { %172 = vmatmul.f32.gmra.mxu0 %v64_v6 }
  0x7a   :  { %382 = vmatmul.f32.gmra.mxu2 %v275_v7  ;;  %1001 = vmatmul.msk.f32.gmra.mxu1 %vm74_vm0, %v71_v8  ;;  %v494_v8 = vld [vmem:[%s1960_s2 + $0x78] sm:$0xff] }
  0x80   :  { %1018 = vmatmul.msk.f32.gmra.mxu3 %vm74_vm0, %v284_v9 }
  0x81   :  { %175 = vmatmul.f32.gmra.mxu0 %v66_v10 }
  0x82   :  { %385 = vmatmul.f32.gmra.mxu2 %v277_v11  ;;  %1002 = vmatmul.msk.f32.gmra.mxu1 %vm74_vm0, %v73_v12  ;;  %v697_v12 = vld [vmem:[%s1961_s3 + $0x40] sm:$0xff] }
  0x86   :  { %v205_v15 = vpop.f32.mrf.mxu1 }
  0x88   :  { %1019 = vmatmul.msk.f32.vlgmr.msrb.gmra.mxu3 %vm74_vm0, %v480_v13  ;;  %v698_v13 = vld [vmem:[%s1961_s3 + $0x48] sm:$0xff] }
  0x89   :  { %178 = vmatmul.f32.gmra.mxu0 %v68_v14 }
  0x8a   :  { %388 = vmatmul.f32.gmra.mxu2 %v279_v16  ;;  %575 = vmatmul.f32.vlgmr.msrb.gmra.mxu1 %v479_v17 }
  0x8b   :  { %v415_v18 = vpop.f32.mrf.mxu3 }
  0x8e   :  { %v208_v21 = vpop.f32.mrf.mxu1 }
  0x90   :  { %1020 = vmatmul.msk.f32.gmra.mxu3 %vm74_vm0, %v482_v19  ;;  %v496_v19 = vld [vmem:[%s1960_s2 + $0x88] sm:$0xff] }
  0x91   :  { %181 = vmatmul.f32.gmra.mxu0 %v70_v20 }
  0x92   :  { %391 = vmatmul.f32.gmra.mxu2 %v281_v22  ;;  %578 = vmatmul.f32.gmra.mxu1 %v481_v23  ;;  %v699_v23 = vld [vmem:[%s1961_s3 + $0x50] sm:$0xff] }
  0x93   :  { %v418_v24 = vpop.f32.mrf.mxu3 }
  0x96   :  { %v211_v27 = vpop.f32.mrf.mxu1 }
  0x98   :  { %1021 = vmatmul.msk.f32.gmra.mxu3 %vm74_vm0, %v484_v25 }
  0x99   :  { %184 = vmatmul.f32.gmra.mxu0 %v72_v26  ;;  %v495_v26 = vld [vmem:[%s1960_s2 + $0x80] sm:$0xff] }
  0x9a   :  { %394 = vmatmul.f32.gmra.mxu2 %v283_v28  ;;  %581 = vmatmul.f32.gmra.mxu1 %v483_v29 }
  0x9b   :  { %v421_v30 = vpop.f32.mrf.mxu3 }
  0x9e   :  { %v140_v32 = vpop.f32.mrf.mxu0 }
  0x9f   :  { %v214_v35 = vpop.f32.mrf.mxu1  ;;  %v1558_v40 = vadd.f32 %v205_v15, %v140_v32  ;;  %v493_v15 = vld [vmem:[%s1960_s2 + $0x70] sm:$0xff] }
  0xa0   :  { %1022 = vmatmul.msk.f32.gmra.mxu3 %vm74_vm0, %v486_v31 }
  0xa1   :  { %785 = vmatmul.f32.vlgmr.msrb.gmra.mxu0 %v689_v33 }
  0xa2   :  { %1035 = vmatmul.msk.f32.vlgmr.msrb.gmra.mxu2 %vm74_vm0, %v690_v34  ;;  %584 = vmatmul.f32.gmra.mxu1 %v485_v36  ;;  %v701_v34 = vld [vmem:[%s1961_s3 + $0x60] sm:$0xff] }
  0xa3   :  { %v424_v37 = vpop.f32.mrf.mxu3 }
  0xa5   :  { %v350_v38 = vpop.f32.mrf.mxu2 }
  0xa6   :  { %v1560_v41 = vadd.f32 %v415_v18, %v350_v38  ;;  %v143_v42 = vpop.f32.mrf.mxu0 }
  0xa7   :  { %v217_v45 = vpop.f32.mrf.mxu1  ;;  %v1578_v51 = vadd.f32 %v208_v21, %v143_v42 }
  0xa8   :  { %v463_v47 = vmax.f32 %v1558_v40, %v1560_v41  ;;  %1023 = vmatmul.msk.f32.gmra.mxu3 %vm74_vm0, %v488_v39 }
  0xa9   :  { %788 = vmatmul.f32.gmra.mxu0 %v691_v43  ;;  %v500_v43 = vld [vmem:[%s1960_s2 + $0xa8] sm:$0xff] }
  0xaa   :  { %1036 = vmatmul.msk.f32.gmra.mxu2 %vm74_vm0, %v692_v44  ;;  %587 = vmatmul.f32.gmra.mxu1 %v487_v46 }
  0xab   :  { %v427_v48 = vpop.f32.mrf.mxu3 }
  0xad   :  { %v353_v49 = vpop.f32.mrf.mxu2 }
  0xae   :  { %v1580_v52 = vadd.f32 %v418_v24, %v353_v49  ;;  %v146_v53 = vpop.f32.mrf.mxu0  ;;  %v700_v24 = vld [vmem:[%s1961_s3 + $0x58] sm:$0xff] }
  0xaf   :  { %v220_v56 = vpop.f32.mrf.mxu1  ;;  %v1598_v62 = vadd.f32 %v211_v27, %v146_v53 }
  0xb0   :  { %v464_v58 = vmax.f32 %v1578_v51, %v1580_v52  ;;  %1024 = vmatmul.msk.f32.gmra.mxu3 %vm74_vm0, %v490_v50  ;;  %v704_v50 = vld [vmem:[%s1961_s3 + $0x78] sm:$0xff] }
  0xb1   :  { %791 = vmatmul.f32.gmra.mxu0 %v693_v54  ;;  %v499_v54 = vld [vmem:[%s1960_s2 + $0xa0] sm:$0xff] }
  0xb2   :  { %1037 = vmatmul.msk.f32.gmra.mxu2 %vm74_vm0, %v694_v55  ;;  %590 = vmatmul.f32.gmra.mxu1 %v489_v57 }
  0xb3   :  { %v430_v59 = vpop.f32.mrf.mxu3 }
  0xb5   :  { %v356_v60 = vpop.f32.mrf.mxu2 }
  0xb6   :  { %v1600_v63 = vadd.f32 %v421_v30, %v356_v60  ;;  %v149_v0 = vpop.f32.mrf.mxu0  ;;  %v498_v30 = vld [vmem:[%s1960_s2 + $0x98] sm:$0xff] }
  0xb7   :  { %v223_v3 = vpop.f32.mrf.mxu1  ;;  %v1618_v9 = vadd.f32 %v214_v35, %v149_v0  ;;  %v702_v35 = vld [vmem:[%s1961_s3 + $0x68] sm:$0xff]  ;;  %v705_v0 = vld [vmem:[%s1961_s3 + $0x80] sm:$0xff] }
  0xb8   :  { %v465_v5 = vmax.f32 %v1598_v62, %v1600_v63  ;;  %1025 = vmatmul.msk.f32.gmra.mxu3 %vm74_vm0, %v492_v61 }
  0xb9   :  { %794 = vmatmul.f32.gmra.mxu0 %v695_v1 }
  0xba   :  { %1038 = vmatmul.msk.f32.gmra.mxu2 %vm74_vm0, %v696_v2  ;;  %593 = vmatmul.f32.gmra.mxu1 %v491_v4  ;;  %v706_v2 = vld [vmem:[%s1961_s3 + $0x88] sm:$0xff]  ;;  %v501_v4 = vld [vmem:[%s1960_s2 + $0xb0] sm:$0xff] }
  0xbb   :  { %v433_v6 = vpop.f32.mrf.mxu3 }
  0xbd   :  { %v359_v7 = vpop.f32.mrf.mxu2 }
  0xbe   :  { %v1620_v10 = vadd.f32 %v424_v37, %v359_v7  ;;  %v152_v11 = vpop.f32.mrf.mxu0  ;;  %v497_v37 = vld [vmem:[%s1960_s2 + $0x90] sm:$0xff] }
  0xbf   :  { %v226_v14 = vpop.f32.mrf.mxu1  ;;  %v1638_v20 = vadd.f32 %v217_v45, %v152_v11  ;;  %v504_v11 = vld [vmem:[%s1960_s2 + $0xc8] sm:$0xff] }
  0xc0   :  { %v466_v16 = vmax.f32 %v1618_v9, %v1620_v10  ;;  %1026 = vmatmul.msk.f32.gmra.mxu3 %vm74_vm0, %v494_v8 }
  0xc1   :  { %797 = vmatmul.f32.gmra.mxu0 %v697_v12 }
  0xc2   :  { %1039 = vmatmul.msk.f32.gmra.mxu2 %vm74_vm0, %v698_v13  ;;  %596 = vmatmul.f32.gmra.mxu1 %v493_v15 }
  0xc3   :  { %v436_v17 = vpop.f32.mrf.mxu3 }
  0xc5   :  { %v362_v18 = vpop.f32.mrf.mxu2 }
  0xc6   :  { %v1640_v21 = vadd.f32 %v427_v48, %v362_v18  ;;  %v155_v22 = vpop.f32.mrf.mxu0  ;;  %v703_v48 = vld [vmem:[%s1961_s3 + $0x70] sm:$0xff] }
  0xc7   :  { %v229_v25 = vpop.f32.mrf.mxu1  ;;  %v1658_v31 = vadd.f32 %v220_v56, %v155_v22 }
  0xc8   :  { %v467_v27 = vmax.f32 %v1638_v20, %v1640_v21  ;;  %1027 = vmatmul.msk.f32.gmra.mxu3 %vm74_vm0, %v496_v19  ;;  %v503_v19 = vld [vmem:[%s1960_s2 + $0xc0] sm:$0xff] }
  0xc9   :  { %800 = vmatmul.f32.gmra.mxu0 %v699_v23 }
  0xca   :  { %1040 = vmatmul.msk.f32.gmra.mxu2 %vm74_vm0, %v700_v24  ;;  %599 = vmatmul.f32.gmra.mxu1 %v495_v26 }
  0xcb   :  { %v439_v28 = vpop.f32.mrf.mxu3 }
  0xcd   :  { %v365_v29 = vpop.f32.mrf.mxu2 }
  0xce   :  { %v1660_v32 = vadd.f32 %v430_v59, %v365_v29  ;;  %v158_v33 = vpop.f32.mrf.mxu0  ;;  %v502_v59 = vld [vmem:[%s1960_s2 + $0xb8] sm:$0xff]  ;;  %v709_v29 = vld [vmem:[%s1961_s3 + $0xa0] sm:$0xff] }
  0xcf   :  { %v232_v36 = vpop.f32.mrf.mxu1  ;;  %v1678_v44 = vadd.f32 %v223_v3, %v158_v33  ;;  %v710_v33 = vld [vmem:[%s1961_s3 + $0xa8] sm:$0xff] }
  0xd0   :  { %v468_v38 = vmax.f32 %v1658_v31, %v1660_v32  ;;  %1028 = vmatmul.msk.f32.gmra.mxu3 %vm74_vm0, %v498_v30 }
  0xd1   :  { %803 = vmatmul.f32.gmra.mxu0 %v701_v34 }
  0xd2   :  { %1041 = vmatmul.msk.f32.gmra.mxu2 %vm74_vm0, %v702_v35  ;;  %602 = vmatmul.f32.gmra.mxu1 %v497_v37  ;;  %v505_v35 = vld [vmem:[%s1960_s2 + $0xd0] sm:$0xff] }
  0xd3   :  { %v442_v39 = vpop.f32.mrf.mxu3 }
  0xd5   :  { %v368_v42 = vpop.f32.mrf.mxu2 }
  0xd6   :  { %v1680_v45 = vadd.f32 %v433_v6, %v368_v42  ;;  %v161_v46 = vpop.f32.mrf.mxu0  ;;  %v508_v42 = vld [vmem:[%s1960_s2 + $0xe8] sm:$0xff] }
  0xd7   :  { %v1685_v49 = vadd.f32 %v226_v14, %v161_v46  ;;  %v235_v53 = vpop.f32.mrf.mxu1  ;;  %v707_v14 = vld [vmem:[%s1961_s3 + $0x90] sm:$0xff] }
  0xd8   :  { %v469_v55 = vmax.f32 %v1678_v44, %v1680_v45  ;;  %1029 = vmatmul.msk.f32.gmra.mxu3 %vm74_vm0, %v500_v43 }
  0xd9   :  { %806 = vmatmul.f32.gmra.mxu0 %v703_v48  ;;  %v711_v48 = vld [vmem:[%s1961_s3 + $0xb0] sm:$0xff] }
  0xda   :  { %1042 = vmatmul.msk.f32.gmra.mxu2 %vm74_vm0, %v704_v50  ;;  %605 = vmatmul.f32.gmra.mxu1 %v499_v54 }
  0xdb   :  { %v445_v56 = vpop.f32.mrf.mxu3 }
  0xdd   :  { %v371_v57 = vpop.f32.mrf.mxu2 }
  0xde   :  { %v1700_v60 = vadd.f32 %v436_v17, %v371_v57  ;;  %v164_v61 = vpop.f32.mrf.mxu0  ;;  %v708_v17 = vld [vmem:[%s1961_s3 + $0x98] sm:$0xff]  ;;  %v507_v57 = vld [vmem:[%s1960_s2 + $0xe0] sm:$0xff] }
  0xdf   :  { %v1705_v1 = vadd.f32 %v229_v25, %v164_v61  ;;  %v238_v3 = vpop.f32.mrf.mxu1  ;;  %v506_v25 = vld [vmem:[%s1960_s2 + $0xd8] sm:$0xff] }
  0xe0   :  { %v470_v6 = vmax.f32 %v1685_v49, %v1700_v60  ;;  %1030 = vmatmul.msk.f32.gmra.mxu3 %vm74_vm0, %v502_v59 }
  0xe1   :  { %809 = vmatmul.f32.gmra.mxu0 %v705_v0  ;;  %v510_v0 = vld [vmem:[%s1960_s2 + $0xf8] sm:$0xff] }
  0xe2   :  { %1043 = vmatmul.msk.f32.gmra.mxu2 %vm74_vm0, %v706_v2  ;;  %608 = vmatmul.f32.gmra.mxu1 %v501_v4  ;;  %v713_v4 = vld [vmem:[%s1961_s3 + $0xc0] sm:$0xff] }
  0xe3   :  { %v448_v7 = vpop.f32.mrf.mxu3 }
  0xe5   :  { %v374_v8 = vpop.f32.mrf.mxu2 }
  0xe6   :  { %v1720_v12 = vadd.f32 %v439_v28, %v374_v8  ;;  %v167_v13 = vpop.f32.mrf.mxu0 }
  0xe7   :  { %v1725_v15 = vadd.f32 %v232_v36, %v167_v13  ;;  %v241_v18 = vpop.f32.mrf.mxu1 }
  0xe8   :  { %v471_v22 = vmax.f32 %v1705_v1, %v1720_v12  ;;  %1031 = vmatmul.msk.f32.gmra.mxu3 %vm74_vm0, %v504_v11  ;;  %v714_v11 = vld [vmem:[%s1961_s3 + $0xc8] sm:$0xff] }
  0xe9   :  { %812 = vmatmul.f32.gmra.mxu0 %v707_v14  ;;  %v509_v14 = vld [vmem:[%s1960_s2 + $0xf0] sm:$0xff] }
  0xea   :  { %1044 = vmatmul.msk.f32.gmra.mxu2 %vm74_vm0, %v708_v17  ;;  %611 = vmatmul.f32.gmra.mxu1 %v503_v19  ;;  %v720_v19 = vld [vmem:[%s1961_s3 + $0xf8] sm:$0xff] }
  0xeb   :  { %v451_v23 = vpop.f32.mrf.mxu3 }
  0xed   :  { %v377_v24 = vpop.f32.mrf.mxu2 }
  0xee   :  { %v1740_v26 = vadd.f32 %v442_v39, %v377_v24  ;;  %v170_v28 = vpop.f32.mrf.mxu0 }
  0xef   :  { %v1745_v30 = vadd.f32 %v235_v53, %v170_v28  ;;  %v244_v34 = vpop.f32.mrf.mxu1  ;;  %v712_v53 = vld [vmem:[%s1961_s3 + $0xb8] sm:$0xff]  ;;  %v715_v28 = vld [vmem:[%s1961_s3 + $0xd0] sm:$0xff] }
  0xf0   :  { %v472_v36 = vmax.f32 %v1725_v15, %v1740_v26  ;;  %1032 = vmatmul.msk.f32.gmra.mxu3 %vm74_vm0, %v506_v25 }
  0xf1   :  { %815 = vmatmul.f32.gmra.mxu0 %v709_v29 }
  0xf2   :  { %1045 = vmatmul.msk.f32.gmra.mxu2 %vm74_vm0, %v710_v33  ;;  %614 = vmatmul.f32.gmra.mxu1 %v505_v35  ;;  %v716_v33 = vld [vmem:[%s1961_s3 + $0xd8] sm:$0xff] }
  0xf3   :  { %v454_v37 = vpop.f32.mrf.mxu3 }
  0xf5   :  { %v380_v39 = vpop.f32.mrf.mxu2 }
  0xf6   :  { %v1760_v43 = vadd.f32 %v445_v56, %v380_v39  ;;  %v173_v46 = vpop.f32.mrf.mxu0  ;;  %v719_v39 = vld [vmem:[%s1961_s3 + $0xf0] sm:$0xff] }
  0xf7   :  { %v1765_v50 = vadd.f32 %v238_v3, %v173_v46  ;;  %v247_v54 = vpop.f32.mrf.mxu1 }
  0xf8   :  { %1033 = vmatmul.msk.f32.gmra.mxu3 %vm74_vm0, %v508_v42 }
  0xf9   :  { %818 = vmatmul.f32.gmra.mxu0 %v711_v48 }
  0xfa   :  { %1046 = vmatmul.msk.f32.gmra.mxu2 %vm74_vm0, %v712_v53  ;;  %617 = vmatmul.f32.gmra.mxu1 %v507_v57  ;;  %v717_v53 = vld [vmem:[%s1961_s3 + $0xe0] sm:$0xff] }
  0xfb   :  { %v457_v59 = vpop.f32.mrf.mxu3 }
  0xfd   :  { %v383_v61 = vpop.f32.mrf.mxu2 }
  0xfe   :  { %v1780_v2 = vadd.f32 %v448_v7, %v383_v61  ;;  %v176_v3 = vpop.f32.mrf.mxu0  ;;  %v718_v61 = vld [vmem:[%s1961_s3 + $0xe8] sm:$0xff] }
  0xff   :  { %v1785_v8 = vadd.f32 %v241_v18, %v176_v3  ;;  %v250_v13 = vpop.f32.mrf.mxu1 }
 0x100   :  { %1034 = vmatmul.msk.f32.gmra.mxu3 %vm74_vm0, %v510_v0 }
 0x101   :  { %821 = vmatmul.f32.gmra.mxu0 %v713_v4 }
 0x102   :  { %1047 = vmatmul.msk.f32.gmra.mxu2 %vm74_vm0, %v714_v11  ;;  %620 = vmatmul.f32.gmra.mxu1 %v509_v14 }
 0x103   :  { %v460_v17 = vpop.f32.mrf.mxu3 }
 0x105   :  { %v386_v18 = vpop.f32.mrf.mxu2 }
 0x106   :  { %v1800_v24 = vadd.f32 %v451_v23, %v386_v18  ;;  %v179_v25 = vpop.f32.mrf.mxu0 }
 0x107   :  { %v1805_v29 = vadd.f32 %v244_v34, %v179_v25  ;;  %v576_v35 = vpop.f32.mrf.mxu1 }
 0x108   :  { %1050 = vmatmul.msk.f32.vlgmr.msra.gmra.mxu3 %vm74_vm0, %v720_v19  ;;  %v1843_v19 = vld [vmem:[%s1962_s5] ss:$0 sm:$0xff] }
 0x109   :  { %824 = vmatmul.f32.gmra.mxu0 %v715_v28 }
 0x10a   :  { %1048 = vmatmul.msk.f32.gmra.mxu2 %vm74_vm0, %v716_v33  ;;  %830 = vmatmul.f32.vlgmr.msra.gmra.mxu1 %v719_v39 }
 0x10b   :  { %v641_v34 = vpop.f32.mrf.mxu3 }
 0x10d   :  { %v389_v42 = vpop.f32.mrf.mxu2 }
 0x10e   :  { %v1817_v46 = vadd.f32 %v454_v37, %v389_v42  ;;  %v182_v48 = vpop.f32.mrf.mxu0 }
 0x10f   :  { %v1822_v57 = vadd.f32 %v247_v54, %v182_v48  ;;  %v579_v0 = vpop.f32.mrf.mxu1 }
 0x111   :  { %827 = vmatmul.f32.gmra.mxu0 %v717_v53 }
 0x112   :  { %1049 = vmatmul.msk.f32.gmra.mxu2 %vm74_vm0, %v718_v61 }
 0x113   :  { %v644_v37 = vpop.f32.mrf.mxu3 }
 0x114   :  { %v645_v7 = vadd.f32 %v644_v37, %v579_v0 }
 0x115   :  { %v392_v4 = vpop.f32.mrf.mxu2 }
 0x116   :  { %v1830_v11 = vadd.f32 %v457_v59, %v392_v4  ;;  %v185_v14 = vpop.f32.mrf.mxu0  ;;  %v642_v59 = vadd.f32 %v641_v34, %v576_v35 }
 0x117   :  { %v1832_v18 = vadd.f32 %v250_v13, %v185_v14  ;;  %v582_v54 = vpop.f32.mrf.mxu1 }
 0x11b   :  { %v647_v25 = vpop.f32.mrf.mxu3 }
 0x11d   :  { %v395_v28 = vpop.f32.mrf.mxu2 }
 0x11e   :  { %v1836_v33 = vadd.f32 %v460_v17, %v395_v28  ;;  %v786_v39 = vpop.f32.mrf.mxu0 }
 0x11f   :  { %v585_v42 = vpop.f32.mrf.mxu1 }
 0x123   :  { %v650_v53 = vpop.f32.mrf.mxu3 }
 0x125   :  { %v851_v61 = vpop.f32.mrf.mxu2 }
 0x126   :  { %v852_v4 = vadd.f32 %v851_v61, %v786_v39  ;;  %v789_v3 = vpop.f32.mrf.mxu0 }
 0x127   :  { %v588_v13 = vpop.f32.mrf.mxu1 }
 0x128   :  { %v899_v14 = vmax.f32 %v642_v59, %v852_v4  ;;  %v648_v4 = vadd.f32 %v647_v25, %v582_v54 }
 0x12a   :  { %v915_v17 = vmax.f32 %v463_v47, %v899_v14 }
 0x12b   :  { %v653_v28 = vpop.f32.mrf.mxu3 }
 0x12c   :  { %v935_v23 = vadd.f32 %v1843_v19, %v915_v17 }
 0x12d   :  { %v854_v48 = vpop.f32.mrf.mxu2 }
 0x12e   :  { %v951_v56 = vmax.f32 %v935_v23, 0.0  ;;  %v855_v35 = vadd.f32 %v854_v48, %v789_v3  ;;  %v792_v34 = vpop.f32.mrf.mxu0 }
 0x12f   :  { %v591_v39 = vpop.f32.mrf.mxu1 }
 0x130   :  { %967 = vst [vmem:[%s1963_s6] sm:$0xff] %v951_v56  ;;  %v900_v61 = vmax.f32 %v645_v7, %v855_v35  ;;  %v651_v7 = vadd.f32 %v650_v53, %v585_v42 }
 0x132   :  { %v916_v59 = vmax.f32 %v464_v58, %v900_v61  ;;  %v654_v61 = vadd.f32 %v653_v28, %v588_v13 }
 0x133   :  { %v656_v40 = vpop.f32.mrf.mxu3 }
 0x134   :  { %v936_v41 = vadd.f32 %v1843_v19, %v916_v59 }
 0x135   :  { %v857_v47 = vpop.f32.mrf.mxu2 }
 0x136   :  { %v952_v14 = vmax.f32 %v936_v41, 0.0  ;;  %v858_v0 = vadd.f32 %v857_v47, %v792_v34  ;;  %v795_v23 = vpop.f32.mrf.mxu0 }
 0x137   :  { %v594_v3 = vpop.f32.mrf.mxu1 }
 0x138   :  { %968 = vst [vmem:[%s1963_s6 + $0x8] sm:$0xff] %v952_v14  ;;  %v901_v37 = vmax.f32 %v648_v4, %v858_v0  ;;  %v657_v14 = vadd.f32 %v656_v40, %v591_v39 }
 0x13a   :  { %v917_v56 = vmax.f32 %v465_v5, %v901_v37 }
 0x13b   :  { %v659_v51 = vpop.f32.mrf.mxu3 }
 0x13c   :  { %v937_v52 = vadd.f32 %v1843_v19, %v917_v56 }
 0x13d   :  { %v860_v58 = vpop.f32.mrf.mxu2 }
 0x13e   :  { %v953_v48 = vmax.f32 %v937_v52, 0.0  ;;  %v861_v54 = vadd.f32 %v860_v58, %v795_v23  ;;  %v798_v25 = vpop.f32.mrf.mxu0  ;;  %v660_v52 = vadd.f32 %v659_v51, %v594_v3 }
 0x13f   :  { %v597_v17 = vpop.f32.mrf.mxu1 }
 0x140   :  { %969 = vst [vmem:[%s1963_s6 + $0x10] sm:$0xff] %v953_v48  ;;  %v902_v35 = vmax.f32 %v651_v7, %v861_v54 }
 0x142   :  { %v918_v34 = vmax.f32 %v466_v16, %v902_v35 }
 0x143   :  { %v662_v62 = vpop.f32.mrf.mxu3 }
 0x144   :  { %v938_v63 = vadd.f32 %v1843_v19, %v918_v34 }
 0x145   :  { %v863_v5 = vpop.f32.mrf.mxu2 }
 0x146   :  { %v954_v59 = vmax.f32 %v938_v63, 0.0  ;;  %v864_v42 = vadd.f32 %v863_v5, %v798_v25  ;;  %v801_v53 = vpop.f32.mrf.mxu0  ;;  %v663_v25 = vadd.f32 %v662_v62, %v597_v17 }
 0x147   :  { %v600_v41 = vpop.f32.mrf.mxu1 }
 0x148   :  { %970 = vst [vmem:[%s1963_s6 + $0x18] sm:$0xff] %v954_v59  ;;  %v903_v47 = vmax.f32 %v654_v61, %v864_v42 }
 0x14a   :  { %v919_v4 = vmax.f32 %v467_v27, %v903_v47 }
 0x14b   :  { %v665_v9 = vpop.f32.mrf.mxu3 }
 0x14c   :  { %v939_v10 = vadd.f32 %v1843_v19, %v919_v4  ;;  %v666_v61 = vadd.f32 %v665_v9, %v600_v41 }
 0x14d   :  { %v866_v16 = vpop.f32.mrf.mxu2 }
 0x14e   :  { %v955_v0 = vmax.f32 %v939_v10, 0.0  ;;  %v867_v13 = vadd.f32 %v866_v16, %v801_v53  ;;  %v804_v28 = vpop.f32.mrf.mxu0 }
 0x14f   :  { %v603_v23 = vpop.f32.mrf.mxu1 }
 0x150   :  { %971 = vst [vmem:[%s1963_s6 + $0x20] sm:$0xff] %v955_v0  ;;  %v904_v37 = vmax.f32 %v657_v14, %v867_v13 }
 0x152   :  { %v920_v56 = vmax.f32 %v468_v38, %v904_v37 }
 0x153   :  { %v668_v20 = vpop.f32.mrf.mxu3 }
 0x154   :  { %v940_v21 = vadd.f32 %v1843_v19, %v920_v56  ;;  %v669_v4 = vadd.f32 %v668_v20, %v603_v23 }
 0x155   :  { %v869_v27 = vpop.f32.mrf.mxu2 }
 0x156   :  { %v956_v58 = vmax.f32 %v940_v21, 0.0  ;;  %v870_v39 = vadd.f32 %v869_v27, %v804_v28  ;;  %v807_v40 = vpop.f32.mrf.mxu0  ;;  %v1964_v21 = vmax.f32 %v1745_v30, %v1760_v43 }
 0x157   :  { %v606_v7 = vpop.f32.mrf.mxu1 }
 0x158   :  { %972 = vst [vmem:[%s1963_s6 + $0x28] sm:$0xff] %v956_v58  ;;  %v905_v48 = vmax.f32 %v660_v52, %v870_v39 }
 0x15a   :  { %v921_v54 = vmax.f32 %v469_v55, %v905_v48 }
 0x15b   :  { %v671_v31 = vpop.f32.mrf.mxu3 }
 0x15c   :  { %v941_v32 = vadd.f32 %v1843_v19, %v921_v54  ;;  %v672_v13 = vadd.f32 %v671_v31, %v606_v7  ;;  %v1965_v54 = vmax.f32 %v1765_v50, %v1780_v2 }
 0x15d   :  { %v872_v38 = vpop.f32.mrf.mxu2 }
 0x15e   :  { %v957_v35 = vmax.f32 %v941_v32, 0.0  ;;  %v873_v3 = vadd.f32 %v872_v38, %v807_v40  ;;  %v810_v51 = vpop.f32.mrf.mxu0 }
 0x15f   :  { %v609_v34 = vpop.f32.mrf.mxu1 }
 0x160   :  { %973 = vst [vmem:[%s1963_s6 + $0x30] sm:$0xff] %v957_v35  ;;  %v906_v63 = vmax.f32 %v663_v25, %v873_v3 }
 0x162   :  { %v922_v5 = vmax.f32 %v470_v6, %v906_v63 }
 0x163   :  { %v674_v44 = vpop.f32.mrf.mxu3 }
 0x164   :  { %v942_v45 = vadd.f32 %v1843_v19, %v922_v5  ;;  %v675_v52 = vadd.f32 %v674_v44, %v609_v34  ;;  %v1966_v5 = vmax.f32 %v1785_v8, %v1800_v24  ;;  %v1968_v24 = vmax.f32 %v1805_v29, %v1817_v46 }
 0x165   :  { %v875_v55 = vpop.f32.mrf.mxu2  ;;  %v1969_v29 = vmax.f32 %v1822_v57, %v1830_v11 }
 0x166   :  { %v958_v59 = vmax.f32 %v942_v45, 0.0  ;;  %v876_v17 = vadd.f32 %v875_v55, %v810_v51  ;;  %v813_v62 = vpop.f32.mrf.mxu0 }
 0x167   :  { %v612_v42 = vpop.f32.mrf.mxu1 }
 0x168   :  { %974 = vst [vmem:[%s1963_s6 + $0x38] sm:$0xff] %v958_v59  ;;  %v907_v53 = vmax.f32 %v666_v61, %v876_v17 }
 0x16a   :  { %v923_v47 = vmax.f32 %v471_v22, %v907_v53 }
 0x16b   :  { %v677_v49 = vpop.f32.mrf.mxu3 }
 0x16c   :  { %v943_v60 = vadd.f32 %v1843_v19, %v923_v47  ;;  %v678_v38 = vadd.f32 %v677_v49, %v612_v42  ;;  %v1967_v42 = vmax.f32 %v1832_v18, %v1836_v33 }
 0x16d   :  { %v878_v6 = vpop.f32.mrf.mxu2 }
 0x16e   :  { %v959_v10 = vmax.f32 %v943_v60, 0.0  ;;  %v879_v41 = vadd.f32 %v878_v6, %v813_v62  ;;  %v816_v9 = vpop.f32.mrf.mxu0 }
 0x16f   :  { %v615_v16 = vpop.f32.mrf.mxu1 }
 0x170   :  { %975 = vst [vmem:[%s1963_s6 + $0x40] sm:$0xff] %v959_v10  ;;  %v908_v14 = vmax.f32 %v669_v4, %v879_v41 }
 0x172   :  { %v924_v0 = vmax.f32 %v472_v36, %v908_v14 }
 0x173   :  { %v680_v1 = vpop.f32.mrf.mxu3 }
 0x174   :  { %v944_v12 = vadd.f32 %v1843_v19, %v924_v0  ;;  %v681_v61 = vadd.f32 %v680_v1, %v615_v16 }
 0x175   :  { %v881_v22 = vpop.f32.mrf.mxu2 }
 0x176   :  { %v960_v28 = vmax.f32 %v944_v12, 0.0  ;;  %v882_v23 = vadd.f32 %v881_v22, %v816_v9  ;;  %v819_v37 = vpop.f32.mrf.mxu0 }
 0x177   :  { %v618_v56 = vpop.f32.mrf.mxu1 }
 0x178   :  { %976 = vst [vmem:[%s1963_s6 + $0x48] sm:$0xff] %v960_v28  ;;  %v909_v20 = vmax.f32 %v672_v13, %v882_v23 }
 0x17a   :  { %v925_v27 = vmax.f32 %v1964_v21, %v909_v20 }
 0x17b   :  { %v683_v15 = vpop.f32.mrf.mxu3 }
 0x17c   :  { %v945_v26 = vadd.f32 %v1843_v19, %v925_v27  ;;  %v684_v41 = vadd.f32 %v683_v15, %v618_v56 }
 0x17d   :  { %v884_v36 = vpop.f32.mrf.mxu2 }
 0x17e   :  { %v961_v58 = vmax.f32 %v945_v26, 0.0  ;;  %v885_v39 = vadd.f32 %v884_v36, %v819_v37  ;;  %v822_v7 = vpop.f32.mrf.mxu0 }
 0x17f   :  { %v621_v40 = vpop.f32.mrf.mxu1 }
 0x180   :  { %977 = vst [vmem:[%s1963_s6 + $0x50] sm:$0xff] %v961_v58  ;;  %v910_v48 = vmax.f32 %v675_v52, %v885_v39 }
 0x182   :  { %v926_v31 = vmax.f32 %v1965_v54, %v910_v48 }
 0x183   :  { %v686_v30 = vpop.f32.mrf.mxu3 }
 0x184   :  { %v946_v43 = vadd.f32 %v1843_v19, %v926_v31  ;;  %v687_v63 = vadd.f32 %v686_v30, %v621_v40 }
 0x185   :  { %v887_v32 = vpop.f32.mrf.mxu2 }
 0x186   :  { %v962_v25 = vmax.f32 %v946_v43, 0.0  ;;  %v888_v35 = vadd.f32 %v887_v32, %v822_v7  ;;  %v825_v34 = vpop.f32.mrf.mxu0 }
 0x187   :  { %v831_v51 = vpop.f32.mrf.mxu1 }
 0x188   :  { %978 = vst [vmem:[%s1963_s6 + $0x58] sm:$0xff] %v962_v25  ;;  %v911_v3 = vmax.f32 %v678_v38, %v888_v35 }
 0x18a   :  { %v927_v50 = vmax.f32 %v1966_v5, %v911_v3 }
 0x18b   :  { %v896_v2 = vpop.f32.mrf.mxu3 }
 0x18c   :  { %v947_v44 = vadd.f32 %v1843_v19, %v927_v50  ;;  %v897_v45 = vadd.f32 %v896_v2, %v831_v51 }
 0x18d   :  { %v890_v55 = vpop.f32.mrf.mxu2 }
 0x18e   :  { %v963_v59 = vmax.f32 %v947_v44, 0.0  ;;  %v914_v17 = vmax.f32 %v687_v63, %v897_v45  ;;  %v891_v62 = vadd.f32 %v890_v55, %v825_v34  ;;  %v828_v60 = vpop.f32.mrf.mxu0 }
 0x190   :  { %979 = vst [vmem:[%s1963_s6 + $0x60] sm:$0xff] %v963_v59  ;;  %v930_v53 = vmax.f32 %v1967_v42, %v914_v17  ;;  %v912_v47 = vmax.f32 %v681_v61, %v891_v62 }
 0x192   :  { %v950_v8 = vadd.f32 %v1843_v19, %v930_v53  ;;  %v928_v49 = vmax.f32 %v1968_v24, %v912_v47 }
 0x194   :  { %v966_v6 = vmax.f32 %v950_v8, 0.0  ;;  %v948_v4 = vadd.f32 %v1843_v19, %v928_v49 }
 0x195   :  { %v893_v10 = vpop.f32.mrf.mxu2 }
 0x196   :  { %982 = vst [vmem:[%s1963_s6 + $0x78] sm:$0xff] %v966_v6  ;;  %v964_v9 = vmax.f32 %v948_v4, 0.0  ;;  %v894_v18 = vadd.f32 %v893_v10, %v828_v60 }
 0x198   :  { %980 = vst [vmem:[%s1963_s6 + $0x68] sm:$0xff] %v964_v9  ;;  %v913_v33 = vmax.f32 %v684_v41, %v894_v18 }
 0x19a   :  { %v929_v46 = vmax.f32 %v1969_v29, %v913_v33 }
 0x19c   :  { %v949_v16 = vadd.f32 %v1843_v19, %v929_v46 }
 0x19e   :  { %v965_v14 = vmax.f32 %v949_v16, 0.0 }
 0x1a0   :  { %981 = vst [vmem:[%s1963_s6 + $0x70] sm:$0xff] %v965_v14 }

// kernel: net_forward.5
= control target key start
LH: loop header
LB: loop body
LE: loop exit
PB: predicated region body
PF: predicated region fallthrough
CT: control target
= control target key end

     0   :  { %vm84_vm0 = vcmask 130048   ;;  %s569_s1 = inlined_call_operand.vmem [shape: f32[400,128], index: 1, kind: input, shape index: {}]   ;;  %s570_s0 = inlined_call_operand.vmem [shape: f32[8,400], index: 0, kind: input, shape index: {}]   ;;  %s571_s3 = inlined_call_operand.vmem [shape: f32[128,128], index: 3, kind: input, shape index: {}]   ;;  %s572_s2 = inlined_call_operand.vmem [shape: f32[1,128], index: 2, kind: input, shape index: {}]   ;;  %s573_s4 = inlined_call_operand.vmem [shape: f32[1,128], index: 4, kind: input, shape index: {}]   ;;  %s574_s5 = inlined_call_operand.vmem [shape: f32[128,128], index: 5, kind: input, shape index: {}]   ;;  %s575_s6 = inlined_call_operand.vmem [shape: f32[1,128], index: 6, kind: input, shape index: {}]   ;;  %s576_s7 = inlined_call_operand.vmem [shape: f32[8,128], index: 7, kind: output, shape index: {}]  }
   0x1   :  { %v77_v0 = vld [vmem:[%s569_s1 + $0x178] sm:$0xff]  ;;  %v76_v2 = vld [vmem:[%s569_s1 + $0x170] sm:$0xff]  ;;  %v75_v5 = vld [vmem:[%s569_s1 + $0x168] sm:$0xff] }
   0x2   :  { %v45_v1 = vld [vmem:[%s569_s1 + $0x78] sm:$0xff]  ;;  %128 = vmatpush.msra.mxu2 %v77_v0  ;;  %v44_v3 = vld [vmem:[%s569_s1 + $0x70] sm:$0xff]  ;;  %v43_v6 = vld [vmem:[%s569_s1 + $0x68] sm:$0xff] }
   0x3   :  { %88 = vmatpush.msra.mxu0 %v45_v1  ;;  %v61_v4 = vld [vmem:[%s569_s1 + $0xf8] sm:$0xff]  ;;  %v60_v7 = vld [vmem:[%s569_s1 + $0xf0] sm:$0xff]  ;;  %v59_v8 = vld [vmem:[%s569_s1 + $0xe8] sm:$0xff] }
   0x4   :  { %108 = vmatpush.msra.mxu1 %v61_v4  ;;  %129 = vmatpush.msra.mxu2 %v76_v2  ;;  %v74_v9 = vld [vmem:[%s569_s1 + $0x160] sm:$0xff]  ;;  %v73_v12 = vld [vmem:[%s569_s1 + $0x158] sm:$0xff]  ;;  %v72_v15 = vld [vmem:[%s569_s1 + $0x150] sm:$0xff] }
   0x5   :  { %89 = vmatpush.msra.mxu0 %v44_v3  ;;  %v42_v10 = vld [vmem:[%s569_s1 + $0x60] sm:$0xff]  ;;  %v41_v13 = vld [vmem:[%s569_s1 + $0x58] sm:$0xff]  ;;  %v40_v16 = vld [vmem:[%s569_s1 + $0x50] sm:$0xff] }
   0x6   :  { %109 = vmatpush.msra.mxu1 %v60_v7  ;;  %130 = vmatpush.msra.mxu2 %v75_v5  ;;  %v58_v11 = vld [vmem:[%s569_s1 + $0xe0] sm:$0xff]  ;;  %v57_v14 = vld [vmem:[%s569_s1 + $0xd8] sm:$0xff]  ;;  %v56_v17 = vld [vmem:[%s569_s1 + $0xd0] sm:$0xff] }
   0x7   :  { %90 = vmatpush.msra.mxu0 %v43_v6  ;;  %v71_v18 = vld [vmem:[%s569_s1 + $0x148] sm:$0xff]  ;;  %v70_v21 = vld [vmem:[%s569_s1 + $0x140] sm:$0xff]  ;;  %v69_v24 = vld [vmem:[%s569_s1 + $0x138] sm:$0xff] }
   0x8   :  { %110 = vmatpush.msra.mxu1 %v59_v8  ;;  %131 = vmatpush.msra.mxu2 %v74_v9  ;;  %v39_v19 = vld [vmem:[%s569_s1 + $0x48] sm:$0xff]  ;;  %v38_v22 = vld [vmem:[%s569_s1 + $0x40] sm:$0xff]  ;;  %v37_v25 = vld [vmem:[%s569_s1 + $0x38] sm:$0xff] }
   0x9   :  { %91 = vmatpush.msra.mxu0 %v42_v10  ;;  %v55_v20 = vld [vmem:[%s569_s1 + $0xc8] sm:$0xff]  ;;  %v54_v23 = vld [vmem:[%s569_s1 + $0xc0] sm:$0xff]  ;;  %v53_v26 = vld [vmem:[%s569_s1 + $0xb8] sm:$0xff] }
   0xa   :  { %111 = vmatpush.msra.mxu1 %v58_v11  ;;  %132 = vmatpush.msra.mxu2 %v73_v12  ;;  %v79_v27 = vld [vmem:[%s569_s1 + $0x188] sm:$0xff]  ;;  %v68_v28 = vld [vmem:[%s569_s1 + $0x130] sm:$0xff]  ;;  %v78_v30 = vld [vmem:[%s569_s1 + $0x180] sm:$0xff] }
   0xb   :  { %92 = vmatpush.msra.mxu0 %v41_v13  ;;  %v36_v29 = vld [vmem:[%s569_s1 + $0x30] sm:$0xff]  ;;  %162 = vmatpush.msra.mxu3 %v79_v27  ;;  %v29_v32 = vld [vmem:[%s570_s0 + $0x18] sm:$0xff]  ;;  %v67_v33 = vld [vmem:[%s569_s1 + $0x128] sm:$0xff] }
   0xc   :  { %112 = vmatpush.msra.mxu1 %v57_v14  ;;  %133 = vmatpush.msra.mxu2 %v72_v15  ;;  %v52_v31 = vld [vmem:[%s569_s1 + $0xb0] sm:$0xff]  ;;  %v35_v34 = vld [vmem:[%s569_s1 + $0x28] sm:$0xff]  ;;  %v184_v36 = vld [vmem:[%s571_s3 + $0x78] sm:$0xff] }
   0xd   :  { %93 = vmatpush.msra.mxu0 %v40_v16  ;;  %163 = vmatpush.msra.mxu3 %v78_v30  ;;  %v51_v35 = vld [vmem:[%s569_s1 + $0xa8] sm:$0xff]  ;;  %v66_v37 = vld [vmem:[%s569_s1 + $0x120] sm:$0xff]  ;;  %v183_v40 = vld [vmem:[%s571_s3 + $0x70] sm:$0xff] }
   0xe   :  { %113 = vmatpush.msra.mxu1 %v56_v17  ;;  %134 = vmatpush.msra.mxu2 %v71_v18  ;;  %v34_v38 = vld [vmem:[%s569_s1 + $0x20] sm:$0xff]  ;;  %v65_v41 = vld [vmem:[%s569_s1 + $0x118] sm:$0xff]  ;;  %v182_v44 = vld [vmem:[%s571_s3 + $0x68] sm:$0xff] }
   0xf   :  { %94 = vmatpush.msra.mxu0 %v39_v19  ;;  %255 = vmatmul.msk.f32.vlgmr.msra.gmra.mxu3 %vm84_vm0, %v29_v32  ;;  %v50_v39 = vld [vmem:[%s569_s1 + $0xa0] sm:$0xff]  ;;  %v33_v42 = vld [vmem:[%s569_s1 + $0x18] sm:$0xff]  ;;  %v64_v45 = vld [vmem:[%s569_s1 + $0x110] sm:$0xff] }
  0x10   :  { %114 = vmatpush.msra.mxu1 %v55_v20  ;;  %135 = vmatpush.msra.mxu2 %v70_v21  ;;  %v49_v43 = vld [vmem:[%s569_s1 + $0x98] sm:$0xff]  ;;  %v32_v46 = vld [vmem:[%s569_s1 + $0x10] sm:$0xff]  ;;  %v181_v48 = vld [vmem:[%s571_s3 + $0x60] sm:$0xff] }
  0x11   :  { %95 = vmatpush.msra.mxu0 %v38_v22  ;;  %189 = vmatpush.msrb.mxu3 %v184_v36  ;;  %v48_v47 = vld [vmem:[%s569_s1 + $0x90] sm:$0xff]  ;;  %v63_v49 = vld [vmem:[%s569_s1 + $0x108] sm:$0xff]  ;;  %v180_v52 = vld [vmem:[%s571_s3 + $0x58] sm:$0xff] }
  0x12   :  { %115 = vmatpush.msra.mxu1 %v54_v23  ;;  %136 = vmatpush.msra.mxu2 %v69_v24  ;;  %v31_v50 = vld [vmem:[%s569_s1 + $0x8] sm:$0xff]  ;;  %v62_v53 = vld [vmem:[%s569_s1 + $0x100] sm:$0xff]  ;;  %v28_v55 = vld [vmem:[%s570_s0 + $0x10] sm:$0xff] }
  0x13   :  { %96 = vmatpush.msra.mxu0 %v37_v25  ;;  %190 = vmatpush.msrb.mxu3 %v183_v40  ;;  %v47_v51 = vld [vmem:[%s569_s1 + $0x88] sm:$0xff]  ;;  %v30_v54 = vld [vmem:[%s569_s1] sm:$0xff]  ;;  %v179_v58 = vld [vmem:[%s571_s3 + $0x50] sm:$0xff] }
  0x14   :  { %116 = vmatpush.msra.mxu1 %v53_v26  ;;  %137 = vmatpush.msra.mxu2 %v68_v28  ;;  %v26_v56 = vld [vmem:[%s570_s0] sm:$0xff]  ;;  %v27_v59 = vld [vmem:[%s570_s0 + $0x8] sm:$0xff]  ;;  %v176_v62 = vld [vmem:[%s571_s3 + $0x38] sm:$0xff] }
  0x15   :  { %97 = vmatpush.msra.mxu0 %v36_v29  ;;  %191 = vmatpush.msrb.mxu3 %v182_v44  ;;  %v46_v57 = vld [vmem:[%s569_s1 + $0x80] sm:$0xff]  ;;  %v178_v60 = vld [vmem:[%s571_s3 + $0x48] sm:$0xff]  ;;  %v175_v63 = vld [vmem:[%s571_s3 + $0x30] sm:$0xff] }
  0x16   :  { %117 = vmatpush.msra.mxu1 %v52_v31  ;;  %138 = vmatpush.msra.mxu2 %v67_v33  ;;  %v177_v61 = vld [vmem:[%s571_s3 + $0x40] sm:$0xff]  ;;  %v174_v0 = vld [vmem:[%s571_s3 + $0x28] sm:$0xff]  ;;  %v172_v2 = vld [vmem:[%s571_s3 + $0x18] sm:$0xff] }
  0x17   :  { %98 = vmatpush.msra.mxu0 %v35_v34  ;;  %192 = vmatpush.msrb.mxu3 %v181_v48  ;;  %v173_v1 = vld [vmem:[%s571_s3 + $0x20] sm:$0xff]  ;;  %v171_v3 = vld [vmem:[%s571_s3 + $0x10] sm:$0xff]  ;;  %v170_v4 = vld [vmem:[%s571_s3 + $0x8] sm:$0xff] }
  0x18   :  { %118 = vmatpush.msra.mxu1 %v51_v35  ;;  %139 = vmatpush.msra.mxu2 %v66_v37  ;;  %v169_v5 = vld [vmem:[%s571_s3] sm:$0xff]  ;;  %v225_v6 = vld [vmem:[%s574_s5 + $0x78] sm:$0xff]  ;;  %v224_v7 = vld [vmem:[%s574_s5 + $0x70] sm:$0xff] }
  0x19   :  { %99 = vmatpush.msra.mxu0 %v34_v38  ;;  %193 = vmatpush.msrb.mxu3 %v180_v52  ;;  %v223_v8 = vld [vmem:[%s574_s5 + $0x68] sm:$0xff]  ;;  %v222_v9 = vld [vmem:[%s574_s5 + $0x60] sm:$0xff]  ;;  %v221_v10 = vld [vmem:[%s574_s5 + $0x58] sm:$0xff] }
  0x1a   :  { %119 = vmatpush.msra.mxu1 %v50_v39  ;;  %140 = vmatpush.msra.mxu2 %v65_v41  ;;  %v220_v11 = vld [vmem:[%s574_s5 + $0x50] sm:$0xff]  ;;  %v219_v12 = vld [vmem:[%s574_s5 + $0x48] sm:$0xff]  ;;  %v218_v13 = vld [vmem:[%s574_s5 + $0x40] sm:$0xff] }
  0x1b   :  { %100 = vmatpush.msra.mxu0 %v33_v42  ;;  %194 = vmatpush.msrb.mxu3 %v179_v58  ;;  %v217_v14 = vld [vmem:[%s574_s5 + $0x38] sm:$0xff]  ;;  %v256_v15 = vld [vmem:[%s572_s2] ss:$0 sm:$0xff]  ;;  %v216_v16 = vld [vmem:[%s574_s5 + $0x30] sm:$0xff] }
  0x1c   :  { %120 = vmatpush.msra.mxu1 %v49_v43  ;;  %141 = vmatpush.msra.mxu2 %v64_v45  ;;  %v215_v17 = vld [vmem:[%s574_s5 + $0x28] sm:$0xff]  ;;  %v214_v20 = vld [vmem:[%s574_s5 + $0x20] sm:$0xff]  ;;  %v213_v23 = vld [vmem:[%s574_s5 + $0x18] sm:$0xff] }
  0x1d   :  { %101 = vmatpush.msra.mxu0 %v32_v46  ;;  %195 = vmatpush.msrb.mxu3 %v178_v60  ;;  %v212_v29 = vld [vmem:[%s574_s5 + $0x10] sm:$0xff]  ;;  %v211_v30 = vld [vmem:[%s574_s5 + $0x8] sm:$0xff]  ;;  %v210_v31 = vld [vmem:[%s574_s5] sm:$0xff] }
  0x1e   :  { %121 = vmatpush.msra.mxu1 %v48_v47  ;;  %142 = vmatpush.msra.mxu2 %v63_v49  ;;  %v257_v32 = vld [vmem:[%s573_s4] ss:$0 sm:$0xff] }
  0x1f   :  { %102 = vmatpush.msra.mxu0 %v31_v50  ;;  %196 = vmatpush.msrb.mxu3 %v177_v61  ;;  %v258_v36 = vld [vmem:[%s575_s6] ss:$0 sm:$0xff] }
  0x20   :  { %122 = vmatpush.msra.mxu1 %v47_v51  ;;  %143 = vmatpush.msra.mxu2 %v62_v53 }
  0x21   :  { %103 = vmatpush.msra.mxu0 %v30_v54  ;;  %144 = vmatmul.f32.vlgmr.msra.gmra.mxu2 %v28_v55 }
  0x22   :  { %104 = vmatmul.f32.vlgmr.msra.gmra.mxu0 %v26_v56  ;;  %123 = vmatpush.msra.mxu1 %v46_v57 }
  0x23   :  { %124 = vmatmul.f32.vlgmr.msra.gmra.mxu1 %v27_v59  ;;  %197 = vmatpush.msrb.mxu3 %v176_v62 }
  0x24   :  { %230 = vmatpush.msrb.mxu0 %v225_v6 }
  0x25   :  { %198 = vmatpush.msrb.mxu3 %v175_v63 }
  0x26   :  { %231 = vmatpush.msrb.mxu0 %v224_v7 }
  0x27   :  { %199 = vmatpush.msrb.mxu3 %v174_v0 }
  0x28   :  { %232 = vmatpush.msrb.mxu0 %v223_v8 }
  0x29   :  { %200 = vmatpush.msrb.mxu3 %v173_v1 }
  0x2a   :  { %233 = vmatpush.msrb.mxu0 %v222_v9 }
  0x2b   :  { %201 = vmatpush.msrb.mxu3 %v172_v2 }
  0x2c   :  { %234 = vmatpush.msrb.mxu0 %v221_v10 }
  0x2d   :  { %202 = vmatpush.msrb.mxu3 %v171_v3 }
  0x2e   :  { %235 = vmatpush.msrb.mxu0 %v220_v11 }
  0x2f   :  { %203 = vmatpush.msrb.mxu3 %v170_v4 }
  0x30   :  { %236 = vmatpush.msrb.mxu0 %v219_v12 }
  0x31   :  { %204 = vmatpush.msrb.mxu3 %v169_v5 }
  0x32   :  { %237 = vmatpush.msrb.mxu0 %v218_v13 }
  0x34   :  { %238 = vmatpush.msrb.mxu0 %v217_v14 }
  0x36   :  { %239 = vmatpush.msrb.mxu0 %v216_v16 }
  0x38   :  { %240 = vmatpush.msrb.mxu0 %v215_v17 }
  0x3a   :  { %241 = vmatpush.msrb.mxu0 %v214_v20 }
  0x3c   :  { %242 = vmatpush.msrb.mxu0 %v213_v23 }
  0x3e   :  { %243 = vmatpush.msrb.mxu0 %v212_v29 }
  0x40   :  { %244 = vmatpush.msrb.mxu0 %v211_v30 }
  0x42   :  { %245 = vmatpush.msrb.mxu0 %v210_v31 }
  0x92   :  { %v165_v25 = vpop.f32.mrf.mxu3 }
  0x9f   :  { %v105_v18 = vpop.f32.mrf.mxu0 }
  0xa0   :  { %v106_v19 = vadd.f32 %v256_v15, %v105_v18  ;;  %v125_v21 = vpop.f32.mrf.mxu1 }
  0xa2   :  { %v126_v22 = vadd.f32 %v125_v21, %v106_v19 }
  0xa4   :  { %v145_v24 = vpop.f32.mrf.mxu2 }
  0xa5   :  { %v146_v26 = vadd.f32 %v145_v24, %v126_v22 }
  0xa7   :  { %v166_v27 = vadd.f32 %v165_v25, %v146_v26 }
  0xa9   :  { %v168_v28 = vmax.f32 %v166_v27, 0.0 }
  0xab   :  { %205 = vmatmul.f32.vlgmr.msrb.gmra.mxu3 %v168_v28 }
 0x12e   :  { %v206_v33 = vpop.f32.mrf.mxu3 }
 0x12f   :  { %v207_v34 = vadd.f32 %v257_v32, %v206_v33 }
 0x131   :  { %v209_v35 = vmax.f32 %v207_v34, 0.0 }
 0x133   :  { %246 = vmatmul.f32.vlgmr.msrb.gmra.mxu0 %v209_v35 }
 0x1b0   :  { %v247_v37 = vpop.f32.mrf.mxu0 }
 0x1b1   :  { %v248_v38 = vadd.f32 %v258_v36, %v247_v37 }
 0x1b3   :  { %250 = vst [vmem:[%s576_s7] sm:$0xff] %v248_v38 }

</bundles_post_ra>
